<compile_context>
chip_gen: v7x
topology: tpu7x:2x2x1
jax: 0.10.0
libtpu: 0.0.40
codegen_flags: <defaults>
</compile_context>

<pallas_src>
import math
import functools

import jax
import jax.numpy as jnp
from jax.experimental import pallas as pl
from jax.experimental.pallas import tpu as pltpu

PAD = 0  # Constants.PAD


def _default_vmem_limit():
    """Generation-aware scoped-VMEM limit."""
    try:
        cap = getattr(pltpu.get_tpu_info(), "vmem_capacity_bytes", None)
        if cap is None:
            return 32 * 1024 * 1024
        if cap >= 128 * 1024 * 1024:          # v5e / v6e (128 MiB physical)
            return 96 * 1024 * 1024
        return 48 * 1024 * 1024               # v7x (64 MiB physical)
    except Exception:
        return 32 * 1024 * 1024


_VMEM_LIMIT = _default_vmem_limit()


def _pick_tile(dim, preferred, align):
    """Largest tile <= preferred that divides `dim` and is a multiple of `align`;
    falls back to the full dim (always a legal Pallas block size)."""
    if dim <= preferred:
        return dim
    t = (preferred // align) * align
    while t >= align:
        if dim % t == 0:
            return t
        t -= align
    return dim


# ---------------------------------------------------------------------------
# Hoisted GRU input projection: one [M, K] x [K, 6H] matmul (both directions)
# ---------------------------------------------------------------------------

def _proj_kernel(x_ref, w_ref, b_ref, o_ref):
    # x: [TM, K] (f32 or bf16), w: [K, 6H] bf16, b: [1, 6H] f32 -> o: [TM, 6H] f32
    x = x_ref[...].astype(jnp.bfloat16)
    o_ref[...] = (jnp.dot(x, w_ref[...], preferred_element_type=jnp.float32)
                  + b_ref[...])


def gru_input_proj(x2d, w, b, *, tile_m=512):
    """xg = x2d @ w + b ; w packs both directions' W_ih along the output dim."""
    M, K = x2d.shape
    G = w.shape[-1]                            # 6H
    TM = _pick_tile(M, tile_m, 8)
    return pl.pallas_call(
        _proj_kernel,
        out_shape=jax.ShapeDtypeStruct((M, G), jnp.float32),
        grid=(M // TM,),
        in_specs=[
            pl.BlockSpec((TM, K), lambda m: (m, 0)),
            pl.BlockSpec((K, G), lambda m: (0, 0)),
            pl.BlockSpec((1, G), lambda m: (0, 0)),
        ],
        out_specs=pl.BlockSpec((TM, G), lambda m: (m, 0)),
        compiler_params=pltpu.CompilerParams(
            dimension_semantics=("parallel",),
            vmem_limit_bytes=_VMEM_LIMIT),
    )(x2d, w, b)


# ---------------------------------------------------------------------------
# GRU recurrence: fwd & bwd fused into one loop, output [L, B, 2H]
# ---------------------------------------------------------------------------

def _gru_rec_kernel(maxlen_ref, len_ref, xg_ref, wh_ref, bhn_ref, out_ref):
    L, B, twoH = out_ref.shape
    H = twoH // 2
    max_len = maxlen_ref[0]                    # dynamic loop bound (<= L)
    lens = len_ref[...]                        # [B, 1] int32 valid lengths
    wh_f = wh_ref[0]                           # [H, 3H] bf16 packed (r, z, n)
    wh_b = wh_ref[1]
    bhn_f = bhn_ref[0]                         # [1, H] f32 (n-gate hidden bias)
    bhn_b = bhn_ref[1]

    # Only rows t >= max_len are never written by the loop -> zero just the tail
    # (rows with lens <= t < max_len get zeros from the masked stores below).
    def zero_tail(t, c):
        out_ref[t] = jnp.zeros((B, twoH), out_ref.dtype)
        return c
    jax.lax.fori_loop(max_len, L, zero_tail, 0)

    def gates(gx, gh, h, bh_n):
        r = jax.nn.sigmoid(gx[:, 0:H] + gh[:, 0:H])
        z = jax.nn.sigmoid(gx[:, H:2 * H] + gh[:, H:2 * H])
        n = jnp.tanh(gx[:, 2 * H:3 * H] + r * (gh[:, 2 * H:3 * H] + bh_n))
        return (1.0 - z) * n + z * h

    def step(i, carry):
        h_f, h_b = carry                       # each [B, H] f32
        t_f = i
        t_b = max_len - 1 - i
        gx_f = xg_ref[t_f, :, 0:3 * H]         # fwd input-gate pre-activations
        gx_b = xg_ref[t_b, :, 3 * H:6 * H]     # bwd input-gate pre-activations
        gh_f = jnp.dot(h_f.astype(jnp.bfloat16), wh_f,
                       preferred_element_type=jnp.float32)
        gh_b = jnp.dot(h_b.astype(jnp.bfloat16), wh_b,
                       preferred_element_type=jnp.float32)
        hn_f = gates(gx_f, gh_f, h_f, bhn_f)
        hn_b = gates(gx_b, gh_b, h_b, bhn_b)
        # packed-sequence masking (padded positions are zero, like pad_packed_sequence)
        hn_f = jnp.where(lens > t_f, hn_f, 0.0)
        hn_b = jnp.where(lens > t_b, hn_b, 0.0)
        out_ref[t_f, :, 0:H] = hn_f            # fwd half (lane-aligned slice)
        out_ref[t_b, :, H:2 * H] = hn_b        # bwd half
        return (hn_f, hn_b)

    h0 = jnp.zeros((B, H), jnp.float32)
    jax.lax.fori_loop(0, max_len, step, (h0, h0))


def gru_layer(xg, lens2d, max_len, wh, bhn):
    """xg: [L, B, 6H]  ->  hidden sequence [L, B, 2H] (fwd lanes 0:H, bwd H:2H)."""
    L, B, G6 = xg.shape
    H = G6 // 6
    return pl.pallas_call(
        _gru_rec_kernel,
        out_shape=jax.ShapeDtypeStruct((L, B, 2 * H), jnp.float32),
        grid_spec=pltpu.PrefetchScalarGridSpec(
            num_scalar_prefetch=1,             # max_len -> SMEM
            grid=(1,),
            in_specs=[
                pl.BlockSpec((B, 1), lambda i, ml: (0, 0)),
                pl.BlockSpec((L, B, G6), lambda i, ml: (0, 0, 0)),
                pl.BlockSpec((2, H, 3 * H), lambda i, ml: (0, 0, 0)),
                pl.BlockSpec((2, 1, H), lambda i, ml: (0, 0, 0)),
            ],
            out_specs=pl.BlockSpec((L, B, 2 * H), lambda i, ml: (0, 0, 0)),
        ),
        compiler_params=pltpu.CompilerParams(
            dimension_semantics=("arbitrary",),
            vmem_limit_bytes=_VMEM_LIMIT),
    )(max_len, lens2d, xg, wh, bhn)


# ---------------------------------------------------------------------------
# Decoder: fused encoder-LN (on gathered rows) + decoder-LN computed ONCE into
# a VMEM scratch, then a vocab-tiled bf16 projection with a single block store.
# ---------------------------------------------------------------------------

def _decoder_kernel(h_ref, valid_ref, g1_ref, b1_ref, g2_ref, b2_ref,
                    pos_ref, w_ref, ob_ref, o_ref, ln_ref):
    @pl.when(pl.program_id(0) == 0)
    def _():
        h = h_ref[...]                                     # [B, Hd] raw last hidden
        mu = jnp.mean(h, axis=-1, keepdims=True)
        var = jnp.mean(jnp.square(h - mu), axis=-1, keepdims=True)
        h = (h - mu) * jax.lax.rsqrt(var + 1e-5) * g1_ref[...] + b1_ref[...]
        h = h * valid_ref[...]                             # rows with last_pos < 0 stay 0
        mu = jnp.mean(h, axis=-1, keepdims=True)
        var = jnp.mean(jnp.square(h - mu), axis=-1, keepdims=True)
        ln = (h - mu) * jax.lax.rsqrt(var + 1e-5) * g2_ref[...] + b2_ref[...]
        ln_ref[...] = ln.astype(ln_ref.dtype)              # reused by every vocab tile

    w = w_ref[...]                                         # [Hd, TU] bf16 vocab tile
    base = jnp.dot(ln_ref[...], w, preferred_element_type=jnp.float32) + ob_ref[...]
    pos_proj = jnp.dot(pos_ref[...], w, preferred_element_type=jnp.float32) * 0.1
    # (ln + 0.1*pos)@W == ln@W + 0.1*(pos@W); one full-block store, no per-t writes.
    o_ref[...] = base[:, None, :] + pos_proj[None, :, :]


def decoder(last_hidden, valid, enc_g, enc_b, dec_g, dec_b, pos3, w_t, out_bias,
            *, u_tile=2048):
    B, Hd = last_hidden.shape
    U = w_t.shape[1]
    TU = _pick_tile(U, u_tile, 128)                        # lane-dense vocab tile
    return pl.pallas_call(
        _decoder_kernel,
        out_shape=jax.ShapeDtypeStruct((B, 3, U), jnp.float32),
        grid=(U // TU,),
        in_specs=[
            pl.BlockSpec((B, Hd), lambda j: (0, 0)),
            pl.BlockSpec((B, 1), lambda j: (0, 0)),
            pl.BlockSpec((1, Hd), lambda j: (0, 0)),
            pl.BlockSpec((1, Hd), lambda j: (0, 0)),
            pl.BlockSpec((1, Hd), lambda j: (0, 0)),
            pl.BlockSpec((1, Hd), lambda j: (0, 0)),
            pl.BlockSpec((3, Hd), lambda j: (0, 0)),
            pl.BlockSpec((Hd, TU), lambda j: (0, j)),
            pl.BlockSpec((1, TU), lambda j: (0, j)),
        ],
        out_specs=pl.BlockSpec((B, 3, TU), lambda j: (0, 0, j)),
        scratch_shapes=[pltpu.VMEM((B, Hd), jnp.bfloat16)],
        compiler_params=pltpu.CompilerParams(
            dimension_semantics=("arbitrary",),            # scratch carries across tiles
            vmem_limit_bytes=_VMEM_LIMIT),
    )(last_hidden, valid, enc_g.reshape(1, -1), enc_b.reshape(1, -1),
      dec_g.reshape(1, -1), dec_b.reshape(1, -1), pos3, w_t, out_bias.reshape(1, -1))


# ---------------------------------------------------------------------------
# Parameter init (deterministic, mirrors the module's __init__)
# ---------------------------------------------------------------------------

def _xavier_uniform(key, out_dim, in_dim, gain):
    bound = gain * math.sqrt(6.0 / (in_dim + out_dim))
    return jax.random.uniform(key, (out_dim, in_dim), jnp.float32, -bound, bound)


def init_params(key, user_size, embed_dim, hidden_dim, n_layers):
    H = hidden_dim // 2
    keys = iter(jax.random.split(key, 64))
    params = {}
    # UserEncoder embedding: normal(0, 0.1)
    params['user_emb'] = 0.1 * jax.random.normal(next(keys), (user_size, embed_dim),
                                                 jnp.float32)
    # Bidirectional GRU: xavier_uniform(gain=0.1) weights, zero biases (gate order r,z,n)
    gru = []
    in_dim = embed_dim
    for _layer in range(n_layers):
        wi_dirs, wh_dirs, bx_dirs, bhn_dirs = [], [], [], []
        for _d in range(2):                    # 0 = fwd, 1 = bwd
            w_ih = _xavier_uniform(next(keys), 3 * H, in_dim, 0.1)   # [3H, in]
            w_hh = _xavier_uniform(next(keys), 3 * H, H, 0.1)        # [3H, H]
            b_ih = jnp.zeros((3 * H,), jnp.float32)
            b_hh = jnp.zeros((3 * H,), jnp.float32)
            wi_dirs.append(w_ih.T)                                   # [in, 3H]
            wh_dirs.append(w_hh.T)                                   # [H, 3H]
            # pre-folded biases: r/z gates get b_ih + b_hh in the hoisted projection,
            # the n-gate keeps b_hh_n inside the recurrence (GRU semantics).
            bx_dirs.append(jnp.concatenate([b_ih[:2 * H] + b_hh[:2 * H], b_ih[2 * H:]]))
            bhn_dirs.append(b_hh[2 * H:].reshape(1, H))
        lp = dict(
            wi=jnp.concatenate(wi_dirs, axis=1).astype(jnp.bfloat16),   # [in, 6H]
            bx=jnp.concatenate(bx_dirs).reshape(1, 6 * H),              # [1, 6H] f32
            wh=jnp.stack(wh_dirs).astype(jnp.bfloat16),                 # [2, H, 3H]
            bhn=jnp.stack(bhn_dirs),                                    # [2, 1, H] f32
        )
        gru.append(lp)
        in_dim = hidden_dim
    params['gru'] = gru
    # Encoder / decoder LayerNorms
    params['enc_ln_g'] = jnp.ones((hidden_dim,), jnp.float32)
    params['enc_ln_b'] = jnp.zeros((hidden_dim,), jnp.float32)
    params['dec_ln_g'] = jnp.ones((hidden_dim,), jnp.float32)
    params['dec_ln_b'] = jnp.zeros((hidden_dim,), jnp.float32)
    # Decoder position embedding (default normal(0,1)) and output layer
    params['pos_emb'] = jax.random.normal(next(keys), (4, hidden_dim), jnp.float32)
    w_out = _xavier_uniform(next(keys), user_size, hidden_dim, 0.1)     # [U, Hd]
    params['out_w_t'] = w_out.T.astype(jnp.bfloat16)                    # [Hd, U] bf16
    params['out_b'] = jnp.zeros((user_size,), jnp.float32)
    return params


# ---------------------------------------------------------------------------
# Forward pass (eval semantics of ImprovedSeq2SeqModel.forward with tgt=None)
# ---------------------------------------------------------------------------

@functools.partial(jax.jit, static_argnums=(3, 4))
def forward(params, src, src_lengths, user_size, hidden_dim):
    B, L = src.shape
    H = hidden_dim // 2

    # create_mask + packed-sequence lengths (TemporalGraphEncoder)
    mask = (src != PAD)
    enc_lengths = jnp.maximum(mask.sum(axis=1), 1).astype(jnp.int32)
    lens2d = enc_lengths.reshape(B, 1)
    max_len = jnp.max(enc_lengths).reshape(1)             # bounds the recurrence loop

    # UserEncoder: embedding gathered directly in time-major layout, cast to bf16
    # so the hoisted projection streams half the bytes.
    x_tm = params['user_emb'][src.T].astype(jnp.bfloat16)               # [L, B, E]
    x2d = x_tm.reshape(L * B, -1)

    h = None
    h2d = x2d
    for li, lp in enumerate(params['gru']):
        xg = gru_input_proj(h2d, lp['wi'], lp['bx'])                    # [L*B, 6H] f32
        xg = xg.reshape(L, B, 6 * H)
        h = gru_layer(xg, lens2d, max_len, lp['wh'], lp['bhn'])         # [L, B, 2H] f32
        h2d = h.reshape(L * B, 2 * H)

    # gather the last valid hidden state per sequence (decoder uses src_lengths,
    # mirroring the PyTorch reference); [L,B,2H] layout -> no concat needed.
    last_pos = jnp.minimum(src_lengths.astype(jnp.int32) - 1, L - 1)
    idx = jnp.clip(last_pos, 0, L - 1)
    last_hidden = h[idx, jnp.arange(B)]                                 # [B, 2H]
    valid = (last_pos >= 0).astype(jnp.float32).reshape(B, 1)

    dec = decoder(last_hidden, valid,
                  params['enc_ln_g'], params['enc_ln_b'],
                  params['dec_ln_g'], params['dec_ln_b'],
                  params['pos_emb'][1:4].astype(jnp.bfloat16),
                  params['out_w_t'], params['out_b'])                   # [B, 3, U]

    # BOS logits + concat; tgt=None -> tgt_len=4 matches exactly
    bos = jnp.zeros((B, 1, user_size), jnp.float32)
    return jnp.concatenate([bos, dec], axis=1)                          # [B, 4, U]


# ---------------------------------------------------------------------------

if __name__ == "__main__":
    # Small, TPU-friendly demo sizes: H = hidden_dim//2 = 128 (lane-aligned gate
    # slices), vocab a multiple of 128 so the decoder grid tiles cleanly.
    user_size, embed_dim, hidden_dim, n_layers = 1536, 128, 256, 2
    B, L = 2, 8

    key = jax.random.PRNGKey(0)
    pkey, skey = jax.random.split(key)
    params = init_params(pkey, user_size, embed_dim, hidden_dim, n_layers)

    src_lengths = jnp.array([5, 7], dtype=jnp.int32)
    src_vals = jax.random.randint(skey, (B, L), 1, user_size)
    positions = jnp.arange(L)[None, :]
    src = jnp.where(positions < src_lengths[:, None], src_vals, PAD).astype(jnp.int32)

    out = forward(params, src, src_lengths, user_size, hidden_dim)
    out = jax.block_until_ready(out)

    assert out.shape == (B, 4, user_size), out.shape
    assert bool(jnp.all(jnp.isfinite(out)))
    print("KERNEL_OK")
</pallas_src>

<mosaic_0001>
module attributes {stable_mosaic.version = 11 : i64} {
  func.func @_proj_kernel(%arg0: i32, %arg1: memref<16x128xbf16, #tpu.memory_space<vmem>>, %arg2: memref<128x768xbf16, #tpu.memory_space<vmem>>, %arg3: memref<1x768xf32, #tpu.memory_space<vmem>>, %arg4: memref<16x768xf32, #tpu.memory_space<vmem>>) attributes {dimension_semantics = [#tpu.dimension_semantics<parallel>], iteration_bounds = array<i64: 1>, scalar_prefetch = 0 : i64, scratch_operands = 0 : i64, tpu.core_type = #tpu.core_type<tc>, window_params = [{transform_indices = @transform_0, window_bounds = array<i64: 16, 128>}, {pipeline_mode = #tpu.pipeline_mode<synchronous>, transform_indices = @transform_1, window_bounds = array<i64: 128, 768>}, {pipeline_mode = #tpu.pipeline_mode<synchronous>, transform_indices = @transform_2, window_bounds = array<i64: 1, 768>}, {transform_indices = @transform_3, window_bounds = array<i64: 16, 768>}]} {
    %c0 = arith.constant 0 : index
    %c0_0 = arith.constant 0 : index
    %0 = vector.load %arg1[%c0, %c0_0] : memref<16x128xbf16, #tpu.memory_space<vmem>>, vector<16x128xbf16>
    %c0_1 = arith.constant 0 : index
    %c0_2 = arith.constant 0 : index
    %1 = vector.load %arg2[%c0_1, %c0_2] : memref<128x768xbf16, #tpu.memory_space<vmem>>, vector<128x768xbf16>
    %cst = arith.constant dense<0.000000e+00> : vector<16x768xf32>
    %2 = tpu.matmul %0, %1, %cst {dimension_numbers = #tpu.dot_dimension_numbers<[1], [0], [0], [1], [0, 0, 1, 1], [], []>} : vector<16x128xbf16>, vector<128x768xbf16>, vector<16x768xf32> -> vector<16x768xf32>
    %c0_3 = arith.constant 0 : index
    %c0_4 = arith.constant 0 : index
    %3 = vector.load %arg3[%c0_3, %c0_4] : memref<1x768xf32, #tpu.memory_space<vmem>>, vector<1x768xf32>
    %4 = vector.broadcast %3 : vector<1x768xf32> to vector<16x768xf32>
    %5 = arith.addf %2, %4 : vector<16x768xf32>
    %c0_5 = arith.constant 0 : index
    %c0_6 = arith.constant 0 : index
    %6 = vector.load %arg4[%c0_5, %c0_6] : memref<16x768xf32, #tpu.memory_space<vmem>>, vector<16x768xf32>
    tpu.vector_store %arg4[%c0_5, %c0_6], %5 {strides = array<i32>} : memref<16x768xf32, #tpu.memory_space<vmem>>, vector<16x768xf32>,
    return
  }
  func.func @transform_0(%arg0: i32) -> (i32, i32) {
    %c0_i32 = arith.constant 0 : i32
    %c0_i32_0 = arith.constant 0 : i32
    return %arg0, %c0_i32 : i32, i32
  }
  func.func @transform_1(%arg0: i32) -> (i32, i32) {
    %c0_i32 = arith.constant 0 : i32
    %c0_i32_0 = arith.constant 0 : i32
    %c0_i32_1 = arith.constant 0 : i32
    return %c0_i32, %c0_i32_0 : i32, i32
  }
  func.func @transform_2(%arg0: i32) -> (i32, i32) {
    %c0_i32 = arith.constant 0 : i32
    %c0_i32_0 = arith.constant 0 : i32
    %c0_i32_1 = arith.constant 0 : i32
    return %c0_i32, %c0_i32_0 : i32, i32
  }
  func.func @transform_3(%arg0: i32) -> (i32, i32) {
    %c0_i32 = arith.constant 0 : i32
    %c0_i32_0 = arith.constant 0 : i32
    return %arg0, %c0_i32 : i32, i32
  }
}

module attributes {stable_mosaic.version = 11 : i64} {
  func.func @_gru_rec_kernel(%arg0: i32, %arg1: memref<1xi32, #tpu.memory_space<smem>>, %arg2: memref<2x1xi32, #tpu.memory_space<vmem>>, %arg3: memref<8x2x768xf32, #tpu.memory_space<vmem>>, %arg4: memref<2x128x384xbf16, #tpu.memory_space<vmem>>, %arg5: memref<2x1x128xf32, #tpu.memory_space<vmem>>, %arg6: memref<8x2x256xf32, #tpu.memory_space<vmem>>) attributes {dimension_semantics = [#tpu.dimension_semantics<arbitrary>], iteration_bounds = array<i64: 1>, scalar_prefetch = 1 : i64, scratch_operands = 0 : i64, tpu.core_type = #tpu.core_type<tc>, window_params = [{pipeline_mode = #tpu.pipeline_mode<synchronous>, transform_indices = @transform_0, window_bounds = array<i64: 2, 1>}, {pipeline_mode = #tpu.pipeline_mode<synchronous>, transform_indices = @transform_1, window_bounds = array<i64: 8, 2, 768>}, {pipeline_mode = #tpu.pipeline_mode<synchronous>, transform_indices = @transform_2, window_bounds = array<i64: 2, 128, 384>}, {pipeline_mode = #tpu.pipeline_mode<synchronous>, transform_indices = @transform_3, window_bounds = array<i64: 2, 1, 128>}, {pipeline_mode = #tpu.pipeline_mode<synchronous>, transform_indices = @transform_4, window_bounds = array<i64: 8, 2, 256>}]} {
    %c0 = arith.constant 0 : index
    %0 = memref.load %arg1[%c0] : memref<1xi32, #tpu.memory_space<smem>>
    %c0_0 = arith.constant 0 : index
    %c0_1 = arith.constant 0 : index
    %1 = vector.load %arg2[%c0_0, %c0_1] : memref<2x1xi32, #tpu.memory_space<vmem>>, vector<2x1xi32>
    %c0_2 = arith.constant 0 : index
    %c0_3 = arith.constant 0 : index
    %c0_4 = arith.constant 0 : index
    %2 = vector.load %arg4[%c0_2, %c0_3, %c0_4] : memref<2x128x384xbf16, #tpu.memory_space<vmem>>, vector<1x128x384xbf16>
    %3 = vector.shape_cast %2 : vector<1x128x384xbf16> to vector<128x384xbf16>
    %c1 = arith.constant 1 : index
    %c0_5 = arith.constant 0 : index
    %c0_6 = arith.constant 0 : index
    %4 = vector.load %arg4[%c1, %c0_5, %c0_6] : memref<2x128x384xbf16, #tpu.memory_space<vmem>>, vector<1x128x384xbf16>
    %5 = vector.shape_cast %4 : vector<1x128x384xbf16> to vector<128x384xbf16>
    %c0_7 = arith.constant 0 : index
    %c0_8 = arith.constant 0 : index
    %c0_9 = arith.constant 0 : index
    %6 = vector.load %arg5[%c0_7, %c0_8, %c0_9] : memref<2x1x128xf32, #tpu.memory_space<vmem>>, vector<1x1x128xf32>
    %7 = vector.shape_cast %6 : vector<1x1x128xf32> to vector<1x128xf32>
    %c1_10 = arith.constant 1 : index
    %c0_11 = arith.constant 0 : index
    %c0_12 = arith.constant 0 : index
    %8 = vector.load %arg5[%c1_10, %c0_11, %c0_12] : memref<2x1x128xf32, #tpu.memory_space<vmem>>, vector<1x1x128xf32>
    %9 = vector.shape_cast %8 : vector<1x1x128xf32> to vector<1x128xf32>
    %c0_i32 = arith.constant 0 : i32
    %c8_i32 = arith.constant 8 : i32
    %10 = arith.subi %c8_i32, %0 : i32
    %11 = arith.addi %0, %10 : i32
    %c1_i32 = arith.constant 1 : i32
    scf.for %arg7 = %0 to %11 step %c1_i32  : i32 {
      %cst_15 = arith.constant 0.000000e+00 : f32
      %16 = vector.broadcast %cst_15 : f32 to vector<2x256xf32>
      %17 = arith.index_cast %arg7 : i32 to index
      %c0_16 = arith.constant 0 : index
      %c0_17 = arith.constant 0 : index
      %18 = vector.load %arg6[%17, %c0_16, %c0_17] : memref<8x2x256xf32, #tpu.memory_space<vmem>>, vector<1x2x256xf32>
      %19 = vector.shape_cast %18 : vector<1x2x256xf32> to vector<2x256xf32>
      %20 = vector.shape_cast %16 : vector<2x256xf32> to vector<1x2x256xf32>
      tpu.vector_store %arg6[%17, %c0_16, %c0_17], %20 {strides = array<i32>} : memref<8x2x256xf32, #tpu.memory_space<vmem>>, vector<1x2x256xf32>,
    }
    %cst = arith.constant 0.000000e+00 : f32
    %12 = vector.broadcast %cst : f32 to vector<2x128xf32>
    %c0_i32_13 = arith.constant 0 : i32
    %13 = arith.subi %0, %c0_i32_13 : i32
    %14 = arith.addi %c0_i32_13, %13 : i32
    %c1_i32_14 = arith.constant 1 : i32
    %15:2 = scf.for %arg7 = %c0_i32_13 to %14 step %c1_i32_14 iter_args(%arg8 = %12, %arg9 = %12) -> (vector<2x128xf32>, vector<2x128xf32>)  : i32 {
      %c1_i32_15 = arith.constant 1 : i32
      %16 = arith.subi %0, %c1_i32_15 : i32
      %17 = arith.subi %16, %arg7 : i32
      %18 = arith.index_cast %arg7 : i32 to index
      %c0_16 = arith.constant 0 : index
      %c0_17 = arith.constant 0 : index
      %19 = vector.load %arg3[%18, %c0_16, %c0_17] : memref<8x2x768xf32, #tpu.memory_space<vmem>>, vector<1x2x384xf32>
      %20 = vector.shape_cast %19 : vector<1x2x384xf32> to vector<2x384xf32>
      %21 = arith.index_cast %17 : i32 to index
      %c0_18 = arith.constant 0 : index
      %c384 = arith.constant 384 : index
      %22 = vector.load %arg3[%21, %c0_18, %c384] : memref<8x2x768xf32, #tpu.memory_space<vmem>>, vector<1x2x384xf32>
      %23 = vector.shape_cast %22 : vector<1x2x384xf32> to vector<2x384xf32>
      %24 = arith.truncf %arg8 : vector<2x128xf32> to vector<2x128xbf16>
      %cst_19 = arith.constant dense<0.000000e+00> : vector<2x384xf32>
      %25 = tpu.matmul %24, %3, %cst_19 {dimension_numbers = #tpu.dot_dimension_numbers<[1], [0], [0], [1], [0, 0, 1, 1], [], []>} : vector<2x128xbf16>, vector<128x384xbf16>, vector<2x384xf32> -> vector<2x384xf32>
      %26 = arith.truncf %arg9 : vector<2x128xf32> to vector<2x128xbf16>
      %cst_20 = arith.constant dense<0.000000e+00> : vector<2x384xf32>
      %27 = tpu.matmul %26, %5, %cst_20 {dimension_numbers = #tpu.dot_dimension_numbers<[1], [0], [0], [1], [0, 0, 1, 1], [], []>} : vector<2x128xbf16>, vector<128x384xbf16>, vector<2x384xf32> -> vector<2x384xf32>
      %28 = vector.extract_strided_slice %20 {offsets = [0, 0], sizes = [2, 128], strides = [1, 1]} : vector<2x384xf32> to vector<2x128xf32>
      %29 = vector.extract_strided_slice %25 {offsets = [0, 0], sizes = [2, 128], strides = [1, 1]} : vector<2x384xf32> to vector<2x128xf32>
      %30 = arith.addf %28, %29 : vector<2x128xf32>
      %31 = arith.negf %30 : vector<2x128xf32>
      %32 = math.exp %31 : vector<2x128xf32>
      %cst_21 = arith.constant 1.000000e+00 : f32
      %33 = vector.broadcast %cst_21 : f32 to vector<2x128xf32>
      %34 = arith.addf %33, %32 : vector<2x128xf32>
      %35 = arith.divf %33, %34 : vector<2x128xf32>
      %36 = vector.extract_strided_slice %20 {offsets = [0, 128], sizes = [2, 128], strides = [1, 1]} : vector<2x384xf32> to vector<2x128xf32>
      %37 = vector.extract_strided_slice %25 {offsets = [0, 128], sizes = [2, 128], strides = [1, 1]} : vector<2x384xf32> to vector<2x128xf32>
      %38 = arith.addf %36, %37 : vector<2x128xf32>
      %39 = arith.negf %38 : vector<2x128xf32>
      %40 = math.exp %39 : vector<2x128xf32>
      %cst_22 = arith.constant 1.000000e+00 : f32
      %41 = vector.broadcast %cst_22 : f32 to vector<2x128xf32>
      %42 = arith.addf %41, %40 : vector<2x128xf32>
      %43 = arith.divf %41, %42 : vector<2x128xf32>
      %44 = vector.extract_strided_slice %20 {offsets = [0, 256], sizes = [2, 128], strides = [1, 1]} : vector<2x384xf32> to vector<2x128xf32>
      %45 = vector.extract_strided_slice %25 {offsets = [0, 256], sizes = [2, 128], strides = [1, 1]} : vector<2x384xf32> to vector<2x128xf32>
      %46 = vector.broadcast %7 : vector<1x128xf32> to vector<2x128xf32>
      %47 = arith.addf %45, %46 : vector<2x128xf32>
      %48 = arith.mulf %35, %47 : vector<2x128xf32>
      %49 = arith.addf %44, %48 : vector<2x128xf32>
      %50 = math.tanh %49 : vector<2x128xf32>
      %cst_23 = arith.constant 1.000000e+00 : f32
      %51 = vector.broadcast %cst_23 : f32 to vector<2x128xf32>
      %52 = arith.subf %51, %43 : vector<2x128xf32>
      %53 = arith.mulf %52, %50 : vector<2x128xf32>
      %54 = arith.mulf %43, %arg8 : vector<2x128xf32>
      %55 = arith.addf %53, %54 : vector<2x128xf32>
      %56 = vector.extract_strided_slice %23 {offsets = [0, 0], sizes = [2, 128], strides = [1, 1]} : vector<2x384xf32> to vector<2x128xf32>
      %57 = vector.extract_strided_slice %27 {offsets = [0, 0], sizes = [2, 128], strides = [1, 1]} : vector<2x384xf32> to vector<2x128xf32>
      %58 = arith.addf %56, %57 : vector<2x128xf32>
      %59 = arith.negf %58 : vector<2x128xf32>
      %60 = math.exp %59 : vector<2x128xf32>
      %cst_24 = arith.constant 1.000000e+00 : f32
      %61 = vector.broadcast %cst_24 : f32 to vector<2x128xf32>
      %62 = arith.addf %61, %60 : vector<2x128xf32>
      %63 = arith.divf %61, %62 : vector<2x128xf32>
      %64 = vector.extract_strided_slice %23 {offsets = [0, 128], sizes = [2, 128], strides = [1, 1]} : vector<2x384xf32> to vector<2x128xf32>
      %65 = vector.extract_strided_slice %27 {offsets = [0, 128], sizes = [2, 128], strides = [1, 1]} : vector<2x384xf32> to vector<2x128xf32>
      %66 = arith.addf %64, %65 : vector<2x128xf32>
      %67 = arith.negf %66 : vector<2x128xf32>
      %68 = math.exp %67 : vector<2x128xf32>
      %cst_25 = arith.constant 1.000000e+00 : f32
      %69 = vector.broadcast %cst_25 : f32 to vector<2x128xf32>
      %70 = arith.addf %69, %68 : vector<2x128xf32>
      %71 = arith.divf %69, %70 : vector<2x128xf32>
      %72 = vector.extract_strided_slice %23 {offsets = [0, 256], sizes = [2, 128], strides = [1, 1]} : vector<2x384xf32> to vector<2x128xf32>
      %73 = vector.extract_strided_slice %27 {offsets = [0, 256], sizes = [2, 128], strides = [1, 1]} : vector<2x384xf32> to vector<2x128xf32>
      %74 = vector.broadcast %9 : vector<1x128xf32> to vector<2x128xf32>
      %75 = arith.addf %73, %74 : vector<2x128xf32>
      %76 = arith.mulf %63, %75 : vector<2x128xf32>
      %77 = arith.addf %72, %76 : vector<2x128xf32>
      %78 = math.tanh %77 : vector<2x128xf32>
      %cst_26 = arith.constant 1.000000e+00 : f32
      %79 = vector.broadcast %cst_26 : f32 to vector<2x128xf32>
      %80 = arith.subf %79, %71 : vector<2x128xf32>
      %81 = arith.mulf %80, %78 : vector<2x128xf32>
      %82 = arith.mulf %71, %arg9 : vector<2x128xf32>
      %83 = arith.addf %81, %82 : vector<2x128xf32>
      %84 = vector.broadcast %arg7 : i32 to vector<2x1xi32>
      %85 = arith.cmpi sgt, %1, %84 : vector<2x1xi32>
      %cst_27 = arith.constant 0.000000e+00 : f32
      %86 = vector.shape_cast %85 : vector<2x1xi1> to vector<2x1xi1>
      %87 = vector.broadcast %86 : vector<2x1xi1> to vector<2x128xi1>
      %88 = vector.broadcast %cst_27 : f32 to vector<2x128xf32>
      %89 = arith.select %87, %55, %88 : vector<2x128xi1>, vector<2x128xf32>
      %90 = vector.broadcast %17 : i32 to vector<2x1xi32>
      %91 = arith.cmpi sgt, %1, %90 : vector<2x1xi32>
      %cst_28 = arith.constant 0.000000e+00 : f32
      %92 = vector.shape_cast %91 : vector<2x1xi1> to vector<2x1xi1>
      %93 = vector.broadcast %92 : vector<2x1xi1> to vector<2x128xi1>
      %94 = vector.broadcast %cst_28 : f32 to vector<2x128xf32>
      %95 = arith.select %93, %83, %94 : vector<2x128xi1>, vector<2x128xf32>
      %96 = arith.index_cast %arg7 : i32 to index
      %c0_29 = arith.constant 0 : index
      %c0_30 = arith.constant 0 : index
      %97 = vector.load %arg6[%96, %c0_29, %c0_30] : memref<8x2x256xf32, #tpu.memory_space<vmem>>, vector<1x2x128xf32>
      %98 = vector.shape_cast %97 : vector<1x2x128xf32> to vector<2x128xf32>
      %99 = vector.shape_cast %89 : vector<2x128xf32> to vector<1x2x128xf32>
      tpu.vector_store %arg6[%96, %c0_29, %c0_30], %99 {strides = array<i32>} : memref<8x2x256xf32, #tpu.memory_space<vmem>>, vector<1x2x128xf32>,
      %100 = arith.index_cast %17 : i32 to index
      %c0_31 = arith.constant 0 : index
      %c128 = arith.constant 128 : index
      %101 = vector.load %arg6[%100, %c0_31, %c128] : memref<8x2x256xf32, #tpu.memory_space<vmem>>, vector<1x2x128xf32>
      %102 = vector.shape_cast %101 : vector<1x2x128xf32> to vector<2x128xf32>
      %103 = vector.shape_cast %95 : vector<2x128xf32> to vector<1x2x128xf32>
      tpu.vector_store %arg6[%100, %c0_31, %c128], %103 {strides = array<i32>} : memref<8x2x256xf32, #tpu.memory_space<vmem>>, vector<1x2x128xf32>,
      scf.yield %89, %95 : vector<2x128xf32>, vector<2x128xf32>
    }
    return
  }
  func.func @transform_0(%arg0: i32, %arg1: memref<1xi32, #tpu.memory_space<smem>>) -> (i32, i32) {
    %c0_i32 = arith.constant 0 : i32
    %c0_i32_0 = arith.constant 0 : i32
    %c0_i32_1 = arith.constant 0 : i32
    return %c0_i32, %c0_i32_0 : i32, i32
  }
  func.func @transform_1(%arg0: i32, %arg1: memref<1xi32, #tpu.memory_space<smem>>) -> (i32, i32, i32) {
    %c0_i32 = arith.constant 0 : i32
    %c0_i32_0 = arith.constant 0 : i32
    %c0_i32_1 = arith.constant 0 : i32
    %c0_i32_2 = arith.constant 0 : i32
    return %c0_i32, %c0_i32_0, %c0_i32_1 : i32, i32, i32
  }
  func.func @transform_2(%arg0: i32, %arg1: memref<1xi32, #tpu.memory_space<smem>>) -> (i32, i32, i32) {
    %c0_i32 = arith.constant 0 : i32
    %c0_i32_0 = arith.constant 0 : i32
    %c0_i32_1 = arith.constant 0 : i32
    %c0_i32_2 = arith.constant 0 : i32
    return %c0_i32, %c0_i32_0, %c0_i32_1 : i32, i32, i32
  }
  func.func @transform_3(%arg0: i32, %arg1: memref<1xi32, #tpu.memory_space<smem>>) -> (i32, i32, i32) {
    %c0_i32 = arith.constant 0 : i32
    %c0_i32_0 = arith.constant 0 : i32
    %c0_i32_1 = arith.constant 0 : i32
    %c0_i32_2 = arith.constant 0 : i32
    return %c0_i32, %c0_i32_0, %c0_i32_1 : i32, i32, i32
  }
  func.func @transform_4(%arg0: i32, %arg1: memref<1xi32, #tpu.memory_space<smem>>) -> (i32, i32, i32) {
    %c0_i32 = arith.constant 0 : i32
    %c0_i32_0 = arith.constant 0 : i32
    %c0_i32_1 = arith.constant 0 : i32
    %c0_i32_2 = arith.constant 0 : i32
    return %c0_i32, %c0_i32_0, %c0_i32_1 : i32, i32, i32
  }
}

module attributes {stable_mosaic.version = 11 : i64} {
  func.func @_proj_kernel(%arg0: i32, %arg1: memref<16x256xf32, #tpu.memory_space<vmem>>, %arg2: memref<256x768xbf16, #tpu.memory_space<vmem>>, %arg3: memref<1x768xf32, #tpu.memory_space<vmem>>, %arg4: memref<16x768xf32, #tpu.memory_space<vmem>>) attributes {dimension_semantics = [#tpu.dimension_semantics<parallel>], iteration_bounds = array<i64: 1>, scalar_prefetch = 0 : i64, scratch_operands = 0 : i64, tpu.core_type = #tpu.core_type<tc>, window_params = [{transform_indices = @transform_0, window_bounds = array<i64: 16, 256>}, {pipeline_mode = #tpu.pipeline_mode<synchronous>, transform_indices = @transform_1, window_bounds = array<i64: 256, 768>}, {pipeline_mode = #tpu.pipeline_mode<synchronous>, transform_indices = @transform_2, window_bounds = array<i64: 1, 768>}, {transform_indices = @transform_3, window_bounds = array<i64: 16, 768>}]} {
    %c0 = arith.constant 0 : index
    %c0_0 = arith.constant 0 : index
    %0 = vector.load %arg1[%c0, %c0_0] : memref<16x256xf32, #tpu.memory_space<vmem>>, vector<16x256xf32>
    %1 = arith.truncf %0 : vector<16x256xf32> to vector<16x256xbf16>
    %c0_1 = arith.constant 0 : index
    %c0_2 = arith.constant 0 : index
    %2 = vector.load %arg2[%c0_1, %c0_2] : memref<256x768xbf16, #tpu.memory_space<vmem>>, vector<256x768xbf16>
    %cst = arith.constant dense<0.000000e+00> : vector<16x768xf32>
    %3 = tpu.matmul %1, %2, %cst {dimension_numbers = #tpu.dot_dimension_numbers<[1], [0], [0], [1], [0, 0, 1, 1], [], []>} : vector<16x256xbf16>, vector<256x768xbf16>, vector<16x768xf32> -> vector<16x768xf32>
    %c0_3 = arith.constant 0 : index
    %c0_4 = arith.constant 0 : index
    %4 = vector.load %arg3[%c0_3, %c0_4] : memref<1x768xf32, #tpu.memory_space<vmem>>, vector<1x768xf32>
    %5 = vector.broadcast %4 : vector<1x768xf32> to vector<16x768xf32>
    %6 = arith.addf %3, %5 : vector<16x768xf32>
    %c0_5 = arith.constant 0 : index
    %c0_6 = arith.constant 0 : index
    %7 = vector.load %arg4[%c0_5, %c0_6] : memref<16x768xf32, #tpu.memory_space<vmem>>, vector<16x768xf32>
    tpu.vector_store %arg4[%c0_5, %c0_6], %6 {strides = array<i32>} : memref<16x768xf32, #tpu.memory_space<vmem>>, vector<16x768xf32>,
    return
  }
  func.func @transform_0(%arg0: i32) -> (i32, i32) {
    %c0_i32 = arith.constant 0 : i32
    %c0_i32_0 = arith.constant 0 : i32
    return %arg0, %c0_i32 : i32, i32
  }
  func.func @transform_1(%arg0: i32) -> (i32, i32) {
    %c0_i32 = arith.constant 0 : i32
    %c0_i32_0 = arith.constant 0 : i32
    %c0_i32_1 = arith.constant 0 : i32
    return %c0_i32, %c0_i32_0 : i32, i32
  }
  func.func @transform_2(%arg0: i32) -> (i32, i32) {
    %c0_i32 = arith.constant 0 : i32
    %c0_i32_0 = arith.constant 0 : i32
    %c0_i32_1 = arith.constant 0 : i32
    return %c0_i32, %c0_i32_0 : i32, i32
  }
  func.func @transform_3(%arg0: i32) -> (i32, i32) {
    %c0_i32 = arith.constant 0 : i32
    %c0_i32_0 = arith.constant 0 : i32
    return %arg0, %c0_i32 : i32, i32
  }
}

module attributes {stable_mosaic.version = 11 : i64} {
  func.func @_decoder_kernel(%arg0: i32, %arg1: memref<2x256xf32, #tpu.memory_space<vmem>>, %arg2: memref<2x1xf32, #tpu.memory_space<vmem>>, %arg3: memref<1x256xf32, #tpu.memory_space<vmem>>, %arg4: memref<1x256xf32, #tpu.memory_space<vmem>>, %arg5: memref<1x256xf32, #tpu.memory_space<vmem>>, %arg6: memref<1x256xf32, #tpu.memory_space<vmem>>, %arg7: memref<3x256xbf16, #tpu.memory_space<vmem>>, %arg8: memref<256x1536xbf16, #tpu.memory_space<vmem>>, %arg9: memref<1x1536xf32, #tpu.memory_space<vmem>>, %arg10: memref<2x3x1536xf32, #tpu.memory_space<vmem>>, %arg11: memref<2x256xbf16, #tpu.memory_space<vmem>>) attributes {dimension_semantics = [#tpu.dimension_semantics<arbitrary>], iteration_bounds = array<i64: 1>, scalar_prefetch = 0 : i64, scratch_operands = 1 : i64, tpu.core_type = #tpu.core_type<tc>, window_params = [{pipeline_mode = #tpu.pipeline_mode<synchronous>, transform_indices = @transform_0, window_bounds = array<i64: 2, 256>}, {pipeline_mode = #tpu.pipeline_mode<synchronous>, transform_indices = @transform_1, window_bounds = array<i64: 2, 1>}, {pipeline_mode = #tpu.pipeline_mode<synchronous>, transform_indices = @transform_2, window_bounds = array<i64: 1, 256>}, {pipeline_mode = #tpu.pipeline_mode<synchronous>, transform_indices = @transform_3, window_bounds = array<i64: 1, 256>}, {pipeline_mode = #tpu.pipeline_mode<synchronous>, transform_indices = @transform_4, window_bounds = array<i64: 1, 256>}, {pipeline_mode = #tpu.pipeline_mode<synchronous>, transform_indices = @transform_5, window_bounds = array<i64: 1, 256>}, {pipeline_mode = #tpu.pipeline_mode<synchronous>, transform_indices = @transform_6, window_bounds = array<i64: 3, 256>}, {transform_indices = @transform_7, window_bounds = array<i64: 256, 1536>}, {transform_indices = @transform_8, window_bounds = array<i64: 1, 1536>}, {transform_indices = @transform_9, window_bounds = array<i64: 2, 3, 1536>}]} {
    %c0_i32 = arith.constant 0 : i32
    %0 = arith.cmpi eq, %arg0, %c0_i32 : i32
    %1 = arith.extui %0 : i1 to i32
    %c0_i32_0 = arith.constant 0 : i32
    %2 = arith.cmpi ne, %1, %c0_i32_0 : i32
    scf.if %2 {
      %c0_13 = arith.constant 0 : index
      %c0_14 = arith.constant 0 : index
      %19 = vector.load %arg1[%c0_13, %c0_14] : memref<2x256xf32, #tpu.memory_space<vmem>>, vector<2x256xf32>
      %cst_15 = arith.constant dense<0.000000e+00> : vector<2xf32>
      %20 = vector.multi_reduction <add>, %19, %cst_15 [1] : vector<2x256xf32> to vector<2xf32>
      %21 = vector.shape_cast %20 : vector<2xf32> to vector<2x1xf32>
      %cst_16 = arith.constant 2.560000e+02 : f32
      %22 = vector.broadcast %cst_16 : f32 to vector<2x1xf32>
      %23 = arith.divf %21, %22 : vector<2x1xf32>
      %24 = vector.broadcast %23 : vector<2x1xf32> to vector<2x256xf32>
      %25 = arith.subf %19, %24 : vector<2x256xf32>
      %26 = arith.mulf %25, %25 : vector<2x256xf32>
      %cst_17 = arith.constant dense<0.000000e+00> : vector<2xf32>
      %27 = vector.multi_reduction <add>, %26, %cst_17 [1] : vector<2x256xf32> to vector<2xf32>
      %28 = vector.shape_cast %27 : vector<2xf32> to vector<2x1xf32>
      %cst_18 = arith.constant 2.560000e+02 : f32
      %29 = vector.broadcast %cst_18 : f32 to vector<2x1xf32>
      %30 = arith.divf %28, %29 : vector<2x1xf32>
      %31 = vector.broadcast %23 : vector<2x1xf32> to vector<2x256xf32>
      %32 = arith.subf %19, %31 : vector<2x256xf32>
      %cst_19 = arith.constant 9.99999974E-6 : f32
      %33 = vector.broadcast %cst_19 : f32 to vector<2x1xf32>
      %34 = arith.addf %30, %33 : vector<2x1xf32>
      %35 = math.rsqrt %34 : vector<2x1xf32>
      %36 = vector.broadcast %35 : vector<2x1xf32> to vector<2x256xf32>
      %37 = arith.mulf %32, %36 : vector<2x256xf32>
      %c0_20 = arith.constant 0 : index
      %c0_21 = arith.constant 0 : index
      %38 = vector.load %arg3[%c0_20, %c0_21] : memref<1x256xf32, #tpu.memory_space<vmem>>, vector<1x256xf32>
      %39 = vector.broadcast %38 : vector<1x256xf32> to vector<2x256xf32>
      %40 = arith.mulf %37, %39 : vector<2x256xf32>
      %c0_22 = arith.constant 0 : index
      %c0_23 = arith.constant 0 : index
      %41 = vector.load %arg4[%c0_22, %c0_23] : memref<1x256xf32, #tpu.memory_space<vmem>>, vector<1x256xf32>
      %42 = vector.broadcast %41 : vector<1x256xf32> to vector<2x256xf32>
      %43 = arith.addf %40, %42 : vector<2x256xf32>
      %c0_24 = arith.constant 0 : index
      %c0_25 = arith.constant 0 : index
      %44 = vector.load %arg2[%c0_24, %c0_25] : memref<2x1xf32, #tpu.memory_space<vmem>>, vector<2x1xf32>
      %45 = vector.broadcast %44 : vector<2x1xf32> to vector<2x256xf32>
      %46 = arith.mulf %43, %45 : vector<2x256xf32>
      %cst_26 = arith.constant dense<0.000000e+00> : vector<2xf32>
      %47 = vector.multi_reduction <add>, %46, %cst_26 [1] : vector<2x256xf32> to vector<2xf32>
      %48 = vector.shape_cast %47 : vector<2xf32> to vector<2x1xf32>
      %cst_27 = arith.constant 2.560000e+02 : f32
      %49 = vector.broadcast %cst_27 : f32 to vector<2x1xf32>
      %50 = arith.divf %48, %49 : vector<2x1xf32>
      %51 = vector.broadcast %50 : vector<2x1xf32> to vector<2x256xf32>
      %52 = arith.subf %46, %51 : vector<2x256xf32>
      %53 = arith.mulf %52, %52 : vector<2x256xf32>
      %cst_28 = arith.constant dense<0.000000e+00> : vector<2xf32>
      %54 = vector.multi_reduction <add>, %53, %cst_28 [1] : vector<2x256xf32> to vector<2xf32>
      %55 = vector.shape_cast %54 : vector<2xf32> to vector<2x1xf32>
      %cst_29 = arith.constant 2.560000e+02 : f32
      %56 = vector.broadcast %cst_29 : f32 to vector<2x1xf32>
      %57 = arith.divf %55, %56 : vector<2x1xf32>
      %58 = vector.broadcast %50 : vector<2x1xf32> to vector<2x256xf32>
      %59 = arith.subf %46, %58 : vector<2x256xf32>
      %cst_30 = arith.constant 9.99999974E-6 : f32
      %60 = vector.broadcast %cst_30 : f32 to vector<2x1xf32>
      %61 = arith.addf %57, %60 : vector<2x1xf32>
      %62 = math.rsqrt %61 : vector<2x1xf32>
      %63 = vector.broadcast %62 : vector<2x1xf32> to vector<2x256xf32>
      %64 = arith.mulf %59, %63 : vector<2x256xf32>
      %c0_31 = arith.constant 0 : index
      %c0_32 = arith.constant 0 : index
      %65 = vector.load %arg5[%c0_31, %c0_32] : memref<1x256xf32, #tpu.memory_space<vmem>>, vector<1x256xf32>
      %66 = vector.broadcast %65 : vector<1x256xf32> to vector<2x256xf32>
      %67 = arith.mulf %64, %66 : vector<2x256xf32>
      %c0_33 = arith.constant 0 : index
      %c0_34 = arith.constant 0 : index
      %68 = vector.load %arg6[%c0_33, %c0_34] : memref<1x256xf32, #tpu.memory_space<vmem>>, vector<1x256xf32>
      %69 = vector.broadcast %68 : vector<1x256xf32> to vector<2x256xf32>
      %70 = arith.addf %67, %69 : vector<2x256xf32>
      %71 = arith.truncf %70 : vector<2x256xf32> to vector<2x256xbf16>
      %c0_35 = arith.constant 0 : index
      %c0_36 = arith.constant 0 : index
      %72 = vector.load %arg11[%c0_35, %c0_36] : memref<2x256xbf16, #tpu.memory_space<vmem>>, vector<2x256xbf16>
      tpu.vector_store %arg11[%c0_35, %c0_36], %71 {strides = array<i32>} : memref<2x256xbf16, #tpu.memory_space<vmem>>, vector<2x256xbf16>,
    } else {
    }
    %c0 = arith.constant 0 : index
    %c0_1 = arith.constant 0 : index
    %3 = vector.load %arg8[%c0, %c0_1] : memref<256x1536xbf16, #tpu.memory_space<vmem>>, vector<256x1536xbf16>
    %c0_2 = arith.constant 0 : index
    %c0_3 = arith.constant 0 : index
    %4 = vector.load %arg11[%c0_2, %c0_3] : memref<2x256xbf16, #tpu.memory_space<vmem>>, vector<2x256xbf16>
    %cst = arith.constant dense<0.000000e+00> : vector<2x1536xf32>
    %5 = tpu.matmul %4, %3, %cst {dimension_numbers = #tpu.dot_dimension_numbers<[1], [0], [0], [1], [0, 0, 1, 1], [], []>} : vector<2x256xbf16>, vector<256x1536xbf16>, vector<2x1536xf32> -> vector<2x1536xf32>
    %c0_4 = arith.constant 0 : index
    %c0_5 = arith.constant 0 : index
    %6 = vector.load %arg9[%c0_4, %c0_5] : memref<1x1536xf32, #tpu.memory_space<vmem>>, vector<1x1536xf32>
    %7 = vector.broadcast %6 : vector<1x1536xf32> to vector<2x1536xf32>
    %8 = arith.addf %5, %7 : vector<2x1536xf32>
    %c0_6 = arith.constant 0 : index
    %c0_7 = arith.constant 0 : index
    %9 = vector.load %arg7[%c0_6, %c0_7] : memref<3x256xbf16, #tpu.memory_space<vmem>>, vector<3x256xbf16>
    %cst_8 = arith.constant dense<0.000000e+00> : vector<3x1536xf32>
    %10 = tpu.matmul %9, %3, %cst_8 {dimension_numbers = #tpu.dot_dimension_numbers<[1], [0], [0], [1], [0, 0, 1, 1], [], []>} : vector<3x256xbf16>, vector<256x1536xbf16>, vector<3x1536xf32> -> vector<3x1536xf32>
    %cst_9 = arith.constant 1.000000e-01 : f32
    %11 = vector.broadcast %cst_9 : f32 to vector<3x1536xf32>
    %12 = arith.mulf %10, %11 : vector<3x1536xf32>
    %13 = vector.shape_cast %8 : vector<2x1536xf32> to vector<2x1x1536xf32>
    %14 = vector.shape_cast %12 : vector<3x1536xf32> to vector<1x3x1536xf32>
    %15 = vector.broadcast %13 : vector<2x1x1536xf32> to vector<2x3x1536xf32>
    %16 = vector.broadcast %14 : vector<1x3x1536xf32> to vector<2x3x1536xf32>
    %17 = arith.addf %15, %16 : vector<2x3x1536xf32>
    %c0_10 = arith.constant 0 : index
    %c0_11 = arith.constant 0 : index
    %c0_12 = arith.constant 0 : index
    %18 = vector.load %arg10[%c0_10, %c0_11, %c0_12] : memref<2x3x1536xf32, #tpu.memory_space<vmem>>, vector<2x3x1536xf32>
    tpu.vector_store %arg10[%c0_10, %c0_11, %c0_12], %17 {strides = array<i32>} : memref<2x3x1536xf32, #tpu.memory_space<vmem>>, vector<2x3x1536xf32>,
    return
  }
  func.func @transform_0(%arg0: i32) -> (i32, i32) {
    %c0_i32 = arith.constant 0 : i32
    %c0_i32_0 = arith.constant 0 : i32
    %c0_i32_1 = arith.constant 0 : i32
    return %c0_i32, %c0_i32_0 : i32, i32
  }
  func.func @transform_1(%arg0: i32) -> (i32, i32) {
    %c0_i32 = arith.constant 0 : i32
    %c0_i32_0 = arith.constant 0 : i32
    %c0_i32_1 = arith.constant 0 : i32
    return %c0_i32, %c0_i32_0 : i32, i32
  }
  func.func @transform_2(%arg0: i32) -> (i32, i32) {
    %c0_i32 = arith.constant 0 : i32
    %c0_i32_0 = arith.constant 0 : i32
    %c0_i32_1 = arith.constant 0 : i32
    return %c0_i32, %c0_i32_0 : i32, i32
  }
  func.func @transform_3(%arg0: i32) -> (i32, i32) {
    %c0_i32 = arith.constant 0 : i32
    %c0_i32_0 = arith.constant 0 : i32
    %c0_i32_1 = arith.constant 0 : i32
    return %c0_i32, %c0_i32_0 : i32, i32
  }
  func.func @transform_4(%arg0: i32) -> (i32, i32) {
    %c0_i32 = arith.constant 0 : i32
    %c0_i32_0 = arith.constant 0 : i32
    %c0_i32_1 = arith.constant 0 : i32
    return %c0_i32, %c0_i32_0 : i32, i32
  }
  func.func @transform_5(%arg0: i32) -> (i32, i32) {
    %c0_i32 = arith.constant 0 : i32
    %c0_i32_0 = arith.constant 0 : i32
    %c0_i32_1 = arith.constant 0 : i32
    return %c0_i32, %c0_i32_0 : i32, i32
  }
  func.func @transform_6(%arg0: i32) -> (i32, i32) {
    %c0_i32 = arith.constant 0 : i32
    %c0_i32_0 = arith.constant 0 : i32
    %c0_i32_1 = arith.constant 0 : i32
    return %c0_i32, %c0_i32_0 : i32, i32
  }
  func.func @transform_7(%arg0: i32) -> (i32, i32) {
    %c0_i32 = arith.constant 0 : i32
    %c0_i32_0 = arith.constant 0 : i32
    return %c0_i32, %arg0 : i32, i32
  }
  func.func @transform_8(%arg0: i32) -> (i32, i32) {
    %c0_i32 = arith.constant 0 : i32
    %c0_i32_0 = arith.constant 0 : i32
    return %c0_i32, %arg0 : i32, i32
  }
  func.func @transform_9(%arg0: i32) -> (i32, i32, i32) {
    %c0_i32 = arith.constant 0 : i32
    %c0_i32_0 = arith.constant 0 : i32
    %c0_i32_1 = arith.constant 0 : i32
    return %c0_i32, %c0_i32_0, %arg0 : i32, i32, i32
  }
}

</mosaic_0001>

<bundles_post_ra>
// kernel: forward.5
= control target key start
LH: loop header
LB: loop body
LE: loop exit
PB: predicated region body
PF: predicated region fallthrough
CT: control target
= control target key end

     0   :  { %8 = vsyncpa [#allocation3], 0  ;;  %s653_s12 = smov [#allocation2]   ;;  %s734_s0 = inlined_call_operand.vmem [shape: bf16[16,128], index: 0, kind: input, shape index: {}]   ;;  %s735_s1 = inlined_call_operand.hbm [shape: bf16[128,768], index: 1, kind: input, shape index: {}]   ;;  %s736_s2 = inlined_call_operand.vmem [shape: f32[1,768], index: 2, kind: input, shape index: {}]   ;;  %s737_s3 = inlined_call_operand.vmem [shape: f32[16,768], index: 3, kind: output, shape index: {}]  }
   0x1   :  { %s16_s13 = sshll.u32 %s653_s12, 4  ;;  %s629_s16 = scalar_lea.hbm %s735_s1, 6144  ;;  %s17_s13 = int_to_ptr.vmem [resolvable:$true] %s16_s13 }
   0x2   :  { %p630_p0 = scmp.ne.s32.totalorder %s735_s1, %s629_s16  ;;  %p633_p1 = scmp.lt.u32.totalorder %s629_s16, %s735_s1 }
   0x4   :  { %p635_p2 = pnand %p633_p1, %p630_p0 }
   0x6   :  { %638 = shalt.err (!%p635_p2)
}
   0x7   :  { %s639_s21 = scalar_lea.vmem %s17_s13, 6144  ;;  %p644_p4 = scmp.lt.s32.totalorder %s17_s13, %s17_s13 }
   0x8   :  { %p640_p3 = scmp.ne.s32.totalorder %s17_s13, %s639_s21  ;;  %p645_p5 = scmp.lt.s32.totalorder %s639_s21, %s639_s21 }
   0xa   :  { %p646_p6 = por %p645_p5, %p644_p4 }
   0xc   :  { %p647_p7 = pnand %p646_p6, %p640_p3 }
   0xe   :  { %650 = shalt.err (!%p647_p7)
}
   0xf   :  { %s654_s22 = smov 384   ;;  %s655_s23 = smov 24  }
  0x10   :  { %22 = dma.hbm_to_vmem [thread:$0]  %s735_s1, 6144, %s17_s13, [#allocation3], %s654_s22, %s654_s22, %s655_s23  }
  0x11   :  { %651 = dma.done.wait [#allocation3], 6144  }
  0x12   :  { %652 = vsyncadd [#allocation3], 4294961152  ;;  %v656_v0 = vmov 0   ;;  %v556_v1 = vld [vmem:[#allocation2 + $0x4] ss:$24 sps:$4 sm:$0xff]   ;;  %v81_v50 = vlaneseq }
  0x13   :  { %389 = vmatprep.mubr.bf16.mxu0 %v656_v0  ;;  %432 = vmatprep.mubr.bf16.mxu1 %v656_v0  ;;  %v558_v2 = vld [vmem:[#allocation2] ss:$24 sps:$4 sm:$0xff]   ;;  %v559_v3 = vld [vmem:[#allocation2 + $0x34] ss:$24 sps:$4 sm:$0xff]   ;;  %v561_v4 = vld [vmem:[#allocation2 + $0x30] ss:$24 sps:$4 sm:$0xff]  }
  0x14   :  { %357 = vmatprep.subr.bf16.mxu0 %v556_v1  ;;  %v562_v5 = vld [vmem:[#allocation2 + $0x64] ss:$24 sps:$4 sm:$0xff]   ;;  %v564_v6 = vld [vmem:[#allocation2 + $0x60] ss:$24 sps:$4 sm:$0xff]   ;;  %v565_v7 = vld [vmem:[#allocation2 + $0x94] ss:$24 sps:$4 sm:$0xff]  }
  0x15   :  { %358 = vmatpush1.bf16.msra.mxu0 %v558_v2  ;;  %v567_v8 = vld [vmem:[#allocation2 + $0x90] ss:$24 sps:$4 sm:$0xff]   ;;  %v580_v9 = vld [vmem:[#allocation2 + $0xc] ss:$24 sps:$4 sm:$0xff]   ;;  %v570_v12 = vld [vmem:[#allocation2 + $0xc0] ss:$24 sps:$4 sm:$0xff]  }
  0x16   :  { %359 = vmatprep.subr.bf16.mxu0 %v559_v3  ;;  %v582_v10 = vld [vmem:[#allocation2 + $0x8] ss:$24 sps:$4 sm:$0xff]   ;;  %v568_v11 = vld [vmem:[#allocation2 + $0xc4] ss:$24 sps:$4 sm:$0xff]   ;;  %400 = vmatprep.subr.bf16.mxu1 %v580_v9  ;;  %v589_v14 = vld [vmem:[#allocation2 + $0x38] ss:$24 sps:$4 sm:$0xff]  }
  0x17   :  { %401 = vmatpush1.bf16.msra.mxu1 %v582_v10  ;;  %v587_v13 = vld [vmem:[#allocation2 + $0x3c] ss:$24 sps:$4 sm:$0xff]   ;;  %v593_v16 = vld [vmem:[#allocation2 + $0x6c] ss:$24 sps:$4 sm:$0xff]   ;;  %v595_v17 = vld [vmem:[#allocation2 + $0x68] ss:$24 sps:$4 sm:$0xff]  }
  0x18   :  { %v571_v15 = vld [vmem:[#allocation2 + $0xf4] ss:$24 sps:$4 sm:$0xff]   ;;  %402 = vmatprep.subr.bf16.mxu1 %v587_v13  ;;  %v573_v18 = vld [vmem:[#allocation2 + $0xf0] ss:$24 sps:$4 sm:$0xff]   ;;  %v574_v19 = vld [vmem:[#allocation2 + $0x124] ss:$24 sps:$4 sm:$0xff]  }
  0x19   :  { %360 = vmatpush1.bf16.msra.mxu0 %v561_v4  ;;  %v599_v20 = vld [vmem:[#allocation2 + $0x9c] ss:$24 sps:$4 sm:$0xff]   ;;  %v601_v21 = vld [vmem:[#allocation2 + $0x98] ss:$24 sps:$4 sm:$0xff]   ;;  %v605_v23 = vld [vmem:[#allocation2 + $0xcc] ss:$24 sps:$4 sm:$0xff]  }
  0x1a   :  { %361 = vmatprep.subr.bf16.mxu0 %v562_v5  ;;  %v576_v22 = vld [vmem:[#allocation2 + $0x120] ss:$24 sps:$4 sm:$0xff]   ;;  %v577_v24 = vld [vmem:[#allocation2 + $0x154] ss:$24 sps:$4 sm:$0xff]   ;;  %v579_v26 = vld [vmem:[#allocation2 + $0x150] ss:$24 sps:$4 sm:$0xff]  }
  0x1b   :  { %403 = vmatpush1.bf16.msra.mxu1 %v589_v14  ;;  %v607_v25 = vld [vmem:[#allocation2 + $0xc8] ss:$24 sps:$4 sm:$0xff]   ;;  %v611_v27 = vld [vmem:[#allocation2 + $0xfc] ss:$24 sps:$4 sm:$0xff]   ;;  %v613_v30 = vld [vmem:[#allocation2 + $0xf8] ss:$24 sps:$4 sm:$0xff]  }
  0x1c   :  { %404 = vmatprep.subr.bf16.mxu1 %v593_v16  ;;  %v586_v28 = vld [vmem:[#allocation2 + $0x14] ss:$24 sps:$4 sm:$0xff]   ;;  %v583_v29 = vld [vmem:[%s734_s0] sm:$0xff]   ;;  %v584_v31 = vld [vmem:[#allocation2 + $0x10] ss:$24 sps:$4 sm:$0xff]   ;;  %v82_v51 = vshrl.u32 %v81_v50, 7 }
  0x1d   :  { %362 = vmatpush1.bf16.msra.mxu0 %v564_v6  ;;  %v617_v32 = vld [vmem:[#allocation2 + $0x12c] ss:$24 sps:$4 sm:$0xff]   ;;  %v619_v34 = vld [vmem:[#allocation2 + $0x128] ss:$24 sps:$4 sm:$0xff]   ;;  %v623_v36 = vld [vmem:[#allocation2 + $0x15c] ss:$24 sps:$4 sm:$0xff]  }
  0x1e   :  { %363 = vmatprep.subr.bf16.mxu0 %v565_v7  ;;  %v592_v33 = vld [vmem:[#allocation2 + $0x44] ss:$24 sps:$4 sm:$0xff]   ;;  %v590_v35 = vld [vmem:[#allocation2 + $0x40] ss:$24 sps:$4 sm:$0xff]   ;;  %v598_v37 = vld [vmem:[#allocation2 + $0x74] ss:$24 sps:$4 sm:$0xff]  }
  0x1f   :  { %405 = vmatpush1.bf16.msra.mxu1 %v595_v17  ;;  %v625_v38 = vld [vmem:[#allocation2 + $0x158] ss:$24 sps:$4 sm:$0xff]   ;;  %v604_v40 = vld [vmem:[#allocation2 + $0xa4] ss:$24 sps:$4 sm:$0xff]   ;;  %v610_v42 = vld [vmem:[#allocation2 + $0xd4] ss:$24 sps:$4 sm:$0xff]  }
  0x20   :  { %406 = vmatprep.subr.bf16.mxu1 %v599_v20  ;;  %v596_v39 = vld [vmem:[#allocation2 + $0x70] ss:$24 sps:$4 sm:$0xff]   ;;  %v602_v41 = vld [vmem:[#allocation2 + $0xa0] ss:$24 sps:$4 sm:$0xff]   ;;  %v616_v44 = vld [vmem:[#allocation2 + $0x104] ss:$24 sps:$4 sm:$0xff]  }
  0x21   :  { %364 = vmatpush1.bf16.msra.mxu0 %v567_v8  ;;  %v608_v43 = vld [vmem:[#allocation2 + $0xd0] ss:$24 sps:$4 sm:$0xff]   ;;  %v614_v45 = vld [vmem:[#allocation2 + $0x100] ss:$24 sps:$4 sm:$0xff]   ;;  %v622_v46 = vld [vmem:[#allocation2 + $0x134] ss:$24 sps:$4 sm:$0xff]  }
  0x22   :  { %365 = vmatprep.subr.bf16.mxu0 %v568_v11  ;;  %v620_v47 = vld [vmem:[#allocation2 + $0x130] ss:$24 sps:$4 sm:$0xff]   ;;  %v628_v48 = vld [vmem:[#allocation2 + $0x164] ss:$24 sps:$4 sm:$0xff]   ;;  %v626_v49 = vld [vmem:[#allocation2 + $0x160] ss:$24 sps:$4 sm:$0xff]  }
  0x23   :  { %407 = vmatpush1.bf16.msra.mxu1 %v601_v21  ;;  %v83_v52 = vsub.s32 0, %v82_v51  ;;  %v79_v53 = vld [vmem:[%s736_s2] sm:$0x3f]  ;;  %v87_v54 = vsub.s32 1, %v82_v51  ;;  %v91_v1 = vsub.s32 2, %v82_v51  ;;  %v95_v2 = vsub.s32 3, %v82_v51 }
  0x24   :  { %408 = vmatprep.subr.bf16.mxu1 %v605_v23  ;;  %v99_v13 = vsub.s32 4, %v82_v51  ;;  %v103_v14 = vsub.s32 5, %v82_v51 }
  0x25   :  { %366 = vmatpush1.bf16.msra.mxu0 %v570_v12  ;;  %v84_v55 = vrot.slane %v79_v53, %v83_v52  ;;  %v88_v56 = vrot.slane %v79_v53, %v87_v54  ;;  %v92_v3 = vrot.slane %v79_v53, %v91_v1  ;;  %v96_v4 = vrot.slane %v79_v53, %v95_v2 }
  0x26   :  { %367 = vmatprep.subr.bf16.mxu0 %v571_v15  ;;  %v100_v15 = vrot.slane %v79_v53, %v99_v13  ;;  %v104_v16 = vrot.slane %v79_v53, %v103_v14 }
  0x27   :  { %409 = vmatpush1.bf16.msra.mxu1 %v607_v25 }
  0x28   :  { %410 = vmatprep.subr.bf16.mxu1 %v611_v27 }
  0x29   :  { %368 = vmatpush1.bf16.msra.mxu0 %v573_v18 }
  0x2a   :  { %369 = vmatprep.subr.bf16.mxu0 %v574_v19 }
  0x2b   :  { %411 = vmatpush1.bf16.msra.mxu1 %v613_v30 }
  0x2c   :  { %412 = vmatprep.subr.bf16.mxu1 %v617_v32 }
  0x2d   :  { %370 = vmatpush1.bf16.msra.mxu0 %v576_v22 }
  0x2e   :  { %371 = vmatprep.subr.bf16.mxu0 %v577_v24 }
  0x2f   :  { %413 = vmatpush1.bf16.msra.mxu1 %v619_v34 }
  0x30   :  { %414 = vmatprep.subr.bf16.mxu1 %v623_v36 }
  0x31   :  { %372 = vmatpush1.bf16.msra.mxu0 %v579_v26 }
  0x32   :  { %443 = vmatprep.subr.bf16.mxu0 %v586_v28 }
  0x33   :  { %415 = vmatpush1.bf16.msra.mxu1 %v625_v38 }
  0x34   :  { %390 = vmatmul.mubr.bf16.vlgmr.msra.gmra.mrb[0].mxu0 %v583_v29 }
  0x35   :  { %444 = vmatpush1.bf16.msra.mxu0 %v584_v31  ;;  %475 = vmatprep.mubr.bf16.mxu0 %v656_v0 }
  0x36   :  { %445 = vmatprep.subr.bf16.mxu0 %v592_v33  ;;  %433 = vmatmul.mubr.bf16.vlgmr.msra.gmra.mrb[0].mxu1 %v583_v29 }
  0x39   :  { %446 = vmatpush1.bf16.msra.mxu0 %v590_v35 }
  0x3a   :  { %447 = vmatprep.subr.bf16.mxu0 %v598_v37 }
  0x3d   :  { %448 = vmatpush1.bf16.msra.mxu0 %v596_v39 }
  0x3e   :  { %449 = vmatprep.subr.bf16.mxu0 %v604_v40 }
  0x41   :  { %450 = vmatpush1.bf16.msra.mxu0 %v602_v41 }
  0x42   :  { %451 = vmatprep.subr.bf16.mxu0 %v610_v42 }
  0x45   :  { %452 = vmatpush1.bf16.msra.mxu0 %v608_v43 }
  0x46   :  { %453 = vmatprep.subr.bf16.mxu0 %v616_v44 }
  0x49   :  { %454 = vmatpush1.bf16.msra.mxu0 %v614_v45 }
  0x4a   :  { %455 = vmatprep.subr.bf16.mxu0 %v622_v46 }
  0x4d   :  { %456 = vmatpush1.bf16.msra.mxu0 %v620_v47 }
  0x4e   :  { %457 = vmatprep.subr.bf16.mxu0 %v628_v48 }
  0x51   :  { %458 = vmatpush1.bf16.msra.mxu0 %v626_v49 }
  0x54   :  { %476 = vmatmul.mubr.bf16.vlgmr.msra.gmra.mrb[4].mxu0 %v583_v29 }
 0x107   :  { %v391_v57 = vpop.f32.mrb[0].mxu0 }
 0x108   :  { %v392_v58 = vadd.f32 %v391_v57, %v84_v55  ;;  %v393_v59 = vpop.f32.mrb[1].mxu0 }
 0x109   :  { %v394_v60 = vadd.f32 %v393_v59, %v88_v56  ;;  %v395_v61 = vpop.f32.mrb[2].mxu0  ;;  %v434_v5 = vpop.f32.mrb[0].mxu1 }
 0x10a   :  { %486 = vst [vmem:[%s737_s3] sm:$0xff] %v392_v58  ;;  %v396_v62 = vadd.f32 %v395_v61, %v84_v55  ;;  %v397_v63 = vpop.f32.mrb[3].mxu0  ;;  %v435_v6 = vadd.f32 %v434_v5, %v92_v3  ;;  %v436_v7 = vpop.f32.mrb[1].mxu1 }
 0x10b   :  { %487 = vst [vmem:[%s737_s3 + $0x8] sm:$0xff] %v394_v60  ;;  %v398_v0 = vadd.f32 %v397_v63, %v88_v56  ;;  %v437_v8 = vadd.f32 %v436_v7, %v96_v4  ;;  %v438_v9 = vpop.f32.mrb[2].mxu1 }
 0x10c   :  { %492 = vst [vmem:[%s737_s3 + $0x30] sm:$0xff] %v396_v62  ;;  %488 = vst [vmem:[%s737_s3 + $0x10] sm:$0xff] %v435_v6  ;;  %v439_v10 = vadd.f32 %v438_v9, %v92_v3  ;;  %v440_v11 = vpop.f32.mrb[3].mxu1 }
 0x10d   :  { %493 = vst [vmem:[%s737_s3 + $0x38] sm:$0xff] %v398_v0  ;;  %489 = vst [vmem:[%s737_s3 + $0x18] sm:$0xff] %v437_v8  ;;  %v441_v12 = vadd.f32 %v440_v11, %v96_v4 }
 0x10e   :  { %494 = vst [vmem:[%s737_s3 + $0x40] sm:$0xff] %v439_v10 }
 0x10f   :  { %495 = vst [vmem:[%s737_s3 + $0x48] sm:$0xff] %v441_v12 }
 0x127   :  { %v477_v17 = vpop.f32.mrb[4].mxu0 }
 0x128   :  { %v478_v18 = vadd.f32 %v477_v17, %v100_v15  ;;  %v479_v19 = vpop.f32.mrb[5].mxu0 }
 0x129   :  { %v480_v20 = vadd.f32 %v479_v19, %v104_v16  ;;  %v481_v21 = vpop.f32.mrb[6].mxu0 }
 0x12a   :  { %490 = vst [vmem:[%s737_s3 + $0x20] sm:$0xff] %v478_v18  ;;  %v482_v22 = vadd.f32 %v481_v21, %v100_v15  ;;  %v483_v23 = vpop.f32.mrb[7].mxu0 }
 0x12b   :  { %491 = vst [vmem:[%s737_s3 + $0x28] sm:$0xff] %v480_v20  ;;  %v484_v24 = vadd.f32 %v483_v23, %v104_v16 }
 0x12c   :  { %496 = vst [vmem:[%s737_s3 + $0x50] sm:$0xff] %v482_v22 }
 0x12d   :  { %497 = vst [vmem:[%s737_s3 + $0x58] sm:$0xff] %v484_v24 }
 0x12e   :  { %502 = vsyncpa [#allocation3], 1 }

// kernel: forward.6
= control target key start
LH: loop header
LB: loop body
LE: loop exit
PB: predicated region body
PF: predicated region fallthrough
CT: control target
= control target key end

     0   :  { %s1468_s0 = inlined_call_operand.<no memory space> [shape: s32[1], index: 0, kind: input, shape index: {}]   ;;  %s1469_s1 = inlined_call_operand.vmem [shape: s32[2,1], index: 1, kind: input, shape index: {}]   ;;  %s1470_s2 = inlined_call_operand.vmem [shape: f32[8,2,768], index: 2, kind: input, shape index: {}]   ;;  %s1471_s3 = inlined_call_operand.vmem [shape: bf16[2,128,384], index: 3, kind: input, shape index: {}]   ;;  %s1472_s5 = inlined_call_operand.vmem [shape: f32[8,2,256], index: 5, kind: output, shape index: {}]   ;;  %s1473_s4 = inlined_call_operand.vmem [shape: f32[2,1,128], index: 4, kind: input, shape index: {}]  }
   0x1   :  { %v944_v0 = vld [vmem:[%s1469_s1] sm:$0x3]  ;;  %v954_v2 = vld [vmem:[%s1471_s3 + $0x8] sm:$0xf]  ;;  %v959_v3 = vld [vmem:[%s1471_s3 + $0xc] sm:$0xff]  ;;  %p643_p0 = scmp.ge.s32.totalorder %s1468_s0, 8 }
   0x2   :  { %1492 = vst [vmem:[#allocation4_spill] sm:$0xff] %v944_v0  ;;  %v949_v1 = vld [vmem:[%s1471_s3] sm:$0xff]  ;;  %1494 = vst [vmem:[#allocation6_spill] sm:$0xff] %v954_v2  ;;  %v964_v4 = vld [vmem:[%s1471_s3 + $0x14] sm:$0xf] }
   0x3   :  { %1493 = vst [vmem:[#allocation5_spill] sm:$0xff] %v949_v1  ;;  %1495 = vst [vmem:[#allocation7_spill] sm:$0xff] %v959_v3  ;;  %v969_v5 = vld [vmem:[%s1471_s3 + $0x18] sm:$0xff]  ;;  %v974_v6 = vld [vmem:[%s1471_s3 + $0x20] sm:$0xf] }
   0x4   :  { %1496 = vst [vmem:[#allocation8_spill] sm:$0xff] %v964_v4  ;;  %1497 = vst [vmem:[#allocation9_spill] sm:$0xff] %v969_v5  ;;  %v979_v7 = vld [vmem:[%s1471_s3 + $0x24] sm:$0xff]  ;;  %v984_v8 = vld [vmem:[%s1471_s3 + $0x2c] sm:$0xf] }
   0x5   :  { %1498 = vst [vmem:[#allocation10_spill] sm:$0xff] %v974_v6  ;;  %1499 = vst [vmem:[#allocation11_spill] sm:$0xff] %v979_v7  ;;  %v989_v9 = vld [vmem:[%s1471_s3 + $0x30] sm:$0xff]  ;;  %v994_v10 = vld [vmem:[%s1471_s3 + $0x38] sm:$0xf] }
   0x6   :  { %1500 = vst [vmem:[#allocation12_spill] sm:$0xff] %v984_v8  ;;  %1501 = vst [vmem:[#allocation13_spill] sm:$0xff] %v989_v9  ;;  %v999_v11 = vld [vmem:[%s1471_s3 + $0x3c] sm:$0xff]  ;;  %v1004_v12 = vld [vmem:[%s1471_s3 + $0x44] sm:$0xf] }
   0x7   :  { %1502 = vst [vmem:[#allocation14_spill] sm:$0xff] %v994_v10  ;;  %1503 = vst [vmem:[#allocation15_spill] sm:$0xff] %v999_v11  ;;  %v1009_v13 = vld [vmem:[%s1471_s3 + $0x48] sm:$0xff]  ;;  %v1014_v14 = vld [vmem:[%s1471_s3 + $0x50] sm:$0xf] }
   0x8   :  { %1504 = vst [vmem:[#allocation16_spill] sm:$0xff] %v1004_v12  ;;  %1505 = vst [vmem:[#allocation17_spill] sm:$0xff] %v1009_v13  ;;  %v1019_v15 = vld [vmem:[%s1471_s3 + $0x54] sm:$0xff]  ;;  %v1024_v16 = vld [vmem:[%s1471_s3 + $0x5c] sm:$0xf] }
   0x9   :  { %1506 = vst [vmem:[#allocation18_spill] sm:$0xff] %v1014_v14  ;;  %v1029_v17 = vld [vmem:[%s1471_s3 + $0x60] sm:$0xff]  ;;  %v1034_v18 = vld [vmem:[%s1471_s3 + $0x68] sm:$0xf]  ;;  %v1039_v19 = vld [vmem:[%s1471_s3 + $0x6c] sm:$0xff] }
   0xa   :  { %v1044_v20 = vld [vmem:[%s1471_s3 + $0x74] sm:$0xf]  ;;  %v1049_v21 = vld [vmem:[%s1471_s3 + $0x78] sm:$0xff]  ;;  %v1054_v22 = vld [vmem:[%s1471_s3 + $0x80] sm:$0xf] }
   0xb   :  { %v1059_v23 = vld [vmem:[%s1471_s3 + $0x84] sm:$0xff]  ;;  %v1064_v24 = vld [vmem:[%s1471_s3 + $0x8c] sm:$0xf]  ;;  %v1069_v25 = vld [vmem:[%s1471_s3 + $0x90] sm:$0xff] }
   0xc   :  { %v1074_v26 = vld [vmem:[%s1471_s3 + $0x98] sm:$0xf]  ;;  %v1079_v27 = vld [vmem:[%s1471_s3 + $0x9c] sm:$0xff]  ;;  %v1084_v28 = vld [vmem:[%s1471_s3 + $0xa4] sm:$0xf] }
   0xd   :  { %v1089_v29 = vld [vmem:[%s1471_s3 + $0xa8] sm:$0xff]  ;;  %v1094_v30 = vld [vmem:[%s1471_s3 + $0xb0] sm:$0xf]  ;;  %v1099_v31 = vld [vmem:[%s1471_s3 + $0xb4] sm:$0xff] }
   0xe   :  { %v1104_v32 = vld [vmem:[%s1471_s3 + $0xbc] sm:$0xf]  ;;  %v1109_v33 = vld [vmem:[%s1471_s3 + $0xc0] sm:$0xff]  ;;  %v1114_v34 = vld [vmem:[%s1471_s3 + $0xc8] sm:$0xf] }
   0xf   :  { %v1119_v35 = vld [vmem:[%s1471_s3 + $0xcc] sm:$0xff]  ;;  %v1124_v36 = vld [vmem:[%s1471_s3 + $0xd4] sm:$0xf]  ;;  %v1129_v37 = vld [vmem:[%s1471_s3 + $0xd8] sm:$0xff] }
  0x10   :  { %v1134_v38 = vld [vmem:[%s1471_s3 + $0xe0] sm:$0xf]  ;;  %v1139_v39 = vld [vmem:[%s1471_s3 + $0xe4] sm:$0xff]  ;;  %v1144_v40 = vld [vmem:[%s1471_s3 + $0xec] sm:$0xf] }
  0x11   :  { %v1149_v41 = vld [vmem:[%s1471_s3 + $0xf0] sm:$0xff]  ;;  %v1154_v42 = vld [vmem:[%s1471_s3 + $0xf8] sm:$0xf]  ;;  %v1159_v43 = vld [vmem:[%s1471_s3 + $0xfc] sm:$0xff] }
  0x12   :  { %v1164_v44 = vld [vmem:[%s1471_s3 + $0x104] sm:$0xf]  ;;  %v1169_v45 = vld [vmem:[%s1471_s3 + $0x108] sm:$0xff]  ;;  %v1174_v46 = vld [vmem:[%s1471_s3 + $0x110] sm:$0xf] }
  0x13   :  { %v1179_v47 = vld [vmem:[%s1471_s3 + $0x114] sm:$0xff]  ;;  %v1184_v48 = vld [vmem:[%s1471_s3 + $0x11c] sm:$0xf]  ;;  %v1189_v49 = vld [vmem:[%s1471_s3 + $0x120] sm:$0xff] }
  0x14   :  { %v1194_v50 = vld [vmem:[%s1471_s3 + $0x128] sm:$0xf]  ;;  %v1199_v51 = vld [vmem:[%s1471_s3 + $0x12c] sm:$0xff]  ;;  %v1204_v52 = vld [vmem:[%s1471_s3 + $0x134] sm:$0xf] }
  0x15   :  { %v1209_v53 = vld [vmem:[%s1471_s3 + $0x138] sm:$0xff]  ;;  %v1214_v54 = vld [vmem:[%s1471_s3 + $0x140] sm:$0xf]  ;;  %v1219_v55 = vld [vmem:[%s1471_s3 + $0x144] sm:$0xff]  ;;  %644 = sbr.rel (%p643_p0) target bundleno = 38 (0x26), region = 51 }
  0x16   :  { %1507 = vst [vmem:[#allocation19_spill] sm:$0xff] %v1214_v54  ;;  %v1224_v56 = vld [vmem:[%s1471_s3 + $0x14c] sm:$0xf]  ;;  %v1229_v57 = vld [vmem:[%s1471_s3 + $0x150] sm:$0xff]  ;;  %v1234_v58 = vld [vmem:[%s1471_s3 + $0x158] sm:$0xf] }
  0x17   :  { %1508 = vst [vmem:[#allocation20_spill] sm:$0xff] %v1224_v56  ;;  %1509 = vst [vmem:[#allocation21_spill] sm:$0xff] %v1229_v57  ;;  %v1239_v59 = vld [vmem:[%s1471_s3 + $0x15c] sm:$0xff]  ;;  %v1244_v60 = vld [vmem:[%s1471_s3 + $0x164] sm:$0xf] }
  0x18   :  { %1510 = vst [vmem:[#allocation22_spill] sm:$0xff] %v1234_v58  ;;  %1511 = vst [vmem:[#allocation23_spill] sm:$0xff] %v1244_v60  ;;  %v1249_v61 = vld [vmem:[%s1471_s3 + $0x168] sm:$0xff]  ;;  %v1254_v62 = vld [vmem:[%s1471_s3 + $0x170] sm:$0xf] }
  0x19   :  { %1512 = vst [vmem:[#allocation24_spill] sm:$0xff] %v1249_v61  ;;  %1513 = vst [vmem:[#allocation25_spill] sm:$0xff] %v1254_v62  ;;  %v1259_v63 = vld [vmem:[%s1471_s3 + $0x174] sm:$0xff]  ;;  %v1264_v58 = vld [vmem:[%s1471_s3 + $0x17c] sm:$0xf]  ;;  %s891_s3 = smov (!%p643_p0), %s1468_s0  }
  0x1a   :  { %1514 = vst [vmem:[#allocation26_spill] sm:$0xff] %v1259_v63  ;;  %1515 = vst [vmem:[#allocation27_spill] sm:$0xff] %v1264_v58  ;;  %v1269_v60 = vld [vmem:[%s1473_s4] ss:$0 sm:$0xff]  ;;  %v1274_v61 = vld [vmem:[%s1473_s4 + $0x1] ss:$0 sm:$0xff] }
  0x1b   :  { %1516 = vst [vmem:[#allocation28_spill] sm:$0xff] %v1269_v60  ;;  %1517 = vst [vmem:[#allocation29_spill] sm:$0xff] %v1274_v61 }
  0x1c LB: > { %s755_s26 = sshll.u32 %s893_s3, 2  ;;  %v907_v60 = vmov 0.0   ;;  %s93_s3 = sadd.s32 1, %s893_s3   ;;  %s893_s3 = sphi %s891_s3, %s93_s3  }
  0x1d   : > { %s98_s28 = scalar_lea.vmem %s1472_s5, %s755_s26  ;;  %p92_p1 = scmp.ge.s32.totalorder %s93_s3, 8 }
  0x1e   : > { %99 = vst [vmem:[%s98_s28] sm:$0xf] %v907_v60 }
  0x1f   :  { %95 = sbr.rel (!%p92_p1) target bundleno = 28 (0x1c), region = 57 }
  0x26 PF:  { %p693_p2 = scmp.le.s32.totalorder %s1468_s0, 0 }
  0x27   :  { %v1288_v61 = vmov (!%p693_p2), 0.0   ;;  %v1290_v62 = vmov (!%p693_p2), 0.0   ;;  %s1292_s30 = smov (!%p693_p2), 0  }
  0x28   :  { %651 = sbr.rel (%p693_p2) target bundleno = 378 (0x17a), region = 62 }
  0x2f LB: > { %v1518_v13 = vld [vmem:[#allocation17_spill] sm:$0xff]  ;;  %v1519_v11 = vld [vmem:[#allocation15_spill] sm:$0xff]  ;;  %v1523_v0 = vld [vmem:[#allocation4_spill] sm:$0xff]  ;;  %1526 = vst [vmem:[#allocation30_spill] sm:$0xff] %v897_v61  ;;  %v1482_v57 = vmov 0.0   ;;  %s694_s8 = sadd.s32 4294967295, %s1468_s0  ;;  %v901_v62 = vphi %v1290_v62, %v611_v62   ;;  %v897_v61 = vphi %v1288_v61, %v619_v61   ;;  %s905_s30 = sphi %s1292_s30, %s103_s30  }
  0x30   : > { %v1520_v9 = vld [vmem:[#allocation13_spill] sm:$0xff]  ;;  %v1521_v7 = vld [vmem:[#allocation11_spill] sm:$0xff]  ;;  %v1527_v4 = vld [vmem:[#allocation8_spill] sm:$0xff]  ;;  %778 = vmatprep.subr.bf16.mxu1 %v1482_v57  ;;  %vm910_vm0 = vmmov 0   ;;  %s1336_s9 = ssub.s32 %s694_s8, %s905_s30  ;;  %s756_s10 = smul.u32 12, %s905_s30 }
  0x31   : > { %v1522_v5 = vld [vmem:[#allocation9_spill] sm:$0xff]  ;;  %v1524_v3 = vld [vmem:[#allocation7_spill] sm:$0xff]  ;;  %v1528_v2 = vld [vmem:[#allocation6_spill] sm:$0xff]  ;;  %v704_v56 = vcombine.high %v1520_v9, %v1519_v11  ;;  %794 = vmatprep.mubr.msk.bf16.mxu1 %vm910_vm0, %v1482_v57  ;;  %s757_s14 = smul.u32 12, %s1336_s9  ;;  %s758_s18 = sshll.u32 %s905_s30, 2 }
  0x32   : > { %v1525_v1 = vld [vmem:[#allocation5_spill] sm:$0xff]  ;;  %v701_v63 = vcombine.high %v1522_v5, %v1521_v7  ;;  %v700_v54 = vcombine.low %v1522_v5, %v1521_v7  ;;  %v699_v61 = vcombine.low %v1528_v2, %v1527_v4  ;;  %v1529_v8 = vld [vmem:[#allocation12_spill] sm:$0xff]  ;;  %v1530_v6 = vld [vmem:[#allocation10_spill] sm:$0xff]  ;;  %v1535_v4 = vmov 0.0   ;;  %s112_s13 = scalar_lea.vmem %s1470_s2, %s756_s10  ;;  %s622_s21 = scalar_lea.vmem %s1472_s5, %s758_s18 }
  0x33   : > { %v698_v60 = vcombine.high %v1525_v1, %v1524_v3  ;;  %v697_v58 = vcombine.low %v1525_v1, %v1524_v3  ;;  %v702_v1 = vcombine.low %v1530_v6, %v1529_v8  ;;  %v1480_v3 = vmov 0   ;;  %v1531_v12 = vld [vmem:[#allocation16_spill] sm:$0xff]  ;;  %v1532_v10 = vld [vmem:[#allocation14_spill] sm:$0xff]  ;;  %s116_s17 = scalar_lea.vmem %s1470_s2, %s757_s14  ;;  %s759_s22 = sshll.u32 %s1336_s9, 2 }
  0x34   : > { %779 = vmatpush3.bf16.msra.mxu1 %v699_v61  ;;  %279 = vmatprep.mubr.bf16.mxu0 %v1480_v3  ;;  %v707_v61 = vcombine.high %v1518_v13, %v1019_v15  ;;  %v1533_v14 = vld [vmem:[#allocation18_spill] sm:$0xff]  ;;  %s626_s25 = scalar_lea.vmem %s1472_s5, %s759_s22 }
  0x35   : > { %247 = vmatprep.subr.bf16.mxu0 %v698_v60  ;;  %780 = vmatprep.subr.bf16.mxu1 %v1482_v57  ;;  %v604_v60 = vstv %s905_s30  ;;  %v1540_v5 = vld [vmem:[#allocation26_spill] sm:$0xff]  ;;  %s103_s30 = sadd.s32 1, %s905_s30  }
  0x36   : > { %248 = vmatpush1.bf16.msra.mxu0 %v697_v58  ;;  %854 = vset.pattern.permute.xlu0 %v1480_v3  ;;  %v703_v58 = vcombine.low %v1520_v9, %v1519_v11  ;;  %v709_v3 = vcombine.low %v1029_v17, %v1039_v19  ;;  %vm605_vm1 = vcmp.gt.s32.totalorder %v1523_v0, %v604_v60  ;;  %v1543_v7 = vld [vmem:[#allocation22_spill] sm:$0xff]  ;;  %p102_p3 = scmp.ge.s32.totalorder %s103_s30, %s1468_s0 }
  0x37   : > { %249 = vmatprep.subr.bf16.mxu0 %v701_v63  ;;  %v705_v63 = vcombine.low %v1532_v10, %v1531_v12  ;;  %v712_v60 = vcombine.low %v1049_v21, %v1059_v23 }
  0x38   : > { %781 = vmatpush3.bf16.msra.mxu1 %v702_v1  ;;  %v710_v1 = vcombine.high %v1029_v17, %v1039_v19 }
  0x39   : > { %782 = vmatprep.subr.bf16.mxu1 %v1482_v57 }
  0x3a   : > { %250 = vmatpush1.bf16.msra.mxu0 %v700_v54  ;;  %v706_v54 = vcombine.low %v1518_v13, %v1019_v15 }
  0x3b   : > { %251 = vmatprep.subr.bf16.mxu0 %v704_v56  ;;  %v708_v56 = vcombine.low %v1533_v14, %v1024_v16 }
  0x3c   : > { %783 = vmatpush3.bf16.msra.mxu1 %v705_v63  ;;  %v1534_v63 = vmov 0  }
  0x3d   : > { %784 = vmatprep.subr.bf16.mxu1 %v1482_v57  ;;  %v606_v2 = vsel %vm605_vm1, 1, %v1534_v63  ;;  %v711_v57 = vcombine.low %v1034_v18, %v1044_v20 }
  0x3e   : > { %252 = vmatpush1.bf16.msra.mxu0 %v703_v58  ;;  %v612_v58 = vstv %s1336_s9  ;;  %608 = vperm.xlu0 %854, %v606_v2   ;;  %v715_v2 = vcombine.low %v1069_v25, %v1079_v27 }
  0x3f   : > { %253 = vmatprep.subr.bf16.mxu0 %v707_v61  ;;  %vm613_vm2 = vcmp.gt.s32.totalorder %v1523_v0, %v612_v58  ;;  %v713_v61 = vcombine.high %v1049_v21, %v1059_v23  ;;  %v717_v58 = vcombine.low %v1074_v26, %v1084_v28 }
  0x40   : > { %785 = vmatpush3.bf16.msra.mxu1 %v708_v56  ;;  %v714_v56 = vcombine.low %v1054_v22, %v1064_v24 }
  0x41   : > { %786 = vmatprep.subr.bf16.mxu1 %v1535_v4 }
  0x42   : > { %254 = vmatpush1.bf16.msra.mxu0 %v706_v54  ;;  %v614_v54 = vsel %vm613_vm2, 1, %v1534_v63 }
  0x43   : > { %255 = vmatprep.subr.bf16.mxu0 %v710_v1  ;;  %v716_v1 = vcombine.high %v1069_v25, %v1079_v27  ;;  %616 = vperm.xlu0 %854, %v614_v54   ;;  %v720_v54 = vcombine.low %v1094_v30, %v1104_v32 }
  0x44   : > { %787 = vmatpush3.bf16.msra.mxu1 %v711_v57  ;;  %v718_v57 = vcombine.low %v1089_v29, %v1099_v31 }
  0x45   : > { %788 = vmatprep.subr.bf16.mxu1 %v1535_v4 }
  0x46   : > { %256 = vmatpush1.bf16.msra.mxu0 %v709_v3  ;;  %v719_v3 = vcombine.high %v1089_v29, %v1099_v31 }
  0x47   : > { %257 = vmatprep.subr.bf16.mxu0 %v713_v61  ;;  %v722_v61 = vcombine.high %v1109_v33, %v1119_v35 }
  0x48   : > { %789 = vmatpush3.bf16.msra.mxu1 %v714_v56  ;;  %v725_v56 = vcombine.high %v1129_v37, %v1139_v39 }
  0x49   : > { %790 = vmatprep.subr.bf16.mxu1 %v1535_v4 }
  0x4a   : > { %258 = vmatpush1.bf16.msra.mxu0 %v712_v60  ;;  %v118_v60 = vpack.c.bf16 %v901_v62, %v901_v62 }
  0x4b   : > { %259 = vmatprep.subr.bf16.mxu0 %v716_v1  ;;  %v721_v1 = vcombine.low %v1109_v33, %v1119_v35 }
  0x4c   : > { %791 = vmatpush3.bf16.msra.mxu1 %v717_v58  ;;  %v728_v58 = vcombine.high %v1149_v41, %v1159_v43 }
  0x4d   : > { %792 = vmatprep.subr.bf16.mxu1 %v1535_v4 }
  0x4e   : > { %260 = vmatpush1.bf16.msra.mxu0 %v715_v2  ;;  %v723_v2 = vcombine.low %v1114_v34, %v1124_v36 }
  0x4f   : > { %261 = vmatprep.subr.bf16.mxu0 %v719_v3  ;;  %v724_v3 = vcombine.low %v1129_v37, %v1139_v39 }
  0x50   : > { %793 = vmatpush3.bf16.msra.mxu1 %v720_v54  ;;  %v729_v54 = vcombine.low %v1154_v42, %v1164_v44 }
  0x51   : > { %798 = vmatprep.subr.bf16.mxu1 %v1535_v4 }
  0x52   : > { %262 = vmatpush1.bf16.msra.mxu0 %v718_v57  ;;  %v726_v57 = vcombine.low %v1134_v38, %v1144_v40 }
  0x53   : > { %457 = vmatprep.subr.bf16.mxu0 %v722_v61  ;;  %795 = vmatmul.mubr.bf16.vlgmr.msra.gmra.mrb[0].mxu1 %v118_v60  ;;  %v727_v61 = vcombine.low %v1149_v41, %v1159_v43 }
  0x54   : > { %799 = vmatpush3.bf16.msra.mxu1 %v723_v2  ;;  %814 = vmatprep.mubr.msk.bf16.mxu1 %vm910_vm0, %v1535_v4  ;;  %v733_v2 = vcombine.low %v1189_v49, %v1199_v51 }
  0x55   : > { %280 = vmatmul.mubr.bf16.vlgmr.msra.gmra.mrb[0].mxu0 %v118_v60  ;;  %800 = vmatprep.subr.bf16.mxu1 %v1535_v4  ;;  %v730_v60 = vcombine.low %v1169_v45, %v1179_v47 }
  0x56   : > { %458 = vmatpush1.bf16.msra.mxu0 %v721_v1  ;;  %489 = vmatprep.mubr.bf16.mxu0 %v1534_v63  ;;  %v731_v63 = vcombine.high %v1169_v45, %v1179_v47  ;;  %v734_v1 = vcombine.high %v1189_v49, %v1199_v51 }
  0x57   : > { %459 = vmatprep.subr.bf16.mxu0 %v725_v56  ;;  %v732_v56 = vcombine.low %v1174_v46, %v1184_v48 }
  0x58   : > { %801 = vmatpush3.bf16.msra.mxu1 %v726_v57  ;;  %v736_v57 = vcombine.low %v1209_v53, %v1219_v55 }
  0x59   : > { %802 = vmatprep.subr.bf16.mxu1 %v1535_v4 }
  0x5a   : > { %460 = vmatpush1.bf16.msra.mxu0 %v724_v3  ;;  %v737_v3 = vcombine.high %v1209_v53, %v1219_v55 }
  0x5b   : > { %461 = vmatprep.subr.bf16.mxu0 %v728_v58  ;;  %v735_v58 = vcombine.low %v1194_v50, %v1204_v52 }
  0x5c   : > { %803 = vmatpush3.bf16.msra.mxu1 %v729_v54 }
  0x5d   : > { %804 = vmatprep.subr.bf16.mxu1 %v1535_v4 }
  0x5e   : > { %462 = vmatpush1.bf16.msra.mxu0 %v727_v61  ;;  %v1536_v61 = vld [vmem:[#allocation21_spill] sm:$0xff] }
  0x5f   : > { %463 = vmatprep.subr.bf16.mxu0 %v731_v63  ;;  %v1537_v63 = vmov %v1536_v61  ;;  %v740_v54 = vcombine.high %v1536_v61, %v1239_v59  ;;  %v1545_v61 = vld [vmem:[#allocation25_spill] sm:$0xff] }
  0x60   : > { %805 = vmatpush3.bf16.msra.mxu1 %v732_v56  ;;  %v739_v56 = vcombine.low %v1537_v63, %v1239_v59 }
  0x61   : > { %806 = vmatprep.subr.bf16.mxu1 %v1535_v4 }
  0x62   : > { %464 = vmatpush1.bf16.msra.mxu0 %v730_v60  ;;  %v1538_v60 = vld [vmem:[#allocation20_spill] sm:$0xff] }
  0x63   : > { %465 = vmatprep.subr.bf16.mxu0 %v734_v1  ;;  %v1539_v1 = vld [vmem:[#allocation19_spill] sm:$0xff] }
  0x64   : > { %807 = vmatpush3.bf16.msra.mxu1 %v735_v58  ;;  %v738_v0 = vcombine.low %v1539_v1, %v1538_v60 }
  0x65   : > { %808 = vmatprep.subr.bf16.mxu1 %v1535_v4 }
  0x66   : > { %466 = vmatpush1.bf16.msra.mxu0 %v733_v2  ;;  %v1541_v2 = vld [vmem:[#allocation24_spill] sm:$0xff] }
  0x67   : > { %467 = vmatprep.subr.bf16.mxu0 %v737_v3  ;;  %v743_v6 = vcombine.high %v1541_v2, %v1540_v5  ;;  %v1542_v3 = vld [vmem:[#allocation23_spill] sm:$0xff]  ;;  %v742_v58 = vcombine.low %v1541_v2, %v1540_v5 }
  0x68   : > { %809 = vmatpush3.bf16.msra.mxu1 %v738_v0  ;;  %v741_v8 = vcombine.low %v1543_v7, %v1542_v3  ;;  %v113_v0 = vld [vmem:[%s112_s13] sm:$0x3f] }
  0x69   : > { %810 = vmatprep.subr.bf16.mxu1 %v1535_v4  ;;  %v546_v7 = vrot.slane %v113_v0, 2 }
  0x6a   : > { %468 = vmatpush1.bf16.msra.mxu0 %v736_v57  ;;  %v1544_v57 = vld [vmem:[#allocation27_spill] sm:$0xff] }
  0x6b   : > { %469 = vmatprep.subr.bf16.mxu0 %v740_v54  ;;  %v744_v60 = vcombine.low %v1545_v61, %v1544_v57  ;;  %v1546_v54 = vld [vmem:[#allocation30_spill] sm:$0xff] }
  0x6c   : > { %811 = vmatpush3.bf16.msra.mxu1 %v741_v8  ;;  %v328_v1 = vpack.c.bf16 %v1546_v54, %v1546_v54 }
  0x6d   : > { %812 = vmatprep.subr.bf16.mxu1 %v1535_v4 }
  0x6e   : > { %470 = vmatpush1.bf16.msra.mxu0 %v739_v56 }
  0x6f   : > { %471 = vmatprep.subr.bf16.mxu0 %v743_v6 }
  0x70   : > { %813 = vmatpush3.bf16.msra.mxu1 %v744_v60 }
  0x72   : > { %472 = vmatpush1.bf16.msra.mxu0 %v742_v58 }
  0x73   : > { %815 = vmatmul.mubr.bf16.vlgmr.msra.gmra.mrb[4].mxu1 %v328_v1 }
  0x75   : > { %490 = vmatmul.mubr.bf16.vlgmr.msra.gmra.mrb[4].mxu0 %v328_v1 }
 0x126   : > { %v322_v57 = vpop.f32.mrb[0].mxu1 }
 0x127   : > { %v796_v4 = vpop.f32.mrb[1].mxu1 }
 0x128   : > { %v281_v6 = vpop.f32.mrb[0].mxu0  ;;  %v325_v60 = vpop.f32.mrb[2].mxu1 }
 0x129   : > { %v538_v8 = vadd.f32 %v281_v6, %v113_v0  ;;  %v283_v56 = vpop.f32.mrb[1].mxu0  ;;  %v797_v1 = vpop.f32.mrb[3].mxu1  ;;  %v1547_v6 = vld [vmem:[#allocation28_spill] sm:$0xff] }
 0x12a   : > { %v285_v3 = vpop.f32.mrb[2].mxu0  ;;  %v548_v58 = vadd.f32 %v546_v7, %v283_v56  ;;  %v561_v13 = vadd.f32 %v1547_v6, %v322_v57  ;;  %v117_v56 = vld [vmem:[%s116_s17 + $0x6] sm:$0x3f] }
 0x12b   : > { %v745_v61 = vmul.f32 -1.442695, %v538_v8  ;;  %v286_v2 = vpop.f32.mrb[3].mxu0 }
 0x12c   : > { %v746_v5 = vmul.f32 -1.442695, %v548_v58  ;;  %v563_v2 = vrot.slane %v113_v0, 4 }
 0x12d   : > { %855 = vpow2.f32 %v745_v61 }
 0x12e   : > { %857 = vpow2.f32 %v746_v5  ;;  %v579_v5 = vrot.slane %v117_v56, 2 }
 0x137   : > { %v856_v9 = vpop.eup %855 }
 0x138   : > { %v542_v10 = vadd.f32 1.0, %v856_v9  ;;  %v858_v11 = vpop.eup %857 }
 0x139   : > { %v552_v12 = vadd.f32 1.0, %v858_v11 }
 0x13a   : > { %859 = vrcp.f32 %v542_v10 }
 0x13b   : > { %861 = vrcp.f32 %v552_v12 }
 0x144   : > { %v860_v8 = vpop.eup %859 }
 0x145   : > { %v562_v7 = vmul.f32 %v860_v8, %v561_v13  ;;  %v862_v14 = vpop.eup %861  ;;  %v609_v13 = vpop.permute.xlu0 %608 }
 0x146   : > { %v532_v11 = vpop.f32.mrb[4].mxu1  ;;  %v567_v8 = vsub.f32 1.0, %v862_v14  ;;  %vm610_vm3 = vcmp.eq.s32.totalorder %v609_v13, 1 }
 0x147   : > { %v565_v3 = vadd.f32 %v563_v2, %v562_v7  ;;  %v816_v60 = vpop.f32.mrb[5].mxu1 }
 0x148   : > { %v491_v61 = vpop.f32.mrb[4].mxu0  ;;  %v535_v6 = vpop.f32.mrb[6].mxu1  ;;  %v596_v60 = vrot.slane %v117_v56, 4 }
 0x149   : > { %863 = vtanh.f32 %v565_v3  ;;  %v571_v9 = vadd.f32 %v491_v61, %v117_v56  ;;  %v493_v10 = vpop.f32.mrb[5].mxu0  ;;  %v817_v0 = vpop.f32.mrb[7].mxu1  ;;  %v569_v3 = vmul.f32 %v901_v62, %v862_v14 }
 0x14a   : > { %v495_v4 = vpop.f32.mrb[6].mxu0  ;;  %v581_v1 = vadd.f32 %v579_v5, %v493_v10 }
 0x14b   : > { %v748_v58 = vmul.f32 -1.442695, %v571_v9  ;;  %v496_v57 = vpop.f32.mrb[7].mxu0 }
 0x14c   : > { %v749_v12 = vmul.f32 -1.442695, %v581_v1 }
 0x14d   : > { %865 = vpow2.f32 %v748_v58  ;;  %v1548_v58 = vld [vmem:[#allocation29_spill] sm:$0xff] }
 0x14e   : > { %867 = vpow2.f32 %v749_v12  ;;  %v594_v57 = vadd.f32 %v1548_v58, %v532_v11 }
 0x153   : > { %v864_v2 = vpop.eup %863 }
 0x154   : > { %v568_v7 = vmul.f32 %v864_v2, %v567_v8  ;;  %v617_v8 = vpop.permute.xlu0 %616 }
 0x155   : > { %vm618_vm4 = vcmp.eq.s32.totalorder %v617_v8, 1 }
 0x156   : > { %v570_v61 = vadd.f32 %v569_v3, %v568_v7 }
 0x157   : > { %v866_v5 = vpop.eup %865 }
 0x158   : > { %v575_v9 = vadd.f32 1.0, %v866_v5  ;;  %v611_v62 = vsel %vm610_vm3, %v570_v61, 0.0   ;;  %v868_v10 = vpop.eup %867 }
 0x159   : > { %623 = vst [vmem:[%s622_s21] sm:$0x3] %v611_v62  ;;  %v585_v4 = vadd.f32 1.0, %v868_v10 }
 0x15a   : > { %869 = vrcp.f32 %v575_v9 }
 0x15b   : > { %871 = vrcp.f32 %v585_v4 }
 0x164   : > { %v870_v1 = vpop.eup %869 }
 0x165   : > { %v595_v14 = vmul.f32 %v870_v1, %v594_v57  ;;  %v872_v0 = vpop.eup %871 }
 0x166   : > { %v600_v12 = vsub.f32 1.0, %v872_v0  ;;  %v602_v7 = vmul.f32 %v1546_v54, %v872_v0 }
 0x167   : > { %v598_v6 = vadd.f32 %v596_v60, %v595_v14 }
 0x169   : > { %873 = vtanh.f32 %v598_v6 }
 0x173   : > { %v874_v13 = vpop.eup %873  ;;  %105 = sbr.rel (!%p102_p3) target bundleno = 47 (0x2f), region = 68 }
 0x174   : > { %v601_v2 = vmul.f32 %v874_v13, %v600_v12 }
 0x176   : > { %v603_v3 = vadd.f32 %v602_v7, %v601_v2 }
 0x178   : > { %v619_v61 = vsel %vm618_vm4, %v603_v3, 0.0  }
 0x179   : > { %627 = vst [vmem:[%s626_s25 + $0x2] sm:$0x3] %v619_v61 }
 0x17a PF:  {}

// kernel: forward.7
= control target key start
LH: loop header
LB: loop body
LE: loop exit
PB: predicated region body
PF: predicated region fallthrough
CT: control target
= control target key end

     0   :  { %8 = vsyncpa [#allocation3], 0  ;;  %s1051_s12 = smov [#allocation2]   ;;  %s1430_s0 = inlined_call_operand.vmem [shape: f32[16,256], index: 0, kind: input, shape index: {}]   ;;  %s1431_s1 = inlined_call_operand.vmem [shape: bf16[256,768], index: 1, kind: input, shape index: {}]   ;;  %s1432_s2 = inlined_call_operand.hbm [shape: f32[1,768], index: 2, kind: input, shape index: {}]   ;;  %s1433_s3 = inlined_call_operand.vmem [shape: f32[16,768], index: 3, kind: output, shape index: {}]  }
   0x1   :  { %s19_s13 = sshll.u32 %s1051_s12, 4  ;;  %s1027_s16 = scalar_lea.hbm %s1432_s2, 96  ;;  %s20_s13 = int_to_ptr.vmem [resolvable:$true] %s19_s13 }
   0x2   :  { %p1028_p0 = scmp.ne.s32.totalorder %s1432_s2, %s1027_s16  ;;  %p1031_p1 = scmp.lt.u32.totalorder %s1027_s16, %s1432_s2 }
   0x4   :  { %p1033_p2 = pnand %p1031_p1, %p1028_p0 }
   0x6   :  { %1036 = shalt.err (!%p1033_p2)
}
   0x7   :  { %s1037_s21 = scalar_lea.vmem %s20_s13, 96  ;;  %p1042_p4 = scmp.lt.s32.totalorder %s20_s13, %s20_s13 }
   0x8   :  { %p1038_p3 = scmp.ne.s32.totalorder %s20_s13, %s1037_s21  ;;  %p1043_p5 = scmp.lt.s32.totalorder %s1037_s21, %s1037_s21 }
   0xa   :  { %p1044_p6 = por %p1043_p5, %p1042_p4 }
   0xc   :  { %p1045_p7 = pnand %p1044_p6, %p1038_p3 }
   0xe   :  { %1048 = shalt.err (!%p1045_p7)
}
   0xf   :  { %22 = dma.hbm_to_vmem [thread:$0]  %s1432_s2, 96, %s20_s13, [#allocation3]  }
  0x10   :  { %1049 = dma.done.wait [#allocation3], 96  }
  0x11   :  { %1050 = vsyncadd [#allocation3], 4294967200  ;;  %v883_v0 = vld [vmem:[%s1431_s1 + $0x4] ss:$24 sps:$4 sm:$0xff]   ;;  %v885_v1 = vld [vmem:[%s1431_s1] ss:$24 sps:$4 sm:$0xff]  }
  0x12   :  { %640 = vmatprep.subr.bf16.mxu0 %v883_v0  ;;  %v886_v2 = vld [vmem:[%s1431_s1 + $0x34] ss:$24 sps:$4 sm:$0xff]   ;;  %v888_v3 = vld [vmem:[%s1431_s1 + $0x30] ss:$24 sps:$4 sm:$0xff]   ;;  %v889_v4 = vld [vmem:[%s1431_s1 + $0x64] ss:$24 sps:$4 sm:$0xff]  }
  0x13   :  { %641 = vmatpush1.bf16.msra.mxu0 %v885_v1  ;;  %v891_v5 = vld [vmem:[%s1431_s1 + $0x60] ss:$24 sps:$4 sm:$0xff]   ;;  %v892_v6 = vld [vmem:[%s1431_s1 + $0x94] ss:$24 sps:$4 sm:$0xff]   ;;  %v894_v7 = vld [vmem:[%s1431_s1 + $0x90] ss:$24 sps:$4 sm:$0xff]  }
  0x14   :  { %642 = vmatprep.subr.bf16.mxu0 %v886_v2  ;;  %v895_v8 = vld [vmem:[%s1431_s1 + $0xc4] ss:$24 sps:$4 sm:$0xff]   ;;  %v897_v9 = vld [vmem:[%s1431_s1 + $0xc0] ss:$24 sps:$4 sm:$0xff]   ;;  %v898_v10 = vld [vmem:[%s1431_s1 + $0xf4] ss:$24 sps:$4 sm:$0xff]  }
  0x15   :  { %v900_v11 = vld [vmem:[%s1431_s1 + $0xf0] ss:$24 sps:$4 sm:$0xff]   ;;  %v901_v12 = vld [vmem:[%s1431_s1 + $0x124] ss:$24 sps:$4 sm:$0xff]   ;;  %v903_v16 = vld [vmem:[%s1431_s1 + $0x120] ss:$24 sps:$4 sm:$0xff]  }
  0x16   :  { %v931_v13 = vld [vmem:[%s1431_s1 + $0xc] ss:$24 sps:$4 sm:$0xff]   ;;  %v933_v14 = vld [vmem:[%s1431_s1 + $0x8] ss:$24 sps:$4 sm:$0xff]   ;;  %v29_v17 = vld [vmem:[%s1430_s0 + $0x18] sm:$0xff] }
  0x17   :  { %643 = vmatpush1.bf16.msra.mxu0 %v888_v3  ;;  %v27_v15 = vld [vmem:[%s1430_s0 + $0x8] sm:$0xff]  ;;  %683 = vmatprep.subr.bf16.mxu1 %v931_v13  ;;  %v937_v20 = vld [vmem:[%s1431_s1 + $0x3c] ss:$24 sps:$4 sm:$0xff]   ;;  %v939_v21 = vld [vmem:[%s1431_s1 + $0x38] ss:$24 sps:$4 sm:$0xff]  }
  0x18   :  { %644 = vmatprep.subr.bf16.mxu0 %v889_v4  ;;  %v904_v18 = vld [vmem:[%s1431_s1 + $0x154] ss:$24 sps:$4 sm:$0xff]   ;;  %v1141_v19 = vpack.c.bf16 %v29_v17, %v27_v15  ;;  %684 = vmatpush1.bf16.msra.mxu1 %v933_v14  ;;  %v906_v22 = vld [vmem:[%s1431_s1 + $0x150] ss:$24 sps:$4 sm:$0xff]   ;;  %v907_v23 = vld [vmem:[%s1431_s1 + $0x184] ss:$24 sps:$4 sm:$0xff]  }
  0x19   :  { %685 = vmatprep.subr.bf16.mxu1 %v937_v20  ;;  %v943_v24 = vld [vmem:[%s1431_s1 + $0x6c] ss:$24 sps:$4 sm:$0xff]   ;;  %v945_v25 = vld [vmem:[%s1431_s1 + $0x68] ss:$24 sps:$4 sm:$0xff]   ;;  %v949_v27 = vld [vmem:[%s1431_s1 + $0x9c] ss:$24 sps:$4 sm:$0xff]  }
  0x1a   :  { %672 = vmatprep.mubr.bf16.mxu0 %v1141_v19  ;;  %715 = vmatprep.mubr.bf16.mxu1 %v1141_v19  ;;  %v909_v26 = vld [vmem:[%s1431_s1 + $0x180] ss:$24 sps:$4 sm:$0xff]   ;;  %v910_v28 = vld [vmem:[%s1431_s1 + $0x1b4] ss:$24 sps:$4 sm:$0xff]   ;;  %v912_v31 = vld [vmem:[%s1431_s1 + $0x1b0] ss:$24 sps:$4 sm:$0xff]  }
  0x1b   :  { %645 = vmatpush1.bf16.msra.mxu0 %v891_v5  ;;  %v951_v29 = vld [vmem:[%s1431_s1 + $0x98] ss:$24 sps:$4 sm:$0xff]   ;;  %v955_v30 = vld [vmem:[%s1431_s1 + $0xcc] ss:$24 sps:$4 sm:$0xff]   ;;  %v957_v33 = vld [vmem:[%s1431_s1 + $0xc8] ss:$24 sps:$4 sm:$0xff]  }
  0x1c   :  { %646 = vmatprep.subr.bf16.mxu0 %v892_v6  ;;  %686 = vmatpush1.bf16.msra.mxu1 %v939_v21  ;;  %v913_v32 = vld [vmem:[%s1431_s1 + $0x1e4] ss:$24 sps:$4 sm:$0xff]   ;;  %v915_v35 = vld [vmem:[%s1431_s1 + $0x1e0] ss:$24 sps:$4 sm:$0xff]   ;;  %v916_v36 = vld [vmem:[%s1431_s1 + $0x214] ss:$24 sps:$4 sm:$0xff]  }
  0x1d   :  { %687 = vmatprep.subr.bf16.mxu1 %v943_v24  ;;  %v961_v34 = vld [vmem:[%s1431_s1 + $0xfc] ss:$24 sps:$4 sm:$0xff]   ;;  %v963_v37 = vld [vmem:[%s1431_s1 + $0xf8] ss:$24 sps:$4 sm:$0xff]   ;;  %v967_v38 = vld [vmem:[%s1431_s1 + $0x12c] ss:$24 sps:$4 sm:$0xff]  }
  0x1e   :  { %v918_v39 = vld [vmem:[%s1431_s1 + $0x210] ss:$24 sps:$4 sm:$0xff]   ;;  %v919_v40 = vld [vmem:[%s1431_s1 + $0x244] ss:$24 sps:$4 sm:$0xff]   ;;  %v921_v43 = vld [vmem:[%s1431_s1 + $0x240] ss:$24 sps:$4 sm:$0xff]  }
  0x1f   :  { %647 = vmatpush1.bf16.msra.mxu0 %v894_v7  ;;  %v969_v41 = vld [vmem:[%s1431_s1 + $0x128] ss:$24 sps:$4 sm:$0xff]   ;;  %v973_v42 = vld [vmem:[%s1431_s1 + $0x15c] ss:$24 sps:$4 sm:$0xff]   ;;  %v975_v45 = vld [vmem:[%s1431_s1 + $0x158] ss:$24 sps:$4 sm:$0xff]  }
  0x20   :  { %648 = vmatprep.subr.bf16.mxu0 %v895_v8  ;;  %688 = vmatpush1.bf16.msra.mxu1 %v945_v25  ;;  %v922_v44 = vld [vmem:[%s1431_s1 + $0x274] ss:$24 sps:$4 sm:$0xff]   ;;  %v924_v47 = vld [vmem:[%s1431_s1 + $0x270] ss:$24 sps:$4 sm:$0xff]   ;;  %v925_v48 = vld [vmem:[%s1431_s1 + $0x2a4] ss:$24 sps:$4 sm:$0xff]  }
  0x21   :  { %689 = vmatprep.subr.bf16.mxu1 %v949_v27  ;;  %v979_v46 = vld [vmem:[%s1431_s1 + $0x18c] ss:$24 sps:$4 sm:$0xff]   ;;  %v981_v49 = vld [vmem:[%s1431_s1 + $0x188] ss:$24 sps:$4 sm:$0xff]   ;;  %v985_v50 = vld [vmem:[%s1431_s1 + $0x1bc] ss:$24 sps:$4 sm:$0xff]  }
  0x22   :  { %v927_v51 = vld [vmem:[%s1431_s1 + $0x2a0] ss:$24 sps:$4 sm:$0xff]   ;;  %v928_v52 = vld [vmem:[%s1431_s1 + $0x2d4] ss:$24 sps:$4 sm:$0xff]   ;;  %v930_v54 = vld [vmem:[%s1431_s1 + $0x2d0] ss:$24 sps:$4 sm:$0xff]  }
  0x23   :  { %649 = vmatpush1.bf16.msra.mxu0 %v897_v9  ;;  %v987_v53 = vld [vmem:[%s1431_s1 + $0x1b8] ss:$24 sps:$4 sm:$0xff]   ;;  %v991_v55 = vld [vmem:[%s1431_s1 + $0x1ec] ss:$24 sps:$4 sm:$0xff]   ;;  %v993_v59 = vld [vmem:[%s1431_s1 + $0x1e8] ss:$24 sps:$4 sm:$0xff]  }
  0x24   :  { %650 = vmatprep.subr.bf16.mxu0 %v898_v10  ;;  %690 = vmatpush1.bf16.msra.mxu1 %v951_v29  ;;  %v26_v56 = vld [vmem:[%s1430_s0] sm:$0xff]  ;;  %v28_v57 = vld [vmem:[%s1430_s0 + $0x10] sm:$0xff] }
  0x25   :  { %691 = vmatprep.subr.bf16.mxu1 %v955_v30  ;;  %v936_v58 = vld [vmem:[%s1431_s1 + $0x14] ss:$24 sps:$4 sm:$0xff]   ;;  %v1265_v60 = vpack.c.bf16 %v28_v57, %v26_v56  ;;  %v934_v62 = vld [vmem:[%s1431_s1 + $0x10] ss:$24 sps:$4 sm:$0xff]   ;;  %v942_v63 = vld [vmem:[%s1431_s1 + $0x44] ss:$24 sps:$4 sm:$0xff]  }
  0x26   :  { %v997_v61 = vld [vmem:[%s1431_s1 + $0x21c] ss:$24 sps:$4 sm:$0xff]   ;;  %v999_v0 = vld [vmem:[%s1431_s1 + $0x218] ss:$24 sps:$4 sm:$0xff]   ;;  %v1003_v1 = vld [vmem:[%s1431_s1 + $0x24c] ss:$24 sps:$4 sm:$0xff]  }
  0x27   :  { %651 = vmatpush1.bf16.msra.mxu0 %v900_v11  ;;  %v940_v2 = vld [vmem:[%s1431_s1 + $0x40] ss:$24 sps:$4 sm:$0xff]   ;;  %v948_v3 = vld [vmem:[%s1431_s1 + $0x74] ss:$24 sps:$4 sm:$0xff]   ;;  %v946_v6 = vld [vmem:[%s1431_s1 + $0x70] ss:$24 sps:$4 sm:$0xff]  }
  0x28   :  { %652 = vmatprep.subr.bf16.mxu0 %v901_v12  ;;  %692 = vmatpush1.bf16.msra.mxu1 %v957_v33  ;;  %v1005_v4 = vld [vmem:[%s1431_s1 + $0x248] ss:$24 sps:$4 sm:$0xff]   ;;  %v1009_v5 = vld [vmem:[%s1431_s1 + $0x27c] ss:$24 sps:$4 sm:$0xff]   ;;  %v1011_v8 = vld [vmem:[%s1431_s1 + $0x278] ss:$24 sps:$4 sm:$0xff]  }
  0x29   :  { %693 = vmatprep.subr.bf16.mxu1 %v961_v34  ;;  %v954_v7 = vld [vmem:[%s1431_s1 + $0xa4] ss:$24 sps:$4 sm:$0xff]   ;;  %v952_v10 = vld [vmem:[%s1431_s1 + $0xa0] ss:$24 sps:$4 sm:$0xff]   ;;  %v960_v11 = vld [vmem:[%s1431_s1 + $0xd4] ss:$24 sps:$4 sm:$0xff]  }
  0x2a   :  { %v1015_v9 = vld [vmem:[%s1431_s1 + $0x2ac] ss:$24 sps:$4 sm:$0xff]   ;;  %v1017_v12 = vld [vmem:[%s1431_s1 + $0x2a8] ss:$24 sps:$4 sm:$0xff]   ;;  %v1021_v13 = vld [vmem:[%s1431_s1 + $0x2dc] ss:$24 sps:$4 sm:$0xff]  }
  0x2b   :  { %653 = vmatpush1.bf16.msra.mxu0 %v903_v16  ;;  %v958_v14 = vld [vmem:[%s1431_s1 + $0xd0] ss:$24 sps:$4 sm:$0xff]   ;;  %v966_v15 = vld [vmem:[%s1431_s1 + $0x104] ss:$24 sps:$4 sm:$0xff]   ;;  %v964_v17 = vld [vmem:[%s1431_s1 + $0x100] ss:$24 sps:$4 sm:$0xff]  }
  0x2c   :  { %654 = vmatprep.subr.bf16.mxu0 %v904_v18  ;;  %694 = vmatpush1.bf16.msra.mxu1 %v963_v37  ;;  %v1023_v16 = vld [vmem:[%s1431_s1 + $0x2d8] ss:$24 sps:$4 sm:$0xff]   ;;  %v972_v18 = vld [vmem:[%s1431_s1 + $0x134] ss:$24 sps:$4 sm:$0xff]   ;;  %v978_v20 = vld [vmem:[%s1431_s1 + $0x164] ss:$24 sps:$4 sm:$0xff]  }
  0x2d   :  { %695 = vmatprep.subr.bf16.mxu1 %v967_v38  ;;  %v976_v21 = vld [vmem:[%s1431_s1 + $0x160] ss:$24 sps:$4 sm:$0xff]   ;;  %v990_v24 = vld [vmem:[%s1431_s1 + $0x1c4] ss:$24 sps:$4 sm:$0xff]   ;;  %v994_v27 = vld [vmem:[%s1431_s1 + $0x1f0] ss:$24 sps:$4 sm:$0xff]   ;;  %v130_v38 = vlaneseq }
  0x2e   :  { %v988_v25 = vld [vmem:[%s1431_s1 + $0x1c0] ss:$24 sps:$4 sm:$0xff]   ;;  %v1008_v30 = vld [vmem:[%s1431_s1 + $0x254] ss:$24 sps:$4 sm:$0xff]  }
  0x2f   :  { %655 = vmatpush1.bf16.msra.mxu0 %v906_v22  ;;  %v984_v22 = vld [vmem:[%s1431_s1 + $0x194] ss:$24 sps:$4 sm:$0xff]   ;;  %v1000_v29 = vld [vmem:[%s1431_s1 + $0x220] ss:$24 sps:$4 sm:$0xff]  }
  0x30   :  { %656 = vmatprep.subr.bf16.mxu0 %v907_v23  ;;  %696 = vmatpush1.bf16.msra.mxu1 %v969_v41  ;;  %v982_v23 = vld [vmem:[%s1431_s1 + $0x190] ss:$24 sps:$4 sm:$0xff]   ;;  %v1012_v33 = vld [vmem:[%s1431_s1 + $0x280] ss:$24 sps:$4 sm:$0xff]   ;;  %v1020_v34 = vld [vmem:[%s1431_s1 + $0x2b4] ss:$24 sps:$4 sm:$0xff]  }
  0x31   :  { %697 = vmatprep.subr.bf16.mxu1 %v973_v42  ;;  %v1024_v37 = vld [vmem:[%s1431_s1 + $0x2e0] ss:$24 sps:$4 sm:$0xff]  }
  0x32   :  { %v128_v41 = vld [vmem:[#allocation2] sm:$0x3f] }
  0x33   :  { %657 = vmatpush1.bf16.msra.mxu0 %v909_v26  ;;  %v996_v26 = vld [vmem:[%s1431_s1 + $0x1f4] ss:$24 sps:$4 sm:$0xff]  }
  0x34   :  { %658 = vmatprep.subr.bf16.mxu0 %v910_v28  ;;  %698 = vmatpush1.bf16.msra.mxu1 %v975_v45  ;;  %v1002_v28 = vld [vmem:[%s1431_s1 + $0x224] ss:$24 sps:$4 sm:$0xff]  }
  0x35   :  { %699 = vmatprep.subr.bf16.mxu1 %v979_v46 }
  0x37   :  { %659 = vmatpush1.bf16.msra.mxu0 %v912_v31  ;;  %v1006_v31 = vld [vmem:[%s1431_s1 + $0x250] ss:$24 sps:$4 sm:$0xff]  }
  0x38   :  { %660 = vmatprep.subr.bf16.mxu0 %v913_v32  ;;  %700 = vmatpush1.bf16.msra.mxu1 %v981_v49  ;;  %v1014_v32 = vld [vmem:[%s1431_s1 + $0x284] ss:$24 sps:$4 sm:$0xff]  }
  0x39   :  { %701 = vmatprep.subr.bf16.mxu1 %v985_v50 }
  0x3b   :  { %661 = vmatpush1.bf16.msra.mxu0 %v915_v35  ;;  %v1018_v35 = vld [vmem:[%s1431_s1 + $0x2b0] ss:$24 sps:$4 sm:$0xff]  }
  0x3c   :  { %662 = vmatprep.subr.bf16.mxu0 %v916_v36  ;;  %702 = vmatpush1.bf16.msra.mxu1 %v987_v53  ;;  %v1026_v36 = vld [vmem:[%s1431_s1 + $0x2e4] ss:$24 sps:$4 sm:$0xff]  }
  0x3d   :  { %703 = vmatprep.subr.bf16.mxu1 %v991_v55 }
  0x3f   :  { %663 = vmatpush1.bf16.msra.mxu0 %v918_v39  ;;  %v131_v39 = vshrl.u32 %v130_v38, 7 }
  0x40   :  { %664 = vmatprep.subr.bf16.mxu0 %v919_v40  ;;  %704 = vmatpush1.bf16.msra.mxu1 %v993_v59 }
  0x41   :  { %705 = vmatprep.subr.bf16.mxu1 %v997_v61  ;;  %v132_v40 = vsub.s32 0, %v131_v39  ;;  %v136_v42 = vsub.s32 1, %v131_v39  ;;  %v140_v53 = vsub.s32 2, %v131_v39 }
  0x43   :  { %665 = vmatpush1.bf16.msra.mxu0 %v921_v43  ;;  %v133_v43 = vrot.slane %v128_v41, %v132_v40  ;;  %v141_v55 = vrot.slane %v128_v41, %v140_v53 }
  0x44   :  { %666 = vmatprep.subr.bf16.mxu0 %v922_v44  ;;  %706 = vmatpush1.bf16.msra.mxu1 %v999_v0  ;;  %v137_v44 = vrot.slane %v128_v41, %v136_v42 }
  0x45   :  { %707 = vmatprep.subr.bf16.mxu1 %v1003_v1  ;;  %v148_v1 = vsub.s32 4, %v131_v39 }
  0x47   :  { %667 = vmatpush1.bf16.msra.mxu0 %v924_v47 }
  0x48   :  { %668 = vmatprep.subr.bf16.mxu0 %v925_v48  ;;  %708 = vmatpush1.bf16.msra.mxu1 %v1005_v4 }
  0x49   :  { %709 = vmatprep.subr.bf16.mxu1 %v1009_v5 }
  0x4b   :  { %669 = vmatpush1.bf16.msra.mxu0 %v927_v51 }
  0x4c   :  { %670 = vmatprep.subr.bf16.mxu0 %v928_v52  ;;  %710 = vmatpush1.bf16.msra.mxu1 %v1011_v8 }
  0x4d   :  { %711 = vmatprep.subr.bf16.mxu1 %v1015_v9 }
  0x4f   :  { %671 = vmatpush1.bf16.msra.mxu0 %v930_v54  ;;  %v144_v54 = vsub.s32 3, %v131_v39 }
  0x50   :  { %726 = vmatprep.subr.bf16.mxu0 %v936_v58  ;;  %712 = vmatpush1.bf16.msra.mxu1 %v1017_v12 }
  0x51   :  { %713 = vmatprep.subr.bf16.mxu1 %v1021_v13  ;;  %v145_v56 = vrot.slane %v128_v41, %v144_v54 }
  0x52   :  { %673 = vmatmul.mubr.bf16.vlgmr.msra.gmra.mrb[0].mxu0 %v1265_v60 }
  0x53   :  { %727 = vmatpush1.bf16.msra.mxu0 %v934_v62  ;;  %758 = vmatprep.mubr.bf16.mxu0 %v1141_v19  ;;  %v970_v19 = vld [vmem:[%s1431_s1 + $0x130] ss:$24 sps:$4 sm:$0xff]  }
  0x54   :  { %728 = vmatprep.subr.bf16.mxu0 %v942_v63  ;;  %714 = vmatpush1.bf16.msra.mxu1 %v1023_v16 }
  0x57   :  { %729 = vmatpush1.bf16.msra.mxu0 %v940_v2  ;;  %716 = vmatmul.mubr.bf16.vlgmr.msra.gmra.mrb[0].mxu1 %v1265_v60  ;;  %v152_v2 = vsub.s32 5, %v131_v39 }
  0x58   :  { %730 = vmatprep.subr.bf16.mxu0 %v948_v3  ;;  %v149_v3 = vrot.slane %v128_v41, %v148_v1 }
  0x59   :  { %v153_v4 = vrot.slane %v128_v41, %v152_v2 }
  0x5b   :  { %731 = vmatpush1.bf16.msra.mxu0 %v946_v6 }
  0x5c   :  { %732 = vmatprep.subr.bf16.mxu0 %v954_v7 }
  0x5f   :  { %733 = vmatpush1.bf16.msra.mxu0 %v952_v10 }
  0x60   :  { %734 = vmatprep.subr.bf16.mxu0 %v960_v11 }
  0x63   :  { %735 = vmatpush1.bf16.msra.mxu0 %v958_v14 }
  0x64   :  { %736 = vmatprep.subr.bf16.mxu0 %v966_v15 }
  0x67   :  { %737 = vmatpush1.bf16.msra.mxu0 %v964_v17 }
  0x68   :  { %738 = vmatprep.subr.bf16.mxu0 %v972_v18 }
  0x6b   :  { %739 = vmatpush1.bf16.msra.mxu0 %v970_v19 }
  0x6c   :  { %740 = vmatprep.subr.bf16.mxu0 %v978_v20 }
  0x6f   :  { %741 = vmatpush1.bf16.msra.mxu0 %v976_v21 }
  0x70   :  { %742 = vmatprep.subr.bf16.mxu0 %v984_v22 }
  0x73   :  { %743 = vmatpush1.bf16.msra.mxu0 %v982_v23 }
  0x74   :  { %744 = vmatprep.subr.bf16.mxu0 %v990_v24 }
  0x77   :  { %745 = vmatpush1.bf16.msra.mxu0 %v988_v25 }
  0x78   :  { %746 = vmatprep.subr.bf16.mxu0 %v996_v26 }
  0x7b   :  { %747 = vmatpush1.bf16.msra.mxu0 %v994_v27 }
  0x7c   :  { %748 = vmatprep.subr.bf16.mxu0 %v1002_v28 }
  0x7f   :  { %749 = vmatpush1.bf16.msra.mxu0 %v1000_v29 }
  0x80   :  { %750 = vmatprep.subr.bf16.mxu0 %v1008_v30 }
  0x83   :  { %751 = vmatpush1.bf16.msra.mxu0 %v1006_v31 }
  0x84   :  { %752 = vmatprep.subr.bf16.mxu0 %v1014_v32 }
  0x87   :  { %753 = vmatpush1.bf16.msra.mxu0 %v1012_v33 }
  0x88   :  { %754 = vmatprep.subr.bf16.mxu0 %v1020_v34 }
  0x8b   :  { %755 = vmatpush1.bf16.msra.mxu0 %v1018_v35 }
  0x8c   :  { %756 = vmatprep.subr.bf16.mxu0 %v1026_v36 }
  0x8f   :  { %757 = vmatpush1.bf16.msra.mxu0 %v1024_v37 }
  0x92   :  { %759 = vmatmul.mubr.bf16.vlgmr.msra.gmra.mrb[4].mxu0 %v1265_v60 }
 0x125   :  { %v674_v45 = vpop.f32.mrb[0].mxu0 }
 0x126   :  { %v675_v46 = vadd.f32 %v674_v45, %v133_v43  ;;  %v676_v47 = vpop.f32.mrb[1].mxu0 }
 0x127   :  { %v677_v48 = vadd.f32 %v676_v47, %v137_v44  ;;  %v678_v49 = vpop.f32.mrb[2].mxu0 }
 0x128   :  { %769 = vst [vmem:[%s1433_s3] sm:$0xff] %v675_v46  ;;  %v679_v50 = vadd.f32 %v678_v49, %v133_v43  ;;  %v680_v51 = vpop.f32.mrb[3].mxu0 }
 0x129   :  { %770 = vst [vmem:[%s1433_s3 + $0x8] sm:$0xff] %v677_v48  ;;  %v681_v52 = vadd.f32 %v680_v51, %v137_v44 }
 0x12a   :  { %775 = vst [vmem:[%s1433_s3 + $0x30] sm:$0xff] %v679_v50  ;;  %v717_v57 = vpop.f32.mrb[0].mxu1 }
 0x12b   :  { %776 = vst [vmem:[%s1433_s3 + $0x38] sm:$0xff] %v681_v52  ;;  %v718_v58 = vadd.f32 %v717_v57, %v141_v55  ;;  %v719_v59 = vpop.f32.mrb[1].mxu1 }
 0x12c   :  { %v720_v60 = vadd.f32 %v719_v59, %v145_v56  ;;  %v721_v61 = vpop.f32.mrb[2].mxu1 }
 0x12d   :  { %771 = vst [vmem:[%s1433_s3 + $0x10] sm:$0xff] %v718_v58  ;;  %v722_v62 = vadd.f32 %v721_v61, %v141_v55  ;;  %v723_v63 = vpop.f32.mrb[3].mxu1 }
 0x12e   :  { %772 = vst [vmem:[%s1433_s3 + $0x18] sm:$0xff] %v720_v60  ;;  %v724_v0 = vadd.f32 %v723_v63, %v145_v56 }
 0x12f   :  { %777 = vst [vmem:[%s1433_s3 + $0x40] sm:$0xff] %v722_v62 }
 0x130   :  { %778 = vst [vmem:[%s1433_s3 + $0x48] sm:$0xff] %v724_v0 }
 0x165   :  { %v760_v5 = vpop.f32.mrb[4].mxu0 }
 0x166   :  { %v761_v6 = vadd.f32 %v760_v5, %v149_v3  ;;  %v762_v7 = vpop.f32.mrb[5].mxu0 }
 0x167   :  { %v763_v8 = vadd.f32 %v762_v7, %v153_v4  ;;  %v764_v9 = vpop.f32.mrb[6].mxu0 }
 0x168   :  { %773 = vst [vmem:[%s1433_s3 + $0x20] sm:$0xff] %v761_v6  ;;  %v765_v10 = vadd.f32 %v764_v9, %v149_v3  ;;  %v766_v11 = vpop.f32.mrb[7].mxu0 }
 0x169   :  { %774 = vst [vmem:[%s1433_s3 + $0x28] sm:$0xff] %v763_v8  ;;  %v767_v12 = vadd.f32 %v766_v11, %v153_v4 }
 0x16a   :  { %779 = vst [vmem:[%s1433_s3 + $0x50] sm:$0xff] %v765_v10 }
 0x16b   :  { %780 = vst [vmem:[%s1433_s3 + $0x58] sm:$0xff] %v767_v12 }
 0x16c   :  { %785 = vsyncpa [#allocation3], 1 }

// kernel: forward.9
= control target key start
LH: loop header
LB: loop body
LE: loop exit
PB: predicated region body
PF: predicated region fallthrough
CT: control target
= control target key end

     0   :  { %v41_v0 = vlaneseq  ;;  %v2869_v1 = vmov 1983009808   ;;  %vm48_vm0 = vcmask 1041408   ;;  %v2870_v12 = vmov 0   ;;  %s4527_s0 = inlined_call_operand.vmem [shape: f32[2,256], index: 0, kind: input, shape index: {}]   ;;  %s4528_s1 = inlined_call_operand.vmem [shape: f32[2,1], index: 1, kind: input, shape index: {}]   ;;  %s4529_s2 = inlined_call_operand.vmem [shape: f32[1,256], index: 2, kind: input, shape index: {}]   ;;  %s4530_s3 = inlined_call_operand.vmem [shape: f32[1,256], index: 3, kind: input, shape index: {}]   ;;  %s4531_s7 = inlined_call_operand.vmem [shape: bf16[256,1536], index: 7, kind: input, shape index: {}]   ;;  %s4532_s4 = inlined_call_operand.vmem [shape: f32[1,256], index: 4, kind: input, shape index: {}]   ;;  %s4533_s5 = inlined_call_operand.vmem [shape: f32[1,256], index: 5, kind: input, shape index: {}]   ;;  %s4534_s6 = inlined_call_operand.vmem [shape: bf16[3,256], index: 6, kind: input, shape index: {}]   ;;  %s4535_s8 = inlined_call_operand.vmem [shape: f32[1,1536], index: 8, kind: input, shape index: {}]   ;;  %s4536_s9 = inlined_call_operand.vmem [shape: f32[2,3,1536], index: 9, kind: output, shape index: {}]  }
   0x1   :  { %v39_v2 = vunpack.c.l.s4 %v2869_v1  ;;  %v36_v5 = vld [vmem:[%s4527_s0] sm:$0xf]  ;;  %2555 = vset.pattern.permute.xlu1 %v2870_v12  ;;  %2556 = vset.pattern.permute.xlu0 %v2870_v12  ;;  %v2871_v14 = vmov 269488144   ;;  %v2557_v56 = vld [vmem:[%s4531_s7 + $0x4] ss:$48 sps:$4 sm:$0xff]  }
   0x2   :  { %v2923_v3 = vshrl.u32 %v41_v0, 7  ;;  %v136_v13 = vld [vmem:[%s4528_s1] sm:$0x3]  ;;  %v58_v15 = vunpack.c.l.s4 %v2871_v14  ;;  %v2559_v57 = vld [vmem:[%s4531_s7 + $0xc] ss:$48 sps:$4 sm:$0xff]   ;;  %1521 = vmatprep.subr.bf16.mxu0 %v2557_v56 }
   0x3   :  { %v40_v4 = vunpack.c.0.s8 %v39_v2  ;;  %139 = vperm.xlu1 %2555, %v136_v13   ;;  %v96_v33 = vld [vmem:[%s4529_s2] sm:$0x3]  ;;  %v2562_v59 = vld [vmem:[%s4531_s7 + $0x8] ss:$48 sps:$4 sm:$0xff]   ;;  %1562 = vmatprep.subr.bf16.mxu1 %v2559_v57  ;;  %v2563_v60 = vld [vmem:[%s4531_s7 + $0x64] ss:$48 sps:$4 sm:$0xff]  }
   0x4   :  { %v59_v16 = vunpack.c.0.s8 %v58_v15  ;;  %v2945_v31 = vsub.s32 0, %v2923_v3  ;;  %v2948_v32 = vsub.s32 1, %v2923_v3  ;;  %v116_v34 = vld [vmem:[%s4530_s3] sm:$0x3]  ;;  %1563 = vmatpush1.bf16.msra.mxu1 %v2562_v59  ;;  %v2565_v61 = vld [vmem:[%s4531_s7 + $0x6c] ss:$48 sps:$4 sm:$0xff]  }
   0x5   :  { %v2929_v6 = vsub.s32 %v40_v4, %v2923_v3  ;;  %v2561_v58 = vld [vmem:[%s4531_s7] ss:$48 sps:$4 sm:$0xff]   ;;  %v2568_v63 = vld [vmem:[%s4531_s7 + $0x68] ss:$48 sps:$4 sm:$0xff]   ;;  %1564 = vmatprep.subr.bf16.mxu1 %v2565_v61  ;;  %v2569_v0 = vld [vmem:[%s4531_s7 + $0xc4] ss:$48 sps:$4 sm:$0xff]  }
   0x6   :  { %v2938_v17 = vsub.s32 %v59_v16, %v2923_v3  ;;  %4657 = vst [vmem:[#allocation3_spill] sm:$0xff] %v2945_v31  ;;  %4658 = vst [vmem:[#allocation4_spill] sm:$0xff] %v2948_v32  ;;  %v101_v35 = vrot.slane %v96_v33, %v2945_v31  ;;  %v105_v36 = vrot.slane %v96_v33, %v2948_v32  ;;  %1522 = vmatpush1.bf16.msra.mxu0 %v2561_v58  ;;  %v2567_v62 = vld [vmem:[%s4531_s7 + $0x60] ss:$48 sps:$4 sm:$0xff]   ;;  %v2571_v1 = vld [vmem:[%s4531_s7 + $0xcc] ss:$48 sps:$4 sm:$0xff]  }
   0x7   :  { %v44_v7 = vrot.slane %v36_v5, %v2929_v6  ;;  %v121_v37 = vrot.slane %v116_v34, %v2945_v31  ;;  %v125_v38 = vrot.slane %v116_v34, %v2948_v32  ;;  %1523 = vmatprep.subr.bf16.mxu0 %v2563_v60  ;;  %v2573_v2 = vld [vmem:[%s4531_s7 + $0xc0] ss:$48 sps:$4 sm:$0xff]   ;;  %v2574_v4 = vld [vmem:[%s4531_s7 + $0xc8] ss:$48 sps:$4 sm:$0xff]   ;;  %v2587_v14 = vld [vmem:[%s4531_s7 + $0x1e4] ss:$48 sps:$4 sm:$0xff]  }
   0x8   :  { %v106_v39 = vcombine.low %v101_v35, %v105_v36  ;;  %1565 = vmatpush1.bf16.msra.mxu1 %v2568_v63  ;;  %v2585_v12 = vld [vmem:[%s4531_s7 + $0x180] ss:$48 sps:$4 sm:$0xff]   ;;  %v2586_v13 = vld [vmem:[%s4531_s7 + $0x188] ss:$48 sps:$4 sm:$0xff]   ;;  %v2589_v15 = vld [vmem:[%s4531_s7 + $0x1ec] ss:$48 sps:$4 sm:$0xff]  }
   0x9   :  { %v45_v8 = vcombine.high %v44_v7, %v44_v7  ;;  %v49_v9 = vsel %vm48_vm0, %v44_v7, 0.0  ;;  %v126_v40 = vcombine.low %v121_v37, %v125_v38  ;;  %1566 = vmatprep.subr.bf16.mxu1 %v2571_v1  ;;  %v2577_v7 = vld [vmem:[%s4531_s7 + $0x12c] ss:$48 sps:$4 sm:$0xff]   ;;  %v3062_v35 = vld [vmem:[%s4531_s7 + $0x244] ss:$48 sps:$4 sm:$0xff]  }
   0xa   :  { %v113_v42 = vrot.slane %v106_v39, %v2929_v6  ;;  %1524 = vmatpush1.bf16.msra.mxu0 %v2567_v62  ;;  %v3067_v36 = vld [vmem:[%s4531_s7 + $0x24c] ss:$48 sps:$4 sm:$0xff]   ;;  %v3072_v37 = vld [vmem:[%s4531_s7 + $0x240] ss:$48 sps:$4 sm:$0xff]   ;;  %v3077_v38 = vld [vmem:[%s4531_s7 + $0x248] ss:$48 sps:$4 sm:$0xff]  }
   0xb   :  { %v50_v10 = vsel %vm48_vm0, %v45_v8, 0.0  ;;  %v133_v45 = vrot.slane %v126_v40, %v2929_v6  ;;  %1525 = vmatprep.subr.bf16.mxu0 %v2569_v0  ;;  %v2579_v8 = vld [vmem:[%s4531_s7 + $0x120] ss:$48 sps:$4 sm:$0xff]   ;;  %v3086_v39 = vld [vmem:[%s4531_s7 + $0x2a4] ss:$48 sps:$4 sm:$0xff]  }
   0xc   :  { %v51_v11 = vadd.f32 %v50_v10, %v49_v9  ;;  %1567 = vmatpush1.bf16.msra.mxu1 %v2574_v4  ;;  %v2580_v9 = vld [vmem:[%s4531_s7 + $0x128] ss:$48 sps:$4 sm:$0xff]   ;;  %v2581_v10 = vld [vmem:[%s4531_s7 + $0x184] ss:$48 sps:$4 sm:$0xff]   ;;  %v3091_v40 = vld [vmem:[%s4531_s7 + $0x2ac] ss:$48 sps:$4 sm:$0xff]  }
   0xd   :  { %1568 = vmatprep.subr.bf16.mxu1 %v2577_v7  ;;  %v3187_v56 = vld [vmem:[%s4531_s7 + $0x42c] ss:$48 sps:$4 sm:$0xff]   ;;  %v3192_v57 = vld [vmem:[%s4531_s7 + $0x420] ss:$48 sps:$4 sm:$0xff]   ;;  %v3197_v58 = vld [vmem:[%s4531_s7 + $0x428] ss:$48 sps:$4 sm:$0xff]  }
   0xe   :  { %52 = vadd.xlane.f32.xlu0 %v51_v11  ;;  %1526 = vmatpush1.bf16.msra.mxu0 %v2573_v2  ;;  %v2583_v11 = vld [vmem:[%s4531_s7 + $0x18c] ss:$48 sps:$4 sm:$0xff]   ;;  %v3206_v59 = vld [vmem:[%s4531_s7 + $0x484] ss:$48 sps:$4 sm:$0xff]   ;;  %v3216_v61 = vld [vmem:[%s4531_s7 + $0x480] ss:$48 sps:$4 sm:$0xff]  }
   0xf   :  { %v3211_v60 = vld [vmem:[%s4531_s7 + $0x48c] ss:$48 sps:$4 sm:$0xff]   ;;  %v3221_v62 = vld [vmem:[%s4531_s7 + $0x488] ss:$48 sps:$4 sm:$0xff]   ;;  %v3230_v63 = vld [vmem:[%s4531_s7 + $0x4e4] ss:$48 sps:$4 sm:$0xff]  }
  0x10   :  { %1569 = vmatpush1.bf16.msra.mxu1 %v2580_v9  ;;  %v3235_v0 = vld [vmem:[%s4531_s7 + $0x4ec] ss:$48 sps:$4 sm:$0xff]   ;;  %v3240_v1 = vld [vmem:[%s4531_s7 + $0x4e0] ss:$48 sps:$4 sm:$0xff]   ;;  %v3245_v2 = vld [vmem:[%s4531_s7 + $0x4e8] ss:$48 sps:$4 sm:$0xff]  }
  0x11   :  { %1570 = vmatprep.subr.bf16.mxu1 %v2583_v11  ;;  %v3252_v4 = vld [vmem:[%s4531_s7 + $0x544] ss:$48 sps:$4 sm:$0xff]   ;;  %v3264_v7 = vld [vmem:[%s4531_s7 + $0x540] ss:$48 sps:$4 sm:$0xff]  }
  0x12   :  { %v3276_v9 = vld [vmem:[%s4531_s7 + $0x5a4] ss:$48 sps:$4 sm:$0xff]   ;;  %v3288_v11 = vld [vmem:[%s4531_s7 + $0x5a0] ss:$48 sps:$4 sm:$0xff]  }
  0x14   :  { %1571 = vmatpush1.bf16.msra.mxu1 %v2586_v13  ;;  %v3302_v13 = vld [vmem:[%s4531_s7 + $0x14] ss:$48 sps:$4 sm:$0xff]  }
  0x15   :  { %1572 = vmatprep.subr.bf16.mxu1 %v2589_v15  ;;  %4660 = vst [vmem:[#allocation6_spill] sm:$0xff] %v3302_v13 }
  0x82   :  { %v140_v44 = vpop.permute.xlu1 %139 }
  0x83   :  { %v147_v48 = vrot.slane %v140_v44, %v2938_v17  ;;  %v3115_v44 = vld [vmem:[%s4531_s7 + $0x30c] ss:$48 sps:$4 sm:$0xff]  }
  0x9b   :  { %v53_v18 = vpop.xlane.xlu0 %52 }
  0x9c   :  { %v55_v19 = vmul.f32 0.00390625, %v53_v18 }
  0x9e   :  { %v63_v20 = vrot.slane %v55_v19, %v2938_v17 }
  0xa0   :  { %v65_v21 = vsub.f32 %v36_v5, %v63_v20  ;;  %v2575_v5 = vld [vmem:[%s4531_s7 + $0x124] ss:$48 sps:$4 sm:$0xff]  }
  0xa1   :  { %1527 = vmatprep.subr.bf16.mxu0 %v2575_v5  ;;  %v3257_v5 = vld [vmem:[%s4531_s7 + $0x54c] ss:$48 sps:$4 sm:$0xff]  }
  0xa2   :  { %v66_v22 = vmul.f32 %v65_v21, %v65_v21  ;;  %1528 = vmatpush1.bf16.msra.mxu0 %v2579_v8  ;;  %v3269_v8 = vld [vmem:[%s4531_s7 + $0x548] ss:$48 sps:$4 sm:$0xff]  }
  0xa3   :  { %1529 = vmatprep.subr.bf16.mxu0 %v2581_v10  ;;  %v3281_v10 = vld [vmem:[%s4531_s7 + $0x5ac] ss:$48 sps:$4 sm:$0xff]  }
  0xa4   :  { %v74_v23 = vrot.slane %v66_v22, %v2929_v6 }
  0xa6   :  { %v75_v24 = vcombine.high %v74_v23, %v74_v23  ;;  %v78_v25 = vsel %vm48_vm0, %v74_v23, 0.0  ;;  %1530 = vmatpush1.bf16.msra.mxu0 %v2585_v12  ;;  %v3293_v12 = vld [vmem:[%s4531_s7 + $0x5a8] ss:$48 sps:$4 sm:$0xff]  }
  0xa7   :  { %1531 = vmatprep.subr.bf16.mxu0 %v2587_v14  ;;  %4659 = vst [vmem:[#allocation5_spill] sm:$0xff] %v3293_v12  ;;  %v3307_v14 = vld [vmem:[%s4531_s7 + $0x1c] ss:$48 sps:$4 sm:$0xff]  }
  0xa8   :  { %v79_v26 = vsel %vm48_vm0, %v75_v24, 0.0  ;;  %4661 = vst [vmem:[#allocation7_spill] sm:$0xff] %v3307_v14 }
  0xa9   :  { %v80_v27 = vadd.f32 %v79_v26, %v78_v25 }
  0xab   :  { %81 = vadd.xlane.f32.xlu0 %v80_v27  ;;  %v339_v27 = vld [vmem:[%s4531_s7 + $0x1e0] sm:$0xff] }
 0x138   :  { %v82_v28 = vpop.xlane.xlu0 %81 }
 0x139   :  { %v83_v29 = vmul.f32 0.00390625, %v82_v28  ;;  %v345_v28 = vld [vmem:[%s4531_s7 + $0x210] sm:$0xff] }
 0x13a   :  { %v3053_v33 = vcombine.low %v339_v27, %v345_v28 }
 0x13b   :  { %v84_v30 = vadd.f32 1e-05, %v83_v29  ;;  %v340_v29 = vld [vmem:[%s4531_s7 + $0x1e8] sm:$0xff] }
 0x13c   :  { %1532 = vmatpush1.bf16.msra.mxu0 %v3053_v33 }
 0x13d   :  { %2843 = vrsqrt.f32 %v84_v30  ;;  %v346_v30 = vld [vmem:[%s4531_s7 + $0x218] sm:$0xff]  ;;  %1533 = vmatprep.subr.bf16.mxu0 %v3062_v35 }
 0x13e   :  { %v3055_v34 = vcombine.low %v340_v29, %v346_v30 }
 0x140   :  { %1573 = vmatpush1.bf16.msra.mxu1 %v3055_v34  ;;  %1534 = vmatpush1.bf16.msra.mxu0 %v3072_v37 }
 0x141   :  { %1574 = vmatprep.subr.bf16.mxu1 %v3067_v36  ;;  %1535 = vmatprep.subr.bf16.mxu0 %v3086_v39 }
 0x144   :  { %1575 = vmatpush1.bf16.msra.mxu1 %v3077_v38 }
 0x145   :  { %1576 = vmatprep.subr.bf16.mxu1 %v3091_v40 }
 0x147   :  { %v2844_v41 = vpop.eup %2843 }
 0x148   :  { %v93_v43 = vrot.slane %v2844_v41, %v2938_v17  ;;  %v3096_v41 = vld [vmem:[%s4531_s7 + $0x2a0] ss:$48 sps:$4 sm:$0xff]  }
 0x149   :  { %1536 = vmatpush1.bf16.msra.mxu0 %v3096_v41 }
 0x14a   :  { %v95_v46 = vmul.f32 %v93_v43, %v65_v21  ;;  %v3110_v43 = vld [vmem:[%s4531_s7 + $0x304] ss:$48 sps:$4 sm:$0xff]  }
 0x14b   :  { %1537 = vmatprep.subr.bf16.mxu0 %v3110_v43 }
 0x14c   :  { %v115_v47 = vmul.f32 %v113_v42, %v95_v46  ;;  %v3101_v42 = vld [vmem:[%s4531_s7 + $0x2a8] ss:$48 sps:$4 sm:$0xff]  }
 0x14d   :  { %1577 = vmatpush1.bf16.msra.mxu1 %v3101_v42  ;;  %v3125_v46 = vld [vmem:[%s4531_s7 + $0x308] ss:$48 sps:$4 sm:$0xff]  }
 0x14e   :  { %v135_v49 = vadd.f32 %v133_v45, %v115_v47  ;;  %v3120_v45 = vld [vmem:[%s4531_s7 + $0x300] ss:$48 sps:$4 sm:$0xff]   ;;  %1578 = vmatprep.subr.bf16.mxu1 %v3115_v44  ;;  %v3134_v47 = vld [vmem:[%s4531_s7 + $0x364] ss:$48 sps:$4 sm:$0xff]  }
 0x14f   :  { %1538 = vmatpush1.bf16.msra.mxu0 %v3120_v45 }
 0x150   :  { %v149_v50 = vmul.f32 %v147_v48, %v135_v49  ;;  %v3139_v48 = vld [vmem:[%s4531_s7 + $0x36c] ss:$48 sps:$4 sm:$0xff]   ;;  %v3144_v49 = vld [vmem:[%s4531_s7 + $0x360] ss:$48 sps:$4 sm:$0xff]   ;;  %1539 = vmatprep.subr.bf16.mxu0 %v3134_v47 }
 0x151   :  { %1579 = vmatpush1.bf16.msra.mxu1 %v3125_v46 }
 0x152   :  { %v157_v51 = vrot.slane %v149_v50, %v2929_v6  ;;  %1580 = vmatprep.subr.bf16.mxu1 %v3139_v48 }
 0x153   :  { %1540 = vmatpush1.bf16.msra.mxu0 %v3144_v49 }
 0x154   :  { %v158_v52 = vcombine.high %v157_v51, %v157_v51  ;;  %v161_v53 = vsel %vm48_vm0, %v157_v51, 0.0  ;;  %v3158_v51 = vld [vmem:[%s4531_s7 + $0x3c4] ss:$48 sps:$4 sm:$0xff]  }
 0x155   :  { %1541 = vmatprep.subr.bf16.mxu0 %v3158_v51 }
 0x156   :  { %v162_v54 = vsel %vm48_vm0, %v158_v52, 0.0  ;;  %v3163_v52 = vld [vmem:[%s4531_s7 + $0x3cc] ss:$48 sps:$4 sm:$0xff]  }
 0x157   :  { %v163_v55 = vadd.f32 %v162_v54, %v161_v53  ;;  %v3168_v53 = vld [vmem:[%s4531_s7 + $0x3c0] ss:$48 sps:$4 sm:$0xff]   ;;  %v3173_v54 = vld [vmem:[%s4531_s7 + $0x3c8] ss:$48 sps:$4 sm:$0xff]  }
 0x158   :  { %1542 = vmatpush1.bf16.msra.mxu0 %v3168_v53 }
 0x159   :  { %164 = vadd.xlane.f32.xlu1 %v163_v55  ;;  %v3182_v55 = vld [vmem:[%s4531_s7 + $0x424] ss:$48 sps:$4 sm:$0xff]  }
 0x15a   :  { %1543 = vmatprep.subr.bf16.mxu0 %v3182_v55 }
 0x15c   :  { %1544 = vmatpush1.bf16.msra.mxu0 %v3192_v57 }
 0x15d   :  { %1545 = vmatprep.subr.bf16.mxu0 %v3206_v59 }
 0x160   :  { %1546 = vmatpush1.bf16.msra.mxu0 %v3216_v61 }
 0x161   :  { %1547 = vmatprep.subr.bf16.mxu0 %v3230_v63 }
 0x164   :  { %1548 = vmatpush1.bf16.msra.mxu0 %v3240_v1 }
 0x165   :  { %1549 = vmatprep.subr.bf16.mxu0 %v3252_v4 }
 0x168   :  { %1550 = vmatpush1.bf16.msra.mxu0 %v3264_v7 }
 0x169   :  { %1551 = vmatprep.subr.bf16.mxu0 %v3276_v9 }
 0x16c   :  { %1552 = vmatpush1.bf16.msra.mxu0 %v3288_v11 }
 0x16d   :  { %1603 = vmatprep.subr.bf16.mxu0 %v3302_v13 }
 0x1e6   :  { %v165_v16 = vpop.xlane.xlu1 %164 }
 0x1e7   :  { %v166_v18 = vmul.f32 0.00390625, %v165_v16 }
 0x1e9   :  { %v174_v19 = vrot.slane %v166_v18, %v2938_v17 }
 0x1eb   :  { %v3034_v20 = vsub.f32 %v149_v50, %v174_v19  ;;  %v3149_v50 = vld [vmem:[%s4531_s7 + $0x368] ss:$48 sps:$4 sm:$0xff]   ;;  %v207_v19 = vld [vmem:[%s4532_s4] sm:$0x3] }
 0x1ec   :  { %1581 = vmatpush1.bf16.msra.mxu1 %v3149_v50 }
 0x1ed   :  { %v177_v21 = vmul.f32 %v3034_v20, %v3034_v20  ;;  %1582 = vmatprep.subr.bf16.mxu1 %v3163_v52 }
 0x1ef   :  { %v185_v22 = vrot.slane %v177_v21, %v2929_v6  ;;  %v227_v21 = vld [vmem:[%s4533_s5] sm:$0x3] }
 0x1f0   :  { %1583 = vmatpush1.bf16.msra.mxu1 %v3173_v54 }
 0x1f1   :  { %v186_v23 = vcombine.high %v185_v22, %v185_v22  ;;  %v189_v24 = vsel %vm48_vm0, %v185_v22, 0.0  ;;  %1584 = vmatprep.subr.bf16.mxu1 %v3187_v56  ;;  %v212_v22 = vrot.slane %v207_v19, %v2945_v31 }
 0x1f3   :  { %v190_v25 = vsel %vm48_vm0, %v186_v23, 0.0  ;;  %v216_v23 = vrot.slane %v207_v19, %v2948_v32 }
 0x1f4   :  { %v191_v26 = vadd.f32 %v190_v25, %v189_v24  ;;  %1585 = vmatpush1.bf16.msra.mxu1 %v3197_v58  ;;  %v232_v24 = vrot.slane %v227_v21, %v2945_v31  ;;  %v236_v25 = vrot.slane %v227_v21, %v2948_v32  ;;  %v3456_v32 = vld [vmem:[%s4531_s7 + $0x1fc] ss:$48 sps:$4 sm:$0xff]  }
 0x1f5   :  { %1586 = vmatprep.subr.bf16.mxu1 %v3211_v60  ;;  %4668 = vst [vmem:[#allocation14_spill] sm:$0xff] %v3456_v32 }
 0x1f6   :  { %192 = vadd.xlane.f32.xlu0 %v191_v26  ;;  %v217_v26 = vcombine.low %v212_v22, %v216_v23  ;;  %v237_v27 = vcombine.low %v232_v24, %v236_v25 }
 0x1f8   :  { %1587 = vmatpush1.bf16.msra.mxu1 %v3221_v62  ;;  %v224_v29 = vrot.slane %v217_v26, %v2929_v6 }
 0x1f9   :  { %1588 = vmatprep.subr.bf16.mxu1 %v3235_v0 }
 0x1fc   :  { %1589 = vmatpush1.bf16.msra.mxu1 %v3245_v2 }
 0x1fd   :  { %1590 = vmatprep.subr.bf16.mxu1 %v3257_v5 }
 0x200   :  { %1591 = vmatpush1.bf16.msra.mxu1 %v3269_v8 }
 0x201   :  { %1592 = vmatprep.subr.bf16.mxu1 %v3281_v10 }
 0x204   :  { %1593 = vmatpush1.bf16.msra.mxu1 %v3293_v12 }
 0x205   :  { %1644 = vmatprep.subr.bf16.mxu1 %v3307_v14 }
 0x283   :  { %v193_v15 = vpop.xlane.xlu0 %192 }
 0x284   :  { %v194_v16 = vmul.f32 0.00390625, %v193_v15  ;;  %v244_v15 = vrot.slane %v237_v27, %v2929_v6  ;;  %v3370_v27 = vld [vmem:[%s4531_s7 + $0x78] ss:$48 sps:$4 sm:$0xff]  }
 0x286   :  { %v195_v18 = vadd.f32 1e-05, %v194_v16  ;;  %v2872_v16 = vmov 1966171168  }
 0x288   :  { %2845 = vrsqrt.f32 %v195_v18  ;;  %v264_v18 = vunpack.c.l.s4 %v2872_v16  ;;  %v3403_v16 = vld [vmem:[%s4531_s7 + $0x134] ss:$48 sps:$4 sm:$0xff]  }
 0x28a   :  { %v265_v12 = vunpack.c.0.s8 %v264_v18  ;;  %v3408_v18 = vld [vmem:[%s4531_s7 + $0x13c] ss:$48 sps:$4 sm:$0xff]  }
 0x28c   :  { %v3327_v21 = vsub.s32 %v265_v12, %v2923_v3  ;;  %v3351_v12 = vld [vmem:[%s4531_s7 + $0x74] ss:$48 sps:$4 sm:$0xff]  }
 0x28e   :  { %4662 = vst [vmem:[#allocation8_spill] sm:$0xff] %v3327_v21 }
 0x292   :  { %v2846_v28 = vpop.eup %2845 }
 0x293   :  { %v204_v30 = vrot.slane %v2846_v28, %v2938_v17  ;;  %v3377_v28 = vld [vmem:[%s4531_s7 + $0xd4] ss:$48 sps:$4 sm:$0xff]  }
 0x295   :  { %v206_v14 = vmul.f32 %v204_v30, %v3034_v20  ;;  %v3336_v20 = vld [vmem:[%s4531_s7 + $0x10] ss:$48 sps:$4 sm:$0xff]  }
 0x296   :  { %v3391_v30 = vld [vmem:[%s4531_s7 + $0xd0] ss:$48 sps:$4 sm:$0xff]  }
 0x297   :  { %v226_v13 = vmul.f32 %v224_v29, %v206_v14  ;;  %v3365_v14 = vld [vmem:[%s4531_s7 + $0x70] ss:$48 sps:$4 sm:$0xff]   ;;  %v3382_v29 = vld [vmem:[%s4531_s7 + $0xdc] ss:$48 sps:$4 sm:$0xff]  }
 0x299   :  { %v246_v19 = vadd.f32 %v244_v15, %v226_v13  ;;  %v3356_v13 = vld [vmem:[%s4531_s7 + $0x7c] ss:$48 sps:$4 sm:$0xff]   ;;  %v3396_v15 = vld [vmem:[%s4531_s7 + $0xd8] ss:$48 sps:$4 sm:$0xff]  }
 0x29b   :  { %v254_v31 = vrot.slane %v246_v19, %v2929_v6  ;;  %v3341_v6 = vld [vmem:[%s4531_s7 + $0x18] ss:$48 sps:$4 sm:$0xff]   ;;  %v3415_v19 = vld [vmem:[%s4531_s7 + $0x130] ss:$48 sps:$4 sm:$0xff]  }
 0x29d   :  { %v255_v22 = vcombine.high %v254_v31, %v254_v31 }
 0x29f   :  { %v2355_v23 = vpack.c.bf16 %v255_v22, %v254_v31  ;;  %v3420_v22 = vld [vmem:[%s4531_s7 + $0x138] ss:$48 sps:$4 sm:$0xff]  }
 0x2a1   :  { %v269_v24 = vrot.slane %v2355_v23, %v3327_v21  ;;  %v3427_v23 = vld [vmem:[%s4531_s7 + $0x194] ss:$48 sps:$4 sm:$0xff]  }
 0x2a2   :  { %4663 = vst [vmem:[#allocation9_spill] sm:$0xff] %v3427_v23 }
 0x2a3   :  { %2356 = vst.sshfl [vmem:[#allocation2] sm:$0x5 pattern:$0x73625140] %v269_v24  ;;  %v3432_v24 = vld [vmem:[%s4531_s7 + $0x19c] ss:$48 sps:$4 sm:$0xff]  }
 0x2a4   :  { %4664 = vst [vmem:[#allocation10_spill] sm:$0xff] %v3432_v24 }
 0x2aa   :  { %v2357_v17 = vld.sshfl [vmem:[#allocation2] sm:$0x11 pattern:$0x75316420] }
 0x2ab   :  { %v544_v25 = vcombine.high %v2357_v17, %v2357_v17  ;;  %v3344_v31 = vrot.slane %v2357_v17, %v3327_v21  ;;  %v3439_v17 = vld [vmem:[%s4531_s7 + $0x190] ss:$48 sps:$4 sm:$0xff]  }
 0x2ac   :  { %4665 = vst [vmem:[#allocation11_spill] sm:$0xff] %v3439_v17 }
 0x2ad   :  { %v3331_v26 = vrot.slane %v544_v25, %v3327_v21  ;;  %v3444_v25 = vld [vmem:[%s4531_s7 + $0x198] ss:$48 sps:$4 sm:$0xff]   ;;  %v3451_v21 = vld [vmem:[%s4531_s7 + $0x1f4] ss:$48 sps:$4 sm:$0xff]  }
 0x2ae   :  { %4666 = vst [vmem:[#allocation12_spill] sm:$0xff] %v3444_v25  ;;  %4667 = vst [vmem:[#allocation13_spill] sm:$0xff] %v3451_v21 }
 0x2af   :  { %1553 = vmatprep.mubr.bf16.mxu0 %v3331_v26  ;;  %1594 = vmatprep.mubr.bf16.mxu1 %v3331_v26 }
 0x2b0   :  { %1554 = vmatmul.mubr.bf16.vlgmr.msra.gmra.mrb[0].mxu0 %v3344_v31  ;;  %1595 = vmatmul.mubr.bf16.vlgmr.msra.gmra.mrb[0].mxu1 %v3344_v31 }
 0x2b1   :  { %1604 = vmatpush1.bf16.msra.mxu0 %v3336_v20  ;;  %1645 = vmatpush1.bf16.msra.mxu1 %v3341_v6 }
 0x2b2   :  { %1635 = vmatprep.mubr.bf16.mxu0 %v3331_v26  ;;  %1676 = vmatprep.mubr.bf16.mxu1 %v3331_v26 }
 0x2b3   :  { %1605 = vmatprep.subr.bf16.mxu0 %v3351_v12  ;;  %1646 = vmatprep.subr.bf16.mxu1 %v3356_v13 }
 0x2b5   :  { %1606 = vmatpush1.bf16.msra.mxu0 %v3365_v14  ;;  %1647 = vmatpush1.bf16.msra.mxu1 %v3370_v27 }
 0x2b6   :  { %1607 = vmatprep.subr.bf16.mxu0 %v3377_v28  ;;  %1648 = vmatprep.subr.bf16.mxu1 %v3382_v29 }
 0x2b9   :  { %1608 = vmatpush1.bf16.msra.mxu0 %v3391_v30  ;;  %1649 = vmatpush1.bf16.msra.mxu1 %v3396_v15 }
 0x2ba   :  { %1609 = vmatprep.subr.bf16.mxu0 %v3403_v16  ;;  %1650 = vmatprep.subr.bf16.mxu1 %v3408_v18 }
 0x2bd   :  { %1610 = vmatpush1.bf16.msra.mxu0 %v3415_v19  ;;  %1651 = vmatpush1.bf16.msra.mxu1 %v3420_v22 }
 0x2be   :  { %1611 = vmatprep.subr.bf16.mxu0 %v3427_v23  ;;  %1652 = vmatprep.subr.bf16.mxu1 %v3432_v24  ;;  %v3463_v23 = vld [vmem:[%s4531_s7 + $0x1f0] ss:$48 sps:$4 sm:$0xff]   ;;  %v3468_v24 = vld [vmem:[%s4531_s7 + $0x1f8] ss:$48 sps:$4 sm:$0xff]  }
 0x2bf   :  { %4669 = vst [vmem:[#allocation15_spill] sm:$0xff] %v3463_v23  ;;  %4670 = vst [vmem:[#allocation16_spill] sm:$0xff] %v3468_v24 }
 0x2c1   :  { %1612 = vmatpush1.bf16.msra.mxu0 %v3439_v17  ;;  %1653 = vmatpush1.bf16.msra.mxu1 %v3444_v25  ;;  %v3475_v17 = vld [vmem:[%s4531_s7 + $0x254] ss:$48 sps:$4 sm:$0xff]   ;;  %v3480_v25 = vld [vmem:[%s4531_s7 + $0x25c] ss:$48 sps:$4 sm:$0xff]  }
 0x2c2   :  { %1613 = vmatprep.subr.bf16.mxu0 %v3451_v21  ;;  %1654 = vmatprep.subr.bf16.mxu1 %v3456_v32  ;;  %4671 = vst [vmem:[#allocation17_spill] sm:$0xff] %v3475_v17  ;;  %4672 = vst [vmem:[#allocation18_spill] sm:$0xff] %v3480_v25  ;;  %v3487_v21 = vld [vmem:[%s4531_s7 + $0x250] ss:$48 sps:$4 sm:$0xff]   ;;  %v3492_v32 = vld [vmem:[%s4531_s7 + $0x258] ss:$48 sps:$4 sm:$0xff]  }
 0x2c3   :  { %4673 = vst [vmem:[#allocation19_spill] sm:$0xff] %v3487_v21  ;;  %4674 = vst [vmem:[#allocation20_spill] sm:$0xff] %v3492_v32 }
 0x2c5   :  { %1614 = vmatpush1.bf16.msra.mxu0 %v3463_v23  ;;  %1655 = vmatpush1.bf16.msra.mxu1 %v3468_v24  ;;  %v3499_v23 = vld [vmem:[%s4531_s7 + $0x2b4] ss:$48 sps:$4 sm:$0xff]   ;;  %v3504_v24 = vld [vmem:[%s4531_s7 + $0x2bc] ss:$48 sps:$4 sm:$0xff]  }
 0x2c6   :  { %1615 = vmatprep.subr.bf16.mxu0 %v3475_v17  ;;  %1656 = vmatprep.subr.bf16.mxu1 %v3480_v25  ;;  %4675 = vst [vmem:[#allocation21_spill] sm:$0xff] %v3499_v23  ;;  %4676 = vst [vmem:[#allocation22_spill] sm:$0xff] %v3504_v24  ;;  %v3511_v17 = vld [vmem:[%s4531_s7 + $0x2b0] ss:$48 sps:$4 sm:$0xff]   ;;  %v3516_v25 = vld [vmem:[%s4531_s7 + $0x2b8] ss:$48 sps:$4 sm:$0xff]  }
 0x2c7   :  { %4677 = vst [vmem:[#allocation23_spill] sm:$0xff] %v3511_v17  ;;  %4678 = vst [vmem:[#allocation24_spill] sm:$0xff] %v3516_v25 }
 0x2c9   :  { %1616 = vmatpush1.bf16.msra.mxu0 %v3487_v21  ;;  %1657 = vmatpush1.bf16.msra.mxu1 %v3492_v32  ;;  %v3523_v21 = vld [vmem:[%s4531_s7 + $0x314] ss:$48 sps:$4 sm:$0xff]   ;;  %v3528_v32 = vld [vmem:[%s4531_s7 + $0x31c] ss:$48 sps:$4 sm:$0xff]  }
 0x2ca   :  { %1617 = vmatprep.subr.bf16.mxu0 %v3499_v23  ;;  %1658 = vmatprep.subr.bf16.mxu1 %v3504_v24  ;;  %4679 = vst [vmem:[#allocation25_spill] sm:$0xff] %v3523_v21  ;;  %4680 = vst [vmem:[#allocation26_spill] sm:$0xff] %v3528_v32  ;;  %v3535_v23 = vld [vmem:[%s4531_s7 + $0x310] ss:$48 sps:$4 sm:$0xff]   ;;  %v3540_v24 = vld [vmem:[%s4531_s7 + $0x318] ss:$48 sps:$4 sm:$0xff]  }
 0x2cb   :  { %4681 = vst [vmem:[#allocation27_spill] sm:$0xff] %v3535_v23  ;;  %4682 = vst [vmem:[#allocation28_spill] sm:$0xff] %v3540_v24 }
 0x2cd   :  { %1618 = vmatpush1.bf16.msra.mxu0 %v3511_v17  ;;  %1659 = vmatpush1.bf16.msra.mxu1 %v3516_v25  ;;  %v3547_v17 = vld [vmem:[%s4531_s7 + $0x374] ss:$48 sps:$4 sm:$0xff]   ;;  %v3552_v25 = vld [vmem:[%s4531_s7 + $0x37c] ss:$48 sps:$4 sm:$0xff]  }
 0x2ce   :  { %1619 = vmatprep.subr.bf16.mxu0 %v3523_v21  ;;  %1660 = vmatprep.subr.bf16.mxu1 %v3528_v32  ;;  %4683 = vst [vmem:[#allocation29_spill] sm:$0xff] %v3547_v17  ;;  %4684 = vst [vmem:[#allocation30_spill] sm:$0xff] %v3552_v25  ;;  %v3559_v21 = vld [vmem:[%s4531_s7 + $0x370] ss:$48 sps:$4 sm:$0xff]   ;;  %v3564_v32 = vld [vmem:[%s4531_s7 + $0x378] ss:$48 sps:$4 sm:$0xff]  }
 0x2cf   :  { %4685 = vst [vmem:[#allocation31_spill] sm:$0xff] %v3559_v21  ;;  %4686 = vst [vmem:[#allocation32_spill] sm:$0xff] %v3564_v32 }
 0x2d1   :  { %1620 = vmatpush1.bf16.msra.mxu0 %v3535_v23  ;;  %1661 = vmatpush1.bf16.msra.mxu1 %v3540_v24  ;;  %v3571_v23 = vld [vmem:[%s4531_s7 + $0x3d4] ss:$48 sps:$4 sm:$0xff]   ;;  %v3576_v24 = vld [vmem:[%s4531_s7 + $0x3dc] ss:$48 sps:$4 sm:$0xff]  }
 0x2d2   :  { %1621 = vmatprep.subr.bf16.mxu0 %v3547_v17  ;;  %1662 = vmatprep.subr.bf16.mxu1 %v3552_v25  ;;  %4687 = vst [vmem:[#allocation33_spill] sm:$0xff] %v3571_v23  ;;  %4688 = vst [vmem:[#allocation34_spill] sm:$0xff] %v3576_v24  ;;  %v3583_v17 = vld [vmem:[%s4531_s7 + $0x3d0] ss:$48 sps:$4 sm:$0xff]   ;;  %v3588_v25 = vld [vmem:[%s4531_s7 + $0x3d8] ss:$48 sps:$4 sm:$0xff]  }
 0x2d3   :  { %4689 = vst [vmem:[#allocation35_spill] sm:$0xff] %v3583_v17  ;;  %4690 = vst [vmem:[#allocation36_spill] sm:$0xff] %v3588_v25 }
 0x2d5   :  { %1622 = vmatpush1.bf16.msra.mxu0 %v3559_v21  ;;  %1663 = vmatpush1.bf16.msra.mxu1 %v3564_v32  ;;  %v3595_v21 = vld [vmem:[%s4531_s7 + $0x434] ss:$48 sps:$4 sm:$0xff]   ;;  %v3600_v32 = vld [vmem:[%s4531_s7 + $0x43c] ss:$48 sps:$4 sm:$0xff]  }
 0x2d6   :  { %1623 = vmatprep.subr.bf16.mxu0 %v3571_v23  ;;  %1664 = vmatprep.subr.bf16.mxu1 %v3576_v24  ;;  %4691 = vst [vmem:[#allocation37_spill] sm:$0xff] %v3595_v21  ;;  %4692 = vst [vmem:[#allocation38_spill] sm:$0xff] %v3600_v32  ;;  %v3607_v23 = vld [vmem:[%s4531_s7 + $0x430] ss:$48 sps:$4 sm:$0xff]   ;;  %v3612_v24 = vld [vmem:[%s4531_s7 + $0x438] ss:$48 sps:$4 sm:$0xff]  }
 0x2d7   :  { %4693 = vst [vmem:[#allocation39_spill] sm:$0xff] %v3607_v23  ;;  %4694 = vst [vmem:[#allocation40_spill] sm:$0xff] %v3612_v24 }
 0x2d9   :  { %1624 = vmatpush1.bf16.msra.mxu0 %v3583_v17  ;;  %1665 = vmatpush1.bf16.msra.mxu1 %v3588_v25  ;;  %v3619_v17 = vld [vmem:[%s4531_s7 + $0x494] ss:$48 sps:$4 sm:$0xff]   ;;  %v3624_v25 = vld [vmem:[%s4531_s7 + $0x49c] ss:$48 sps:$4 sm:$0xff]  }
 0x2da   :  { %1625 = vmatprep.subr.bf16.mxu0 %v3595_v21  ;;  %1666 = vmatprep.subr.bf16.mxu1 %v3600_v32  ;;  %4695 = vst [vmem:[#allocation41_spill] sm:$0xff] %v3619_v17  ;;  %4696 = vst [vmem:[#allocation42_spill] sm:$0xff] %v3624_v25  ;;  %v3631_v21 = vld [vmem:[%s4531_s7 + $0x490] ss:$48 sps:$4 sm:$0xff]   ;;  %v3636_v32 = vld [vmem:[%s4531_s7 + $0x498] ss:$48 sps:$4 sm:$0xff]  }
 0x2db   :  { %4697 = vst [vmem:[#allocation43_spill] sm:$0xff] %v3631_v21  ;;  %4698 = vst [vmem:[#allocation44_spill] sm:$0xff] %v3636_v32 }
 0x2dd   :  { %1626 = vmatpush1.bf16.msra.mxu0 %v3607_v23  ;;  %1667 = vmatpush1.bf16.msra.mxu1 %v3612_v24  ;;  %v3643_v23 = vld [vmem:[%s4531_s7 + $0x4f4] ss:$48 sps:$4 sm:$0xff]   ;;  %v3648_v24 = vld [vmem:[%s4531_s7 + $0x4fc] ss:$48 sps:$4 sm:$0xff]  }
 0x2de   :  { %1627 = vmatprep.subr.bf16.mxu0 %v3619_v17  ;;  %1668 = vmatprep.subr.bf16.mxu1 %v3624_v25  ;;  %4699 = vst [vmem:[#allocation45_spill] sm:$0xff] %v3643_v23  ;;  %4700 = vst [vmem:[#allocation46_spill] sm:$0xff] %v3648_v24  ;;  %v3655_v17 = vld [vmem:[%s4531_s7 + $0x4f0] ss:$48 sps:$4 sm:$0xff]   ;;  %v3660_v25 = vld [vmem:[%s4531_s7 + $0x4f8] ss:$48 sps:$4 sm:$0xff]  }
 0x2df   :  { %4701 = vst [vmem:[#allocation47_spill] sm:$0xff] %v3655_v17  ;;  %4702 = vst [vmem:[#allocation48_spill] sm:$0xff] %v3660_v25 }
 0x2e1   :  { %1628 = vmatpush1.bf16.msra.mxu0 %v3631_v21  ;;  %1669 = vmatpush1.bf16.msra.mxu1 %v3636_v32  ;;  %v3667_v21 = vld [vmem:[%s4531_s7 + $0x554] ss:$48 sps:$4 sm:$0xff]   ;;  %v3672_v32 = vld [vmem:[%s4531_s7 + $0x55c] ss:$48 sps:$4 sm:$0xff]  }
 0x2e2   :  { %1629 = vmatprep.subr.bf16.mxu0 %v3643_v23  ;;  %1670 = vmatprep.subr.bf16.mxu1 %v3648_v24  ;;  %4703 = vst [vmem:[#allocation49_spill] sm:$0xff] %v3667_v21  ;;  %4704 = vst [vmem:[#allocation50_spill] sm:$0xff] %v3672_v32  ;;  %v3679_v23 = vld [vmem:[%s4531_s7 + $0x550] ss:$48 sps:$4 sm:$0xff]   ;;  %v3684_v24 = vld [vmem:[%s4531_s7 + $0x558] ss:$48 sps:$4 sm:$0xff]  }
 0x2e3   :  { %4705 = vst [vmem:[#allocation51_spill] sm:$0xff] %v3679_v23  ;;  %4706 = vst [vmem:[#allocation52_spill] sm:$0xff] %v3684_v24 }
 0x2e5   :  { %1630 = vmatpush1.bf16.msra.mxu0 %v3655_v17  ;;  %1671 = vmatpush1.bf16.msra.mxu1 %v3660_v25  ;;  %v3691_v17 = vld [vmem:[%s4531_s7 + $0x5b4] ss:$48 sps:$4 sm:$0xff]   ;;  %v3696_v25 = vld [vmem:[%s4531_s7 + $0x5bc] ss:$48 sps:$4 sm:$0xff]  }
 0x2e6   :  { %1631 = vmatprep.subr.bf16.mxu0 %v3667_v21  ;;  %1672 = vmatprep.subr.bf16.mxu1 %v3672_v32  ;;  %4707 = vst [vmem:[#allocation53_spill] sm:$0xff] %v3691_v17  ;;  %4708 = vst [vmem:[#allocation54_spill] sm:$0xff] %v3696_v25  ;;  %v3703_v21 = vld [vmem:[%s4531_s7 + $0x5b0] ss:$48 sps:$4 sm:$0xff]   ;;  %v3708_v32 = vld [vmem:[%s4531_s7 + $0x5b8] ss:$48 sps:$4 sm:$0xff]  }
 0x2e7   :  { %4709 = vst [vmem:[#allocation55_spill] sm:$0xff] %v3703_v21  ;;  %4710 = vst [vmem:[#allocation56_spill] sm:$0xff] %v3708_v32 }
 0x2e9   :  { %1632 = vmatpush1.bf16.msra.mxu0 %v3679_v23  ;;  %1673 = vmatpush1.bf16.msra.mxu1 %v3684_v24  ;;  %v3715_v23 = vld [vmem:[%s4531_s7 + $0x24] ss:$48 sps:$4 sm:$0xff]   ;;  %v3720_v24 = vld [vmem:[%s4531_s7 + $0x2c] ss:$48 sps:$4 sm:$0xff]  }
 0x2ea   :  { %1633 = vmatprep.subr.bf16.mxu0 %v3691_v17  ;;  %1674 = vmatprep.subr.bf16.mxu1 %v3696_v25  ;;  %4711 = vst [vmem:[#allocation57_spill] sm:$0xff] %v3715_v23  ;;  %4712 = vst [vmem:[#allocation58_spill] sm:$0xff] %v3720_v24  ;;  %v3727_v17 = vld [vmem:[%s4531_s7 + $0x20] ss:$48 sps:$4 sm:$0xff]   ;;  %v3733_v25 = vld [vmem:[%s4531_s7 + $0x28] ss:$48 sps:$4 sm:$0xff]  }
 0x2eb   :  { %4713 = vst [vmem:[#allocation59_spill] sm:$0xff] %v3727_v17  ;;  %4714 = vst [vmem:[#allocation60_spill] sm:$0xff] %v3733_v25 }
 0x2ed   :  { %1634 = vmatpush1.bf16.msra.mxu0 %v3703_v21  ;;  %1675 = vmatpush1.bf16.msra.mxu1 %v3708_v32  ;;  %v3739_v21 = vld [vmem:[%s4531_s7 + $0x84] ss:$48 sps:$4 sm:$0xff]   ;;  %v3744_v32 = vld [vmem:[%s4531_s7 + $0x8c] ss:$48 sps:$4 sm:$0xff]  }
 0x2ee   :  { %1685 = vmatprep.subr.bf16.mxu0 %v3715_v23  ;;  %1726 = vmatprep.subr.bf16.mxu1 %v3720_v24  ;;  %4715 = vst [vmem:[#allocation61_spill] sm:$0xff] %v3739_v21  ;;  %4716 = vst [vmem:[#allocation62_spill] sm:$0xff] %v3744_v32  ;;  %v3753_v24 = vld [vmem:[%s4531_s7 + $0x80] ss:$48 sps:$4 sm:$0xff]   ;;  %v3760_v23 = vld [vmem:[%s4531_s7 + $0x88] ss:$48 sps:$4 sm:$0xff]  }
 0x2ef   :  { %4717 = vst [vmem:[#allocation63_spill] sm:$0xff] %v3753_v24  ;;  %4718 = vst [vmem:[#allocation64_spill] sm:$0xff] %v3760_v23 }
 0x2f0   :  { %1636 = vmatmul.mubr.bf16.vlgmr.msra.gmra.mrb[4].mxu0 %v3344_v31  ;;  %1677 = vmatmul.mubr.bf16.vlgmr.msra.gmra.mrb[4].mxu1 %v3344_v31 }
 0x2f1   :  { %1686 = vmatpush1.bf16.msra.mxu0 %v3727_v17  ;;  %1717 = vmatprep.mubr.bf16.mxu0 %v3331_v26  ;;  %v3765_v17 = vld [vmem:[%s4531_s7 + $0xe4] ss:$48 sps:$4 sm:$0xff]  }
 0x2f2   :  { %1727 = vmatpush1.bf16.msra.mxu1 %v3733_v25  ;;  %1758 = vmatprep.mubr.bf16.mxu1 %v3331_v26  ;;  %4719 = vst [vmem:[#allocation65_spill] sm:$0xff] %v3765_v17  ;;  %v3772_v25 = vld [vmem:[%s4531_s7 + $0xec] ss:$48 sps:$4 sm:$0xff]   ;;  %v3778_v26 = vld [vmem:[%s4531_s7 + $0xe0] ss:$48 sps:$4 sm:$0xff]  }
 0x2f3   :  { %1687 = vmatprep.subr.bf16.mxu0 %v3739_v21  ;;  %1728 = vmatprep.subr.bf16.mxu1 %v3744_v32  ;;  %4720 = vst [vmem:[#allocation66_spill] sm:$0xff] %v3772_v25  ;;  %4721 = vst [vmem:[#allocation67_spill] sm:$0xff] %v3778_v26  ;;  %v3785_v32 = vld [vmem:[%s4531_s7 + $0xe8] ss:$48 sps:$4 sm:$0xff]   ;;  %v3790_v21 = vld [vmem:[%s4531_s7 + $0x144] ss:$48 sps:$4 sm:$0xff]  }
 0x2f4   :  { %4722 = vst [vmem:[#allocation68_spill] sm:$0xff] %v3785_v32  ;;  %4723 = vst [vmem:[#allocation69_spill] sm:$0xff] %v3790_v21 }
 0x2f5   :  { %1688 = vmatpush1.bf16.msra.mxu0 %v3753_v24  ;;  %v3796_v24 = vld [vmem:[%s4531_s7 + $0x14c] ss:$48 sps:$4 sm:$0xff]  }
 0x2f6   :  { %1729 = vmatpush1.bf16.msra.mxu1 %v3760_v23  ;;  %1689 = vmatprep.subr.bf16.mxu0 %v3765_v17  ;;  %4724 = vst [vmem:[#allocation70_spill] sm:$0xff] %v3796_v24  ;;  %v3802_v17 = vld [vmem:[%s4531_s7 + $0x140] ss:$48 sps:$4 sm:$0xff]   ;;  %v3814_v23 = vld [vmem:[%s4531_s7 + $0x1a4] ss:$48 sps:$4 sm:$0xff]  }
 0x2f7   :  { %1730 = vmatprep.subr.bf16.mxu1 %v3772_v25  ;;  %4725 = vst [vmem:[#allocation71_spill] sm:$0xff] %v3802_v17  ;;  %v3809_v25 = vld [vmem:[%s4531_s7 + $0x148] ss:$48 sps:$4 sm:$0xff]   ;;  %4727 = vst [vmem:[#allocation73_spill] sm:$0xff] %v3814_v23 }
 0x2f8   :  { %4726 = vst [vmem:[#allocation72_spill] sm:$0xff] %v3809_v25 }
 0x2f9   :  { %1690 = vmatpush1.bf16.msra.mxu0 %v3778_v26  ;;  %v3820_v26 = vld [vmem:[%s4531_s7 + $0x1ac] ss:$48 sps:$4 sm:$0xff]  }
 0x2fa   :  { %1731 = vmatpush1.bf16.msra.mxu1 %v3785_v32  ;;  %1691 = vmatprep.subr.bf16.mxu0 %v3790_v21  ;;  %4728 = vst [vmem:[#allocation74_spill] sm:$0xff] %v3820_v26  ;;  %v3826_v21 = vld [vmem:[%s4531_s7 + $0x1a0] ss:$48 sps:$4 sm:$0xff]   ;;  %v3838_v32 = vld [vmem:[%s4531_s7 + $0x204] ss:$48 sps:$4 sm:$0xff]  }
 0x2fb   :  { %1732 = vmatprep.subr.bf16.mxu1 %v3796_v24  ;;  %4729 = vst [vmem:[#allocation75_spill] sm:$0xff] %v3826_v21  ;;  %v3833_v24 = vld [vmem:[%s4531_s7 + $0x1a8] ss:$48 sps:$4 sm:$0xff]   ;;  %4731 = vst [vmem:[#allocation77_spill] sm:$0xff] %v3838_v32 }
 0x2fc   :  { %4730 = vst [vmem:[#allocation76_spill] sm:$0xff] %v3833_v24 }
 0x2fd   :  { %1692 = vmatpush1.bf16.msra.mxu0 %v3802_v17  ;;  %v3844_v17 = vld [vmem:[%s4531_s7 + $0x20c] ss:$48 sps:$4 sm:$0xff]  }
 0x2fe   :  { %1733 = vmatpush1.bf16.msra.mxu1 %v3809_v25  ;;  %1693 = vmatprep.subr.bf16.mxu0 %v3814_v23  ;;  %4732 = vst [vmem:[#allocation78_spill] sm:$0xff] %v3844_v17  ;;  %v3850_v23 = vld [vmem:[%s4531_s7 + $0x200] ss:$48 sps:$4 sm:$0xff]   ;;  %v3862_v25 = vld [vmem:[%s4531_s7 + $0x264] ss:$48 sps:$4 sm:$0xff]  }
 0x2ff   :  { %1734 = vmatprep.subr.bf16.mxu1 %v3820_v26  ;;  %4733 = vst [vmem:[#allocation79_spill] sm:$0xff] %v3850_v23  ;;  %v3857_v26 = vld [vmem:[%s4531_s7 + $0x208] ss:$48 sps:$4 sm:$0xff]   ;;  %4735 = vst [vmem:[#allocation81_spill] sm:$0xff] %v3862_v25 }
 0x300   :  { %4734 = vst [vmem:[#allocation80_spill] sm:$0xff] %v3857_v26 }
 0x301   :  { %1694 = vmatpush1.bf16.msra.mxu0 %v3826_v21  ;;  %v3868_v21 = vld [vmem:[%s4531_s7 + $0x26c] ss:$48 sps:$4 sm:$0xff]  }
 0x302   :  { %1735 = vmatpush1.bf16.msra.mxu1 %v3833_v24  ;;  %1695 = vmatprep.subr.bf16.mxu0 %v3838_v32  ;;  %4736 = vst [vmem:[#allocation82_spill] sm:$0xff] %v3868_v21  ;;  %v3874_v32 = vld [vmem:[%s4531_s7 + $0x260] ss:$48 sps:$4 sm:$0xff]   ;;  %v3886_v24 = vld [vmem:[%s4531_s7 + $0x2c4] ss:$48 sps:$4 sm:$0xff]  }
 0x303   :  { %1736 = vmatprep.subr.bf16.mxu1 %v3844_v17  ;;  %4737 = vst [vmem:[#allocation83_spill] sm:$0xff] %v3874_v32  ;;  %v3881_v17 = vld [vmem:[%s4531_s7 + $0x268] ss:$48 sps:$4 sm:$0xff]   ;;  %4739 = vst [vmem:[#allocation85_spill] sm:$0xff] %v3886_v24 }
 0x304   :  { %4738 = vst [vmem:[#allocation84_spill] sm:$0xff] %v3881_v17 }
 0x305   :  { %1696 = vmatpush1.bf16.msra.mxu0 %v3850_v23  ;;  %v3892_v23 = vld [vmem:[%s4531_s7 + $0x2cc] ss:$48 sps:$4 sm:$0xff]  }
 0x306   :  { %1737 = vmatpush1.bf16.msra.mxu1 %v3857_v26  ;;  %1697 = vmatprep.subr.bf16.mxu0 %v3862_v25  ;;  %4740 = vst [vmem:[#allocation86_spill] sm:$0xff] %v3892_v23  ;;  %v3898_v25 = vld [vmem:[%s4531_s7 + $0x2c0] ss:$48 sps:$4 sm:$0xff]   ;;  %v3910_v26 = vld [vmem:[%s4531_s7 + $0x324] ss:$48 sps:$4 sm:$0xff]  }
 0x307   :  { %1738 = vmatprep.subr.bf16.mxu1 %v3868_v21  ;;  %4741 = vst [vmem:[#allocation87_spill] sm:$0xff] %v3898_v25  ;;  %v3905_v21 = vld [vmem:[%s4531_s7 + $0x2c8] ss:$48 sps:$4 sm:$0xff]   ;;  %4743 = vst [vmem:[#allocation89_spill] sm:$0xff] %v3910_v26 }
 0x308   :  { %4742 = vst [vmem:[#allocation88_spill] sm:$0xff] %v3905_v21 }
 0x309   :  { %1698 = vmatpush1.bf16.msra.mxu0 %v3874_v32  ;;  %v3916_v32 = vld [vmem:[%s4531_s7 + $0x32c] ss:$48 sps:$4 sm:$0xff]  }
 0x30a   :  { %1739 = vmatpush1.bf16.msra.mxu1 %v3881_v17  ;;  %1699 = vmatprep.subr.bf16.mxu0 %v3886_v24  ;;  %4744 = vst [vmem:[#allocation90_spill] sm:$0xff] %v3916_v32  ;;  %v3922_v24 = vld [vmem:[%s4531_s7 + $0x320] ss:$48 sps:$4 sm:$0xff]   ;;  %v3934_v17 = vld [vmem:[%s4531_s7 + $0x384] ss:$48 sps:$4 sm:$0xff]  }
 0x30b   :  { %1740 = vmatprep.subr.bf16.mxu1 %v3892_v23  ;;  %4745 = vst [vmem:[#allocation91_spill] sm:$0xff] %v3922_v24  ;;  %v3929_v23 = vld [vmem:[%s4531_s7 + $0x328] ss:$48 sps:$4 sm:$0xff]   ;;  %4747 = vst [vmem:[#allocation93_spill] sm:$0xff] %v3934_v17 }
 0x30c   :  { %4746 = vst [vmem:[#allocation92_spill] sm:$0xff] %v3929_v23 }
 0x30d   :  { %1700 = vmatpush1.bf16.msra.mxu0 %v3898_v25  ;;  %v3940_v25 = vld [vmem:[%s4531_s7 + $0x38c] ss:$48 sps:$4 sm:$0xff]  }
 0x30e   :  { %1741 = vmatpush1.bf16.msra.mxu1 %v3905_v21  ;;  %1701 = vmatprep.subr.bf16.mxu0 %v3910_v26  ;;  %4748 = vst [vmem:[#allocation94_spill] sm:$0xff] %v3940_v25  ;;  %v3946_v26 = vld [vmem:[%s4531_s7 + $0x380] ss:$48 sps:$4 sm:$0xff]   ;;  %v3958_v21 = vld [vmem:[%s4531_s7 + $0x3e4] ss:$48 sps:$4 sm:$0xff]  }
 0x30f   :  { %1742 = vmatprep.subr.bf16.mxu1 %v3916_v32  ;;  %4749 = vst [vmem:[#allocation95_spill] sm:$0xff] %v3946_v26  ;;  %v3953_v32 = vld [vmem:[%s4531_s7 + $0x388] ss:$48 sps:$4 sm:$0xff]   ;;  %4751 = vst [vmem:[#allocation97_spill] sm:$0xff] %v3958_v21 }
 0x310   :  { %4750 = vst [vmem:[#allocation96_spill] sm:$0xff] %v3953_v32 }
 0x311   :  { %1702 = vmatpush1.bf16.msra.mxu0 %v3922_v24  ;;  %v3964_v24 = vld [vmem:[%s4531_s7 + $0x3ec] ss:$48 sps:$4 sm:$0xff]  }
 0x312   :  { %1743 = vmatpush1.bf16.msra.mxu1 %v3929_v23  ;;  %1703 = vmatprep.subr.bf16.mxu0 %v3934_v17  ;;  %4752 = vst [vmem:[#allocation98_spill] sm:$0xff] %v3964_v24  ;;  %v3970_v17 = vld [vmem:[%s4531_s7 + $0x3e0] ss:$48 sps:$4 sm:$0xff]   ;;  %v3982_v23 = vld [vmem:[%s4531_s7 + $0x444] ss:$48 sps:$4 sm:$0xff]  }
 0x313   :  { %1744 = vmatprep.subr.bf16.mxu1 %v3940_v25  ;;  %4753 = vst [vmem:[#allocation99_spill] sm:$0xff] %v3970_v17  ;;  %v3977_v25 = vld [vmem:[%s4531_s7 + $0x3e8] ss:$48 sps:$4 sm:$0xff]   ;;  %4755 = vst [vmem:[#allocation101_spill] sm:$0xff] %v3982_v23 }
 0x314   :  { %4754 = vst [vmem:[#allocation100_spill] sm:$0xff] %v3977_v25 }
 0x315   :  { %1704 = vmatpush1.bf16.msra.mxu0 %v3946_v26  ;;  %v3988_v26 = vld [vmem:[%s4531_s7 + $0x44c] ss:$48 sps:$4 sm:$0xff]  }
 0x316   :  { %1745 = vmatpush1.bf16.msra.mxu1 %v3953_v32  ;;  %1705 = vmatprep.subr.bf16.mxu0 %v3958_v21  ;;  %4756 = vst [vmem:[#allocation102_spill] sm:$0xff] %v3988_v26  ;;  %v3994_v21 = vld [vmem:[%s4531_s7 + $0x440] ss:$48 sps:$4 sm:$0xff]   ;;  %v4006_v32 = vld [vmem:[%s4531_s7 + $0x4a4] ss:$48 sps:$4 sm:$0xff]  }
 0x317   :  { %1746 = vmatprep.subr.bf16.mxu1 %v3964_v24  ;;  %4757 = vst [vmem:[#allocation103_spill] sm:$0xff] %v3994_v21  ;;  %v4001_v24 = vld [vmem:[%s4531_s7 + $0x448] ss:$48 sps:$4 sm:$0xff]   ;;  %4759 = vst [vmem:[#allocation105_spill] sm:$0xff] %v4006_v32 }
 0x318   :  { %4758 = vst [vmem:[#allocation104_spill] sm:$0xff] %v4001_v24 }
 0x319   :  { %1706 = vmatpush1.bf16.msra.mxu0 %v3970_v17  ;;  %v4012_v17 = vld [vmem:[%s4531_s7 + $0x4ac] ss:$48 sps:$4 sm:$0xff]  }
 0x31a   :  { %1747 = vmatpush1.bf16.msra.mxu1 %v3977_v25  ;;  %1707 = vmatprep.subr.bf16.mxu0 %v3982_v23  ;;  %4760 = vst [vmem:[#allocation106_spill] sm:$0xff] %v4012_v17  ;;  %v4018_v23 = vld [vmem:[%s4531_s7 + $0x4a0] ss:$48 sps:$4 sm:$0xff]   ;;  %v4030_v25 = vld [vmem:[%s4531_s7 + $0x504] ss:$48 sps:$4 sm:$0xff]  }
 0x31b   :  { %1748 = vmatprep.subr.bf16.mxu1 %v3988_v26  ;;  %4761 = vst [vmem:[#allocation107_spill] sm:$0xff] %v4018_v23  ;;  %v4025_v26 = vld [vmem:[%s4531_s7 + $0x4a8] ss:$48 sps:$4 sm:$0xff]   ;;  %4763 = vst [vmem:[#allocation109_spill] sm:$0xff] %v4030_v25 }
 0x31c   :  { %4762 = vst [vmem:[#allocation108_spill] sm:$0xff] %v4025_v26 }
 0x31d   :  { %1708 = vmatpush1.bf16.msra.mxu0 %v3994_v21  ;;  %v4036_v21 = vld [vmem:[%s4531_s7 + $0x50c] ss:$48 sps:$4 sm:$0xff]  }
 0x31e   :  { %1749 = vmatpush1.bf16.msra.mxu1 %v4001_v24  ;;  %1709 = vmatprep.subr.bf16.mxu0 %v4006_v32  ;;  %4764 = vst [vmem:[#allocation110_spill] sm:$0xff] %v4036_v21  ;;  %v4042_v32 = vld [vmem:[%s4531_s7 + $0x500] ss:$48 sps:$4 sm:$0xff]   ;;  %v4054_v24 = vld [vmem:[%s4531_s7 + $0x564] ss:$48 sps:$4 sm:$0xff]  }
 0x31f   :  { %1750 = vmatprep.subr.bf16.mxu1 %v4012_v17  ;;  %4765 = vst [vmem:[#allocation111_spill] sm:$0xff] %v4042_v32  ;;  %v4049_v17 = vld [vmem:[%s4531_s7 + $0x508] ss:$48 sps:$4 sm:$0xff]   ;;  %4766 = vst [vmem:[#allocation112_spill] sm:$0xff] %v4054_v24 }
 0x321   :  { %1710 = vmatpush1.bf16.msra.mxu0 %v4018_v23  ;;  %v4060_v23 = vld [vmem:[%s4531_s7 + $0x56c] ss:$48 sps:$4 sm:$0xff]  }
 0x322   :  { %1751 = vmatpush1.bf16.msra.mxu1 %v4025_v26  ;;  %1711 = vmatprep.subr.bf16.mxu0 %v4030_v25  ;;  %4767 = vst [vmem:[#allocation113_spill] sm:$0xff] %v4060_v23  ;;  %v4066_v25 = vld [vmem:[%s4531_s7 + $0x560] ss:$48 sps:$4 sm:$0xff]   ;;  %v4078_v26 = vld [vmem:[%s4531_s7 + $0x5c4] ss:$48 sps:$4 sm:$0xff]  }
 0x323   :  { %1752 = vmatprep.subr.bf16.mxu1 %v4036_v21  ;;  %4768 = vst [vmem:[#allocation114_spill] sm:$0xff] %v4066_v25  ;;  %v4073_v21 = vld [vmem:[%s4531_s7 + $0x568] ss:$48 sps:$4 sm:$0xff]   ;;  %4770 = vst [vmem:[#allocation116_spill] sm:$0xff] %v4078_v26 }
 0x324   :  { %4769 = vst [vmem:[#allocation115_spill] sm:$0xff] %v4073_v21 }
 0x325   :  { %1712 = vmatpush1.bf16.msra.mxu0 %v4042_v32  ;;  %v4084_v32 = vld [vmem:[%s4531_s7 + $0x5cc] ss:$48 sps:$4 sm:$0xff]  }
 0x326   :  { %1753 = vmatpush1.bf16.msra.mxu1 %v4049_v17  ;;  %1713 = vmatprep.subr.bf16.mxu0 %v4054_v24  ;;  %4771 = vst [vmem:[#allocation117_spill] sm:$0xff] %v4084_v32  ;;  %v4090_v24 = vld [vmem:[%s4531_s7 + $0x5c0] ss:$48 sps:$4 sm:$0xff]  }
 0x327   :  { %1754 = vmatprep.subr.bf16.mxu1 %v4060_v23  ;;  %4772 = vst [vmem:[#allocation118_spill] sm:$0xff] %v4090_v24  ;;  %v4097_v23 = vld [vmem:[%s4531_s7 + $0x5c8] ss:$48 sps:$4 sm:$0xff]  }
 0x328   :  { %4773 = vst [vmem:[#allocation119_spill] sm:$0xff] %v4097_v23 }
 0x329   :  { %1714 = vmatpush1.bf16.msra.mxu0 %v4066_v25  ;;  %v4103_v25 = vld.sshfl [vmem:[%s4534_s6] sm:$0x33 pattern:$0x76325410] }
 0x32a   :  { %1755 = vmatpush1.bf16.msra.mxu1 %v4073_v21  ;;  %1715 = vmatprep.subr.bf16.mxu0 %v4078_v26  ;;  %v2847_v26 = vld [vmem:[%s4531_s7 + $0x4] ss:$48 sps:$4 sm:$0xff]   ;;  %v2848_v21 = vld [vmem:[%s4531_s7 + $0xc] ss:$48 sps:$4 sm:$0xff]  }
 0x32b   :  { %1756 = vmatprep.subr.bf16.mxu1 %v4084_v32  ;;  %v4115_v32 = vcombine.high %v4103_v25, %v4103_v25 }
 0x32d   :  { %1716 = vmatpush1.bf16.msra.mxu0 %v4090_v24  ;;  %v2852_v24 = vld [vmem:[%s4531_s7 + $0x6c] ss:$48 sps:$4 sm:$0xff]  }
 0x32e   :  { %1757 = vmatpush1.bf16.msra.mxu1 %v4097_v23  ;;  %1779 = vmatprep.subr.bf16.mxu0 %v2847_v26  ;;  %v2849_v23 = vld [vmem:[%s4531_s7] ss:$48 sps:$4 sm:$0xff]   ;;  %v2850_v26 = vld [vmem:[%s4531_s7 + $0x8] ss:$48 sps:$4 sm:$0xff]  }
 0x32f   :  { %1820 = vmatprep.subr.bf16.mxu1 %v2848_v21  ;;  %v2851_v21 = vld [vmem:[%s4531_s7 + $0x64] ss:$48 sps:$4 sm:$0xff]  }
 0x330   :  { %1718 = vmatmul.mubr.bf16.vlgmr.msra.gmra.mrb[8].mxu0 %v3344_v31 }
 0x331   :  { %1759 = vmatmul.mubr.bf16.vlgmr.msra.gmra.mrb[8].mxu1 %v3344_v31  ;;  %1780 = vmatpush1.bf16.msra.mxu0 %v2849_v23  ;;  %v2853_v31 = vld [vmem:[%s4531_s7 + $0x60] ss:$48 sps:$4 sm:$0xff]   ;;  %v2854_v23 = vld [vmem:[%s4531_s7 + $0x68] ss:$48 sps:$4 sm:$0xff]  }
 0x332   :  { %1821 = vmatpush1.bf16.msra.mxu1 %v2850_v26  ;;  %1781 = vmatprep.subr.bf16.mxu0 %v2851_v21  ;;  %v2855_v26 = vld [vmem:[%s4531_s7 + $0xc4] ss:$48 sps:$4 sm:$0xff]   ;;  %v2857_v21 = vld [vmem:[%s4531_s7 + $0xc0] ss:$48 sps:$4 sm:$0xff]  }
 0x333   :  { %1822 = vmatprep.subr.bf16.mxu1 %v2852_v24  ;;  %1811 = vmatprep.mubr.bf16.mxu0 %v4115_v32  ;;  %v2856_v24 = vld [vmem:[%s4531_s7 + $0xcc] ss:$48 sps:$4 sm:$0xff]  }
 0x334   :  { %1852 = vmatprep.mubr.bf16.mxu1 %v4115_v32 }
 0x335   :  { %1782 = vmatpush1.bf16.msra.mxu0 %v2853_v31  ;;  %v2858_v31 = vld [vmem:[%s4531_s7 + $0xc8] ss:$48 sps:$4 sm:$0xff]  }
 0x336   :  { %1823 = vmatpush1.bf16.msra.mxu1 %v2854_v23  ;;  %1783 = vmatprep.subr.bf16.mxu0 %v2855_v26  ;;  %v2859_v23 = vld [vmem:[%s4531_s7 + $0x124] ss:$48 sps:$4 sm:$0xff]   ;;  %v2860_v26 = vld [vmem:[%s4531_s7 + $0x12c] ss:$48 sps:$4 sm:$0xff]  }
 0x337   :  { %1824 = vmatprep.subr.bf16.mxu1 %v2856_v24  ;;  %v2861_v24 = vld [vmem:[%s4531_s7 + $0x120] ss:$48 sps:$4 sm:$0xff]  }
 0x339   :  { %1784 = vmatpush1.bf16.msra.mxu0 %v2857_v21  ;;  %v2862_v21 = vld [vmem:[%s4531_s7 + $0x128] ss:$48 sps:$4 sm:$0xff]  }
 0x33a   :  { %1825 = vmatpush1.bf16.msra.mxu1 %v2858_v31  ;;  %1785 = vmatprep.subr.bf16.mxu0 %v2859_v23  ;;  %v2863_v31 = vld [vmem:[%s4531_s7 + $0x184] ss:$48 sps:$4 sm:$0xff]   ;;  %v2864_v23 = vld [vmem:[%s4531_s7 + $0x18c] ss:$48 sps:$4 sm:$0xff]  }
 0x33b   :  { %1826 = vmatprep.subr.bf16.mxu1 %v2860_v26  ;;  %v2865_v26 = vld [vmem:[%s4531_s7 + $0x180] ss:$48 sps:$4 sm:$0xff]  }
 0x33d   :  { %1786 = vmatpush1.bf16.msra.mxu0 %v2861_v24  ;;  %v2866_v24 = vld [vmem:[%s4531_s7 + $0x188] ss:$48 sps:$4 sm:$0xff]  }
 0x33e   :  { %1827 = vmatpush1.bf16.msra.mxu1 %v2862_v21  ;;  %1787 = vmatprep.subr.bf16.mxu0 %v2863_v31  ;;  %v2867_v21 = vld [vmem:[%s4531_s7 + $0x1e4] ss:$48 sps:$4 sm:$0xff]   ;;  %v2868_v31 = vld [vmem:[%s4531_s7 + $0x1ec] ss:$48 sps:$4 sm:$0xff]  }
 0x33f   :  { %1828 = vmatprep.subr.bf16.mxu1 %v2864_v23  ;;  %v4804_v23 = vld [vmem:[#allocation33_spill] sm:$0xff] }
 0x341   :  { %1788 = vmatpush1.bf16.msra.mxu0 %v2865_v26  ;;  %v4805_v26 = vld [vmem:[#allocation34_spill] sm:$0xff] }
 0x342   :  { %1829 = vmatpush1.bf16.msra.mxu1 %v2866_v24  ;;  %1789 = vmatprep.subr.bf16.mxu0 %v2867_v21  ;;  %v4806_v24 = vld [vmem:[#allocation35_spill] sm:$0xff]  ;;  %v4807_v21 = vld [vmem:[#allocation36_spill] sm:$0xff] }
 0x343   :  { %1830 = vmatprep.subr.bf16.mxu1 %v2868_v31  ;;  %v4808_v31 = vld [vmem:[#allocation37_spill] sm:$0xff] }
 0x345   :  { %1790 = vmatpush1.bf16.msra.mxu0 %v3053_v33  ;;  %v4774_v33 = vld [vmem:[#allocation5_spill] sm:$0xff] }
 0x346   :  { %1831 = vmatpush1.bf16.msra.mxu1 %v3055_v34  ;;  %1791 = vmatprep.subr.bf16.mxu0 %v3062_v35  ;;  %v4775_v34 = vld [vmem:[#allocation6_spill] sm:$0xff]  ;;  %v4776_v35 = vld [vmem:[#allocation7_spill] sm:$0xff] }
 0x347   :  { %1832 = vmatprep.subr.bf16.mxu1 %v3067_v36  ;;  %v4242_v36 = vsub.s32 2, %v2923_v3 }
 0x349   :  { %1792 = vmatpush1.bf16.msra.mxu0 %v3072_v37  ;;  %v4248_v37 = vld [vmem:[%s4535_s8] sm:$0xff] }
 0x34a   :  { %1833 = vmatpush1.bf16.msra.mxu1 %v3077_v38  ;;  %1793 = vmatprep.subr.bf16.mxu0 %v3086_v39  ;;  %v4251_v38 = vsub.s32 3, %v2923_v3  ;;  %v4777_v39 = vld [vmem:[#allocation9_spill] sm:$0xff] }
 0x34b   :  { %1834 = vmatprep.subr.bf16.mxu1 %v3091_v40  ;;  %v4778_v40 = vld [vmem:[#allocation10_spill] sm:$0xff] }
 0x34d   :  { %1794 = vmatpush1.bf16.msra.mxu0 %v3096_v41  ;;  %v4779_v41 = vld [vmem:[#allocation3_spill] sm:$0xff] }
 0x34e   :  { %1835 = vmatpush1.bf16.msra.mxu1 %v3101_v42  ;;  %1795 = vmatprep.subr.bf16.mxu0 %v3110_v43  ;;  %v479_v42 = vrot.slane %v4248_v37, %v4779_v41  ;;  %v487_v43 = vrot.slane %v4248_v37, %v4242_v36 }
 0x34f   :  { %1836 = vmatprep.subr.bf16.mxu1 %v3115_v44  ;;  %v4780_v44 = vld [vmem:[#allocation11_spill] sm:$0xff] }
 0x351   :  { %1796 = vmatpush1.bf16.msra.mxu0 %v3120_v45  ;;  %v4781_v45 = vld [vmem:[#allocation4_spill] sm:$0xff] }
 0x352   :  { %1837 = vmatpush1.bf16.msra.mxu1 %v3125_v46  ;;  %1797 = vmatprep.subr.bf16.mxu0 %v3134_v47  ;;  %v483_v46 = vrot.slane %v4248_v37, %v4781_v45  ;;  %v491_v47 = vrot.slane %v4248_v37, %v4251_v38 }
 0x353   :  { %1838 = vmatprep.subr.bf16.mxu1 %v3139_v48  ;;  %v4782_v48 = vld [vmem:[#allocation12_spill] sm:$0xff] }
 0x355   :  { %1798 = vmatpush1.bf16.msra.mxu0 %v3144_v49  ;;  %v4783_v49 = vld [vmem:[#allocation13_spill] sm:$0xff] }
 0x356   :  { %1839 = vmatpush1.bf16.msra.mxu1 %v3149_v50  ;;  %1799 = vmatprep.subr.bf16.mxu0 %v3158_v51 }
 0x357   :  { %1840 = vmatprep.subr.bf16.mxu1 %v3163_v52  ;;  %v4784_v52 = vld [vmem:[#allocation14_spill] sm:$0xff] }
 0x359   :  { %1800 = vmatpush1.bf16.msra.mxu0 %v3168_v53 }
 0x35a   :  { %1841 = vmatpush1.bf16.msra.mxu1 %v3173_v54  ;;  %1801 = vmatprep.subr.bf16.mxu0 %v3182_v55 }
 0x35b   :  { %1842 = vmatprep.subr.bf16.mxu1 %v3187_v56 }
 0x35d   :  { %1802 = vmatpush1.bf16.msra.mxu0 %v3192_v57 }
 0x35e   :  { %1843 = vmatpush1.bf16.msra.mxu1 %v3197_v58  ;;  %1803 = vmatprep.subr.bf16.mxu0 %v3206_v59  ;;  %v4785_v59 = vld [vmem:[#allocation15_spill] sm:$0xff] }
 0x35f   :  { %1844 = vmatprep.subr.bf16.mxu1 %v3211_v60 }
 0x361   :  { %1804 = vmatpush1.bf16.msra.mxu0 %v3216_v61 }
 0x362   :  { %1845 = vmatpush1.bf16.msra.mxu1 %v3221_v62  ;;  %1805 = vmatprep.subr.bf16.mxu0 %v3230_v63  ;;  %v4786_v62 = vld [vmem:[#allocation16_spill] sm:$0xff] }
 0x363   :  { %1846 = vmatprep.subr.bf16.mxu1 %v3235_v0 }
 0x365   :  { %1806 = vmatpush1.bf16.msra.mxu0 %v3240_v1  ;;  %v4787_v1 = vld [vmem:[#allocation17_spill] sm:$0xff] }
 0x366   :  { %1847 = vmatpush1.bf16.msra.mxu1 %v3245_v2  ;;  %1807 = vmatprep.subr.bf16.mxu0 %v3252_v4 }
 0x367   :  { %1848 = vmatprep.subr.bf16.mxu1 %v3257_v5  ;;  %v4788_v5 = vld [vmem:[#allocation18_spill] sm:$0xff] }
 0x369   :  { %1808 = vmatpush1.bf16.msra.mxu0 %v3264_v7  ;;  %v4789_v7 = vld [vmem:[#allocation8_spill] sm:$0xff] }
 0x36a   :  { %1849 = vmatpush1.bf16.msra.mxu1 %v3269_v8  ;;  %1809 = vmatprep.subr.bf16.mxu0 %v3276_v9 }
 0x36b   :  { %1850 = vmatprep.subr.bf16.mxu1 %v3281_v10  ;;  %v4790_v10 = vld [vmem:[#allocation19_spill] sm:$0xff] }
 0x36d   :  { %1810 = vmatpush1.bf16.msra.mxu0 %v3288_v11  ;;  %v4791_v11 = vld [vmem:[#allocation20_spill] sm:$0xff] }
 0x36e   :  { %1851 = vmatpush1.bf16.msra.mxu1 %v4774_v33  ;;  %1861 = vmatprep.subr.bf16.mxu0 %v4775_v34  ;;  %v4809_v33 = vld [vmem:[#allocation38_spill] sm:$0xff]  ;;  %v4810_v34 = vld [vmem:[#allocation39_spill] sm:$0xff] }
 0x36f   :  { %1902 = vmatprep.subr.bf16.mxu1 %v4776_v35  ;;  %v4811_v35 = vld [vmem:[#allocation40_spill] sm:$0xff] }
 0x370   :  { %1812 = vmatmul.mubr.bf16.vlgmr.msra.gmra.mrb[12].mxu0 %v4103_v25 }
 0x371   :  { %1853 = vmatmul.mubr.bf16.vlgmr.msra.gmra.mrb[12].mxu1 %v4103_v25  ;;  %1862 = vmatpush1.bf16.msra.mxu0 %v3336_v20  ;;  %v4792_v20 = vld [vmem:[#allocation21_spill] sm:$0xff] }
 0x372   :  { %1903 = vmatpush1.bf16.msra.mxu1 %v3341_v6  ;;  %1863 = vmatprep.subr.bf16.mxu0 %v3351_v12 }
 0x373   :  { %1904 = vmatprep.subr.bf16.mxu1 %v3356_v13  ;;  %1893 = vmatprep.mubr.bf16.mxu0 %v4115_v32  ;;  %v4793_v13 = vld [vmem:[#allocation22_spill] sm:$0xff] }
 0x374   :  { %1934 = vmatprep.mubr.bf16.mxu1 %v4115_v32 }
 0x375   :  { %1864 = vmatpush1.bf16.msra.mxu0 %v3365_v14  ;;  %v4794_v14 = vld [vmem:[#allocation23_spill] sm:$0xff] }
 0x376   :  { %1905 = vmatpush1.bf16.msra.mxu1 %v3370_v27  ;;  %1865 = vmatprep.subr.bf16.mxu0 %v3377_v28  ;;  %v4795_v27 = vld [vmem:[#allocation24_spill] sm:$0xff]  ;;  %v4796_v28 = vld [vmem:[#allocation25_spill] sm:$0xff] }
 0x377   :  { %1906 = vmatprep.subr.bf16.mxu1 %v3382_v29  ;;  %v4797_v29 = vld [vmem:[#allocation26_spill] sm:$0xff] }
 0x379   :  { %1866 = vmatpush1.bf16.msra.mxu0 %v3391_v30  ;;  %v4798_v30 = vld [vmem:[#allocation27_spill] sm:$0xff] }
 0x37a   :  { %1907 = vmatpush1.bf16.msra.mxu1 %v3396_v15  ;;  %1867 = vmatprep.subr.bf16.mxu0 %v3403_v16  ;;  %v4799_v15 = vld [vmem:[#allocation28_spill] sm:$0xff]  ;;  %v4800_v16 = vld [vmem:[#allocation29_spill] sm:$0xff] }
 0x37b   :  { %1908 = vmatprep.subr.bf16.mxu1 %v3408_v18  ;;  %v4801_v18 = vld [vmem:[#allocation30_spill] sm:$0xff] }
 0x37d   :  { %1868 = vmatpush1.bf16.msra.mxu0 %v3415_v19  ;;  %v4802_v19 = vld [vmem:[#allocation31_spill] sm:$0xff] }
 0x37e   :  { %1909 = vmatpush1.bf16.msra.mxu1 %v3420_v22  ;;  %1869 = vmatprep.subr.bf16.mxu0 %v4777_v39  ;;  %v4803_v22 = vld [vmem:[#allocation32_spill] sm:$0xff]  ;;  %v4812_v39 = vld [vmem:[#allocation41_spill] sm:$0xff] }
 0x37f   :  { %1910 = vmatprep.subr.bf16.mxu1 %v4778_v40  ;;  %v4813_v40 = vld [vmem:[#allocation42_spill] sm:$0xff] }
 0x381   :  { %1870 = vmatpush1.bf16.msra.mxu0 %v4780_v44  ;;  %v4816_v44 = vld [vmem:[#allocation45_spill] sm:$0xff] }
 0x382   :  { %1911 = vmatpush1.bf16.msra.mxu1 %v4782_v48  ;;  %1871 = vmatprep.subr.bf16.mxu0 %v4783_v49  ;;  %v4819_v48 = vld [vmem:[#allocation48_spill] sm:$0xff]  ;;  %v4820_v49 = vld [vmem:[#allocation49_spill] sm:$0xff] }
 0x383   :  { %v1555_v50 = vpop.f32.mrb[0].mxu0  ;;  %v1596_v51 = vpop.f32.mrb[0].mxu1  ;;  %1912 = vmatprep.subr.bf16.mxu1 %v4784_v52  ;;  %v4823_v52 = vld [vmem:[#allocation52_spill] sm:$0xff] }
 0x384   :  { %v1556_v53 = vadd.f32 %v1555_v50, %v479_v42  ;;  %v1597_v54 = vadd.f32 %v1596_v51, %v487_v43  ;;  %v1557_v55 = vpop.f32.mrb[1].mxu0  ;;  %v1598_v56 = vpop.f32.mrb[1].mxu1  ;;  %v4814_v42 = vld [vmem:[#allocation43_spill] sm:$0xff]  ;;  %v4815_v43 = vld [vmem:[#allocation44_spill] sm:$0xff]  ;;  %v4821_v50 = vld [vmem:[#allocation50_spill] sm:$0xff] }
 0x385   :  { %v1558_v57 = vadd.f32 %v1557_v55, %v483_v46  ;;  %v1599_v58 = vadd.f32 %v1598_v56, %v491_v47  ;;  %1872 = vmatpush1.bf16.msra.mxu0 %v4785_v59  ;;  %v1559_v60 = vpop.f32.mrb[2].mxu0  ;;  %v1600_v61 = vpop.f32.mrb[2].mxu1  ;;  %v4817_v46 = vld [vmem:[#allocation46_spill] sm:$0xff]  ;;  %v4818_v47 = vld [vmem:[#allocation47_spill] sm:$0xff]  ;;  %v4827_v56 = vld [vmem:[#allocation56_spill] sm:$0xff] }
 0x386   :  { %1913 = vmatpush1.bf16.msra.mxu1 %v4786_v62  ;;  %v1560_v63 = vpop.f32.mrb[3].mxu0  ;;  %v1601_v0 = vpop.f32.mrb[3].mxu1  ;;  %1873 = vmatprep.subr.bf16.mxu0 %v4787_v1  ;;  %v4822_v51 = vld [vmem:[#allocation51_spill] sm:$0xff]  ;;  %v4831_v60 = vld [vmem:[#allocation60_spill] sm:$0xff]  ;;  %v4832_v61 = vld [vmem:[#allocation61_spill] sm:$0xff] }
 0x387   :  { %v2049_v2 = vcombine.low %v1556_v53, %v1558_v57  ;;  %v2050_v4 = vcombine.low %v1597_v54, %v1599_v58  ;;  %1914 = vmatprep.subr.bf16.mxu1 %v4788_v5  ;;  %v4824_v53 = vld [vmem:[#allocation53_spill] sm:$0xff]  ;;  %v4825_v54 = vld [vmem:[#allocation54_spill] sm:$0xff]  ;;  %v4826_v55 = vld [vmem:[#allocation55_spill] sm:$0xff] }
 0x388   :  { %v4828_v57 = vld [vmem:[#allocation57_spill] sm:$0xff]  ;;  %v4829_v58 = vld [vmem:[#allocation58_spill] sm:$0xff]  ;;  %v4830_v59 = vld [vmem:[#allocation59_spill] sm:$0xff] }
 0x389   :  { %v4273_v8 = vrot.slane %v2049_v2, %v4789_v7  ;;  %v4276_v9 = vrot.slane %v2050_v4, %v4789_v7  ;;  %1874 = vmatpush1.bf16.msra.mxu0 %v4790_v10  ;;  %v4833_v62 = vld [vmem:[#allocation62_spill] sm:$0xff]  ;;  %v4834_v63 = vld [vmem:[#allocation63_spill] sm:$0xff]  ;;  %v4835_v0 = vld [vmem:[#allocation64_spill] sm:$0xff] }
 0x38a   :  { %1915 = vmatpush1.bf16.msra.mxu1 %v4791_v11  ;;  %1875 = vmatprep.subr.bf16.mxu0 %v4792_v20  ;;  %v4836_v1 = vld [vmem:[#allocation65_spill] sm:$0xff]  ;;  %v4837_v2 = vld [vmem:[#allocation66_spill] sm:$0xff]  ;;  %v4838_v4 = vld [vmem:[#allocation67_spill] sm:$0xff]  ;;  %v4339_v20 = vsub.s32 4, %v2923_v3 }
 0x38b   :  { %v2081_v6 = vcombine.low %v4273_v8, %v4276_v9  ;;  %v2082_v12 = vcombine.high %v4273_v8, %v4276_v9  ;;  %1916 = vmatprep.subr.bf16.mxu1 %v4793_v13  ;;  %v4839_v5 = vld [vmem:[#allocation68_spill] sm:$0xff]  ;;  %v4840_v10 = vld [vmem:[#allocation69_spill] sm:$0xff]  ;;  %v4841_v11 = vld [vmem:[#allocation70_spill] sm:$0xff] }
 0x38c   :  { %v4842_v13 = vld [vmem:[#allocation71_spill] sm:$0xff]  ;;  %v4863_v8 = vld [vmem:[#allocation92_spill] sm:$0xff]  ;;  %v4864_v9 = vld [vmem:[#allocation93_spill] sm:$0xff] }
 0x38d   :  { %1876 = vmatpush1.bf16.msra.mxu0 %v4794_v14  ;;  %v4346_v14 = vsub.s32 5, %v2923_v3 }
 0x38e   :  { %1917 = vmatpush1.bf16.msra.mxu1 %v4795_v27  ;;  %1877 = vmatprep.subr.bf16.mxu0 %v4796_v28  ;;  %v4349_v27 = vsub.s32 7, %v2923_v3  ;;  %v4843_v28 = vld [vmem:[#allocation72_spill] sm:$0xff] }
 0x38f   :  { %1918 = vmatprep.subr.bf16.mxu1 %v4797_v29  ;;  %v4844_v29 = vld [vmem:[#allocation73_spill] sm:$0xff] }
 0x391   :  { %1878 = vmatpush1.bf16.msra.mxu0 %v4798_v30  ;;  %v4845_v30 = vld [vmem:[#allocation74_spill] sm:$0xff] }
 0x392   :  { %1919 = vmatpush1.bf16.msra.mxu1 %v4799_v15  ;;  %1879 = vmatprep.subr.bf16.mxu0 %v4800_v16  ;;  %v495_v15 = vrot.slane %v4248_v37, %v4339_v20 }
 0x393   :  { %1920 = vmatprep.subr.bf16.mxu1 %v4801_v18  ;;  %v4846_v18 = vld [vmem:[#allocation75_spill] sm:$0xff] }
 0x395   :  { %1880 = vmatpush1.bf16.msra.mxu0 %v4802_v19  ;;  %v499_v19 = vrot.slane %v4248_v37, %v4346_v14 }
 0x396   :  { %1921 = vmatpush1.bf16.msra.mxu1 %v4803_v22  ;;  %1881 = vmatprep.subr.bf16.mxu0 %v4804_v23  ;;  %v4847_v22 = vld [vmem:[#allocation76_spill] sm:$0xff]  ;;  %v4848_v23 = vld [vmem:[#allocation77_spill] sm:$0xff] }
 0x397   :  { %1922 = vmatprep.subr.bf16.mxu1 %v4805_v26 }
 0x399   :  { %1882 = vmatpush1.bf16.msra.mxu0 %v4806_v24 }
 0x39a   :  { %1923 = vmatpush1.bf16.msra.mxu1 %v4807_v21  ;;  %1883 = vmatprep.subr.bf16.mxu0 %v4808_v31  ;;  %v4849_v21 = vld [vmem:[#allocation78_spill] sm:$0xff] }
 0x39b   :  { %1924 = vmatprep.subr.bf16.mxu1 %v4809_v33 }
 0x39d   :  { %1884 = vmatpush1.bf16.msra.mxu0 %v4810_v34 }
 0x39e   :  { %1925 = vmatpush1.bf16.msra.mxu1 %v4811_v35  ;;  %1885 = vmatprep.subr.bf16.mxu0 %v4812_v39 }
 0x39f   :  { %1926 = vmatprep.subr.bf16.mxu1 %v4813_v40 }
 0x3a1   :  { %1886 = vmatpush1.bf16.msra.mxu0 %v4814_v42 }
 0x3a2   :  { %1927 = vmatpush1.bf16.msra.mxu1 %v4815_v43  ;;  %1887 = vmatprep.subr.bf16.mxu0 %v4816_v44  ;;  %v4850_v44 = vld [vmem:[#allocation79_spill] sm:$0xff] }
 0x3a3   :  { %1928 = vmatprep.subr.bf16.mxu1 %v4817_v46  ;;  %v4851_v46 = vld [vmem:[#allocation80_spill] sm:$0xff] }
 0x3a5   :  { %1888 = vmatpush1.bf16.msra.mxu0 %v4818_v47 }
 0x3a6   :  { %1929 = vmatpush1.bf16.msra.mxu1 %v4819_v48  ;;  %1889 = vmatprep.subr.bf16.mxu0 %v4820_v49  ;;  %v4852_v48 = vld [vmem:[#allocation81_spill] sm:$0xff] }
 0x3a7   :  { %1930 = vmatprep.subr.bf16.mxu1 %v4821_v50 }
 0x3a9   :  { %1890 = vmatpush1.bf16.msra.mxu0 %v4822_v51  ;;  %v4853_v51 = vld [vmem:[#allocation82_spill] sm:$0xff] }
 0x3aa   :  { %1931 = vmatpush1.bf16.msra.mxu1 %v4823_v52  ;;  %1891 = vmatprep.subr.bf16.mxu0 %v4824_v53 }
 0x3ab   :  { %1932 = vmatprep.subr.bf16.mxu1 %v4825_v54  ;;  %v4854_v54 = vld [vmem:[#allocation83_spill] sm:$0xff] }
 0x3ad   :  { %1892 = vmatpush1.bf16.msra.mxu0 %v4826_v55  ;;  %v4855_v55 = vld [vmem:[#allocation84_spill] sm:$0xff] }
 0x3ae   :  { %1933 = vmatpush1.bf16.msra.mxu1 %v4827_v56  ;;  %1943 = vmatprep.subr.bf16.mxu0 %v4828_v57  ;;  %v4856_v56 = vld [vmem:[#allocation85_spill] sm:$0xff] }
 0x3af   :  { %1984 = vmatprep.subr.bf16.mxu1 %v4829_v58 }
 0x3b0   :  { %1894 = vmatmul.mubr.bf16.vlgmr.msra.gmra.mrb[16].mxu0 %v4103_v25 }
 0x3b1   :  { %1935 = vmatmul.mubr.bf16.vlgmr.msra.gmra.mrb[16].mxu1 %v4103_v25  ;;  %1944 = vmatpush1.bf16.msra.mxu0 %v4830_v59  ;;  %v4857_v59 = vld [vmem:[#allocation86_spill] sm:$0xff] }
 0x3b2   :  { %1985 = vmatpush1.bf16.msra.mxu1 %v4831_v60  ;;  %1945 = vmatprep.subr.bf16.mxu0 %v4832_v61  ;;  %v2091_v60 = vrot.slane %v2081_v6, %v4789_v7  ;;  %v2098_v61 = vrot.slane %v2082_v12, %v4789_v7  ;;  %v4861_v6 = vld [vmem:[#allocation90_spill] sm:$0xff] }
 0x3b3   :  { %1986 = vmatprep.subr.bf16.mxu1 %v4833_v62  ;;  %1975 = vmatprep.mubr.bf16.mxu0 %v4115_v32  ;;  %v4865_v12 = vld [vmem:[#allocation94_spill] sm:$0xff] }
 0x3b4   :  { %2016 = vmatprep.mubr.bf16.mxu1 %v4115_v32  ;;  %v4342_v32 = vsub.s32 6, %v2923_v3  ;;  %v507_v3 = vrot.slane %v4248_v37, %v4349_v27 }
 0x3b5   :  { %1946 = vmatpush1.bf16.msra.mxu0 %v4834_v63 }
 0x3b6   :  { %1987 = vmatpush1.bf16.msra.mxu1 %v4835_v0  ;;  %1947 = vmatprep.subr.bf16.mxu0 %v4836_v1  ;;  %v503_v16 = vrot.slane %v4248_v37, %v4342_v32  ;;  %v4858_v0 = vld [vmem:[#allocation87_spill] sm:$0xff]  ;;  %v4859_v1 = vld [vmem:[#allocation88_spill] sm:$0xff] }
 0x3b7   :  { %1988 = vmatprep.subr.bf16.mxu1 %v4837_v2  ;;  %v4860_v2 = vld [vmem:[#allocation89_spill] sm:$0xff] }
 0x3b9   :  { %1948 = vmatpush1.bf16.msra.mxu0 %v4838_v4 }
 0x3ba   :  { %1989 = vmatpush1.bf16.msra.mxu1 %v4839_v5  ;;  %1949 = vmatprep.subr.bf16.mxu0 %v4840_v10  ;;  %v4862_v10 = vld [vmem:[#allocation91_spill] sm:$0xff] }
 0x3bb   :  { %1990 = vmatprep.subr.bf16.mxu1 %v4841_v11  ;;  %v4866_v11 = vld [vmem:[#allocation95_spill] sm:$0xff] }
 0x3bd   :  { %1950 = vmatpush1.bf16.msra.mxu0 %v4842_v13  ;;  %v4867_v13 = vld [vmem:[#allocation96_spill] sm:$0xff] }
 0x3be   :  { %1991 = vmatpush1.bf16.msra.mxu1 %v4843_v28  ;;  %1951 = vmatprep.subr.bf16.mxu0 %v4844_v29  ;;  %v4868_v28 = vld [vmem:[#allocation97_spill] sm:$0xff]  ;;  %v4869_v29 = vld [vmem:[#allocation98_spill] sm:$0xff] }
 0x3bf   :  { %1992 = vmatprep.subr.bf16.mxu1 %v4845_v30  ;;  %v4870_v30 = vld [vmem:[#allocation99_spill] sm:$0xff] }
 0x3c1   :  { %1952 = vmatpush1.bf16.msra.mxu0 %v4846_v18  ;;  %v4873_v18 = vld [vmem:[#allocation102_spill] sm:$0xff] }
 0x3c2   :  { %1993 = vmatpush1.bf16.msra.mxu1 %v4847_v22  ;;  %1953 = vmatprep.subr.bf16.mxu0 %v4848_v23  ;;  %v4876_v22 = vld [vmem:[#allocation105_spill] sm:$0xff]  ;;  %v4877_v23 = vld [vmem:[#allocation106_spill] sm:$0xff] }
 0x3c3   :  { %v1637_v26 = vpop.f32.mrb[4].mxu0  ;;  %v1678_v24 = vpop.f32.mrb[4].mxu1  ;;  %1994 = vmatprep.subr.bf16.mxu1 %v4849_v21  ;;  %v4880_v21 = vld [vmem:[#allocation109_spill] sm:$0xff] }
 0x3c4   :  { %v1638_v31 = vadd.f32 %v1637_v26, %v495_v15  ;;  %v1679_v33 = vadd.f32 %v1678_v24, %v503_v16  ;;  %v1639_v34 = vpop.f32.mrb[5].mxu0  ;;  %v1680_v35 = vpop.f32.mrb[5].mxu1  ;;  %v4871_v15 = vld [vmem:[#allocation100_spill] sm:$0xff]  ;;  %v4872_v16 = vld [vmem:[#allocation101_spill] sm:$0xff]  ;;  %v4878_v26 = vld [vmem:[#allocation107_spill] sm:$0xff] }
 0x3c5   :  { %v1640_v39 = vadd.f32 %v1639_v34, %v499_v19  ;;  %v1681_v40 = vadd.f32 %v1680_v35, %v507_v3  ;;  %v1641_v42 = vpop.f32.mrb[6].mxu0  ;;  %v1682_v43 = vpop.f32.mrb[6].mxu1  ;;  %1954 = vmatpush1.bf16.msra.mxu0 %v4850_v44  ;;  %v4874_v19 = vld [vmem:[#allocation103_spill] sm:$0xff]  ;;  %v4875_v3 = vld [vmem:[#allocation104_spill] sm:$0xff]  ;;  %v4884_v35 = vld [vmem:[#allocation113_spill] sm:$0xff] }
 0x3c6   :  { %1995 = vmatpush1.bf16.msra.mxu1 %v4851_v46  ;;  %v1642_v37 = vpop.f32.mrb[7].mxu0  ;;  %v1683_v47 = vpop.f32.mrb[7].mxu1  ;;  %1955 = vmatprep.subr.bf16.mxu0 %v4852_v48  ;;  %v4879_v24 = vld [vmem:[#allocation108_spill] sm:$0xff]  ;;  %v4888_v43 = vld [vmem:[#allocation117_spill] sm:$0xff]  ;;  %v4889_v44 = vld [vmem:[#allocation118_spill] sm:$0xff] }
 0x3c7   :  { %v2051_v49 = vcombine.low %v1638_v31, %v1640_v39  ;;  %v2052_v50 = vcombine.low %v1679_v33, %v1681_v40  ;;  %1996 = vmatprep.subr.bf16.mxu1 %v4853_v51  ;;  %v4881_v31 = vld [vmem:[#allocation110_spill] sm:$0xff]  ;;  %v4882_v33 = vld [vmem:[#allocation111_spill] sm:$0xff]  ;;  %v4883_v34 = vld [vmem:[#allocation112_spill] sm:$0xff] }
 0x3c8   :  { %v4885_v39 = vld [vmem:[#allocation114_spill] sm:$0xff]  ;;  %v4886_v40 = vld [vmem:[#allocation115_spill] sm:$0xff]  ;;  %v4887_v42 = vld [vmem:[#allocation116_spill] sm:$0xff] }
 0x3c9   :  { %v2073_v52 = vrot.slane %v2051_v49, %v4789_v7  ;;  %v2080_v53 = vrot.slane %v2052_v50, %v4789_v7  ;;  %1956 = vmatpush1.bf16.msra.mxu0 %v4854_v54  ;;  %v4890_v46 = vld [vmem:[#allocation119_spill] sm:$0xff] }
 0x3ca   :  { %1997 = vmatpush1.bf16.msra.mxu1 %v4855_v55  ;;  %1957 = vmatprep.subr.bf16.mxu0 %v4856_v56 }
 0x3cb   :  { %v2083_v57 = vcombine.low %v2073_v52, %v2080_v53  ;;  %v2084_v58 = vcombine.high %v2073_v52, %v2080_v53  ;;  %1998 = vmatprep.subr.bf16.mxu1 %v4857_v59 }
 0x3cd   :  { %v2105_v62 = vrot.slane %v2083_v57, %v4789_v7  ;;  %v2112_v63 = vrot.slane %v2084_v58, %v4789_v7  ;;  %1958 = vmatpush1.bf16.msra.mxu0 %v4858_v0 }
 0x3ce   :  { %1999 = vmatpush1.bf16.msra.mxu1 %v4859_v1  ;;  %1959 = vmatprep.subr.bf16.mxu0 %v4860_v2 }
 0x3cf   :  { %v4389_v4 = vcombine.low %v2091_v60, %v2105_v62  ;;  %v4391_v5 = vcombine.low %v2098_v61, %v2112_v63  ;;  %2000 = vmatprep.subr.bf16.mxu1 %v4861_v6 }
 0x3d1   :  { %1960 = vmatpush1.bf16.msra.mxu0 %v4862_v10  ;;  %v2150_v10 = vrot.slane %v4389_v4, %v4779_v41 }
 0x3d2   :  { %2001 = vmatpush1.bf16.msra.mxu1 %v4863_v8  ;;  %1961 = vmatprep.subr.bf16.mxu0 %v4864_v9  ;;  %v2198_v8 = vrot.slane %v4391_v5, %v4779_v41 }
 0x3d3   :  { %2002 = vmatprep.subr.bf16.mxu1 %v4865_v12 }
 0x3d5   :  { %1962 = vmatpush1.bf16.msra.mxu0 %v4866_v11  ;;  %v2158_v11 = vrot.slane %v4389_v4, %v4242_v36 }
 0x3d6   :  { %2003 = vmatpush1.bf16.msra.mxu1 %v4867_v13  ;;  %1963 = vmatprep.subr.bf16.mxu0 %v4868_v28  ;;  %v2206_v13 = vrot.slane %v4391_v5, %v4242_v36 }
 0x3d7   :  { %2004 = vmatprep.subr.bf16.mxu1 %v4869_v29  ;;  %v2154_v29 = vrot.slane %v4389_v4, %v4781_v45 }
 0x3d9   :  { %1964 = vmatpush1.bf16.msra.mxu0 %v4870_v30 }
 0x3da   :  { %2005 = vmatpush1.bf16.msra.mxu1 %v4871_v15  ;;  %1965 = vmatprep.subr.bf16.mxu0 %v4872_v16  ;;  %v2202_v16 = vrot.slane %v4391_v5, %v4781_v45 }
 0x3db   :  { %2006 = vmatprep.subr.bf16.mxu1 %v4873_v18 }
 0x3dd   :  { %1966 = vmatpush1.bf16.msra.mxu0 %v4874_v19  ;;  %v2162_v19 = vrot.slane %v4389_v4, %v4251_v38 }
 0x3de   :  { %2007 = vmatpush1.bf16.msra.mxu1 %v4875_v3  ;;  %1967 = vmatprep.subr.bf16.mxu0 %v4876_v22 }
 0x3df   :  { %2008 = vmatprep.subr.bf16.mxu1 %v4877_v23 }
 0x3e1   :  { %1968 = vmatpush1.bf16.msra.mxu0 %v4878_v26 }
 0x3e2   :  { %2009 = vmatpush1.bf16.msra.mxu1 %v4879_v24  ;;  %1969 = vmatprep.subr.bf16.mxu0 %v4880_v21  ;;  %v2210_v24 = vrot.slane %v4391_v5, %v4251_v38 }
 0x3e3   :  { %2010 = vmatprep.subr.bf16.mxu1 %v4881_v31 }
 0x3e5   :  { %1970 = vmatpush1.bf16.msra.mxu0 %v4882_v33 }
 0x3e6   :  { %2011 = vmatpush1.bf16.msra.mxu1 %v4049_v17  ;;  %1971 = vmatprep.subr.bf16.mxu0 %v4883_v34  ;;  %v473_v17 = vld [vmem:[%s4535_s8 + $0x8] sm:$0xf] }
 0x3e7   :  { %2012 = vmatprep.subr.bf16.mxu1 %v4884_v35  ;;  %v511_v37 = vrot.slane %v473_v17, %v4779_v41  ;;  %v519_v47 = vrot.slane %v473_v17, %v4242_v36  ;;  %v515_v48 = vrot.slane %v473_v17, %v4781_v45  ;;  %v523_v49 = vrot.slane %v473_v17, %v4251_v38 }
 0x3e9   :  { %1972 = vmatpush1.bf16.msra.mxu0 %v4885_v39 }
 0x3ea   :  { %2013 = vmatpush1.bf16.msra.mxu1 %v4886_v40  ;;  %1973 = vmatprep.subr.bf16.mxu0 %v4887_v42 }
 0x3eb   :  { %2014 = vmatprep.subr.bf16.mxu1 %v4888_v43 }
 0x3ed   :  { %1974 = vmatpush1.bf16.msra.mxu0 %v4889_v44 }
 0x3ee   :  { %2015 = vmatpush1.bf16.msra.mxu1 %v4890_v46 }
 0x3f0   :  { %1976 = vmatmul.mubr.bf16.vlgmr.msra.gmra.mrb[20].mxu0 %v4103_v25 }
 0x3f1   :  { %2017 = vmatmul.mubr.bf16.vlgmr.msra.gmra.mrb[20].mxu1 %v4103_v25 }
 0x403   :  { %v1719_v50 = vpop.f32.mrb[8].mxu0 }
 0x404   :  { %v1720_v51 = vadd.f32 %v1719_v50, %v511_v37  ;;  %v1760_v52 = vpop.f32.mrb[8].mxu1  ;;  %v1721_v53 = vpop.f32.mrb[9].mxu0 }
 0x405   :  { %v1761_v54 = vadd.f32 %v1760_v52, %v519_v47  ;;  %v1722_v55 = vadd.f32 %v1721_v53, %v515_v48  ;;  %v1762_v56 = vpop.f32.mrb[9].mxu1  ;;  %v1723_v25 = vpop.f32.mrb[10].mxu0  ;;  %v2166_v48 = vrot.slane %v4389_v4, %v4339_v20  ;;  %v2174_v52 = vrot.slane %v4389_v4, %v4342_v32 }
 0x406   :  { %v1763_v57 = vadd.f32 %v1762_v56, %v523_v49  ;;  %v1764_v58 = vpop.f32.mrb[10].mxu1  ;;  %v1724_v59 = vpop.f32.mrb[11].mxu0  ;;  %v2214_v49 = vrot.slane %v4391_v5, %v4339_v20  ;;  %v2222_v53 = vrot.slane %v4391_v5, %v4342_v32  ;;  %v2178_v20 = vrot.slane %v4389_v4, %v4349_v27 }
 0x407   :  { %v2115_v60 = vcombine.low %v1720_v51, %v1722_v55  ;;  %v1765_v61 = vpop.f32.mrb[11].mxu1  ;;  %v2170_v55 = vrot.slane %v4389_v4, %v4346_v14  ;;  %v2226_v32 = vrot.slane %v4391_v5, %v4349_v27 }
 0x408   :  { %v2116_v62 = vcombine.low %v1761_v54, %v1763_v57  ;;  %v2218_v57 = vrot.slane %v4391_v5, %v4346_v14 }
 0x409   :  { %v4434_v63 = vrot.slane %v2115_v60, %v4789_v7 }
 0x40a   :  { %v4437_v0 = vrot.slane %v2116_v62, %v4789_v7 }
 0x40c   :  { %v2131_v1 = vcombine.low %v4434_v63, %v4437_v0  ;;  %v2132_v2 = vcombine.high %v4434_v63, %v4437_v0 }
 0x40e   :  { %v2139_v27 = vrot.slane %v2131_v1, %v4789_v7  ;;  %v2146_v5 = vrot.slane %v2132_v2, %v4789_v7 }
 0x410   :  { %v2194_v7 = vrot.slane %v2139_v27, %v4251_v38 }
 0x443   :  { %v1813_v6 = vpop.f32.mrb[12].mxu0 }
 0x444   :  { %v2025_v9 = vmul.f32 0.1, %v1813_v6  ;;  %v1854_v12 = vpop.f32.mrb[12].mxu1  ;;  %v1815_v28 = vpop.f32.mrb[13].mxu0 }
 0x445   :  { %v2027_v30 = vmul.f32 0.1, %v1854_v12  ;;  %v2026_v15 = vmul.f32 0.1, %v1815_v28  ;;  %v1856_v18 = vpop.f32.mrb[13].mxu1  ;;  %v1817_v3 = vpop.f32.mrb[14].mxu0 }
 0x446   :  { %v2267_v22 = vadd.f32 %v2150_v10, %v2025_v9  ;;  %v2279_v23 = vadd.f32 %v2198_v8, %v2025_v9  ;;  %v2028_v26 = vmul.f32 0.1, %v1856_v18  ;;  %v1858_v21 = vpop.f32.mrb[14].mxu1  ;;  %v1818_v31 = vpop.f32.mrb[15].mxu0  ;;  %v2182_v18 = vrot.slane %v2139_v27, %v4779_v41 }
 0x447   :  { %v2269_v33 = vadd.f32 %v2158_v11, %v2027_v30  ;;  %v2281_v34 = vadd.f32 %v2206_v13, %v2027_v30  ;;  %v2268_v35 = vadd.f32 %v2154_v29, %v2026_v15  ;;  %v2280_v39 = vadd.f32 %v2202_v16, %v2026_v15  ;;  %v1859_v40 = vpop.f32.mrb[15].mxu1 }
 0x448   :  { %v2270_v42 = vadd.f32 %v2162_v19, %v2028_v26  ;;  %v2282_v43 = vadd.f32 %v2210_v24, %v2028_v26  ;;  %v2230_v19 = vrot.slane %v2146_v5, %v4779_v41  ;;  %v2238_v26 = vrot.slane %v2146_v5, %v4242_v36 }
 0x449   :  { %v2315_v44 = vcombine.low %v2267_v22, %v2268_v35  ;;  %v2321_v46 = vcombine.low %v2279_v23, %v2280_v39  ;;  %v2190_v23 = vrot.slane %v2139_v27, %v4242_v36  ;;  %v2186_v21 = vrot.slane %v2139_v27, %v4781_v45 }
 0x44a   :  { %v2316_v17 = vcombine.low %v2269_v33, %v2270_v42  ;;  %v2322_v37 = vcombine.low %v2281_v34, %v2282_v43  ;;  %v2234_v33 = vrot.slane %v2146_v5, %v4781_v45  ;;  %v2242_v35 = vrot.slane %v2146_v5, %v4251_v38 }
 0x44b   :  { %2339 = vst [vmem:[%s4536_s9] sm:$0x77] %v2315_v44  ;;  %2345 = vst [vmem:[%s4536_s9 + $0x30] sm:$0x77] %v2321_v46 }
 0x44c   :  { %2340 = vst [vmem:[%s4536_s9 + $0x8] sm:$0x77] %v2316_v17  ;;  %2346 = vst [vmem:[%s4536_s9 + $0x38] sm:$0x77] %v2322_v37 }
 0x483   :  { %v1895_v47 = vpop.f32.mrb[16].mxu0 }
 0x484   :  { %v2029_v50 = vmul.f32 0.1, %v1895_v47  ;;  %v1936_v51 = vpop.f32.mrb[16].mxu1  ;;  %v1897_v54 = vpop.f32.mrb[17].mxu0 }
 0x485   :  { %v2031_v56 = vmul.f32 0.1, %v1936_v51  ;;  %v2030_v25 = vmul.f32 0.1, %v1897_v54  ;;  %v1938_v58 = vpop.f32.mrb[17].mxu1  ;;  %v1899_v59 = vpop.f32.mrb[18].mxu0 }
 0x486   :  { %v2271_v60 = vadd.f32 %v2166_v48, %v2029_v50  ;;  %v2283_v61 = vadd.f32 %v2214_v49, %v2029_v50  ;;  %v2032_v62 = vmul.f32 0.1, %v1938_v58  ;;  %v1940_v6 = vpop.f32.mrb[18].mxu1  ;;  %v1900_v10 = vpop.f32.mrb[19].mxu0 }
 0x487   :  { %v2273_v8 = vadd.f32 %v2174_v52, %v2031_v56  ;;  %v2285_v9 = vadd.f32 %v2222_v53, %v2031_v56  ;;  %v2272_v12 = vadd.f32 %v2170_v55, %v2030_v25  ;;  %v2284_v11 = vadd.f32 %v2218_v57, %v2030_v25  ;;  %v1941_v13 = vpop.f32.mrb[19].mxu1 }
 0x488   :  { %v2274_v28 = vadd.f32 %v2178_v20, %v2032_v62  ;;  %v2286_v14 = vadd.f32 %v2226_v32, %v2032_v62 }
 0x489   :  { %v2317_v29 = vcombine.low %v2271_v60, %v2272_v12  ;;  %v2323_v30 = vcombine.low %v2283_v61, %v2284_v11 }
 0x48a   :  { %v2318_v15 = vcombine.low %v2273_v8, %v2274_v28  ;;  %v2324_v4 = vcombine.low %v2285_v9, %v2286_v14 }
 0x48b   :  { %2341 = vst [vmem:[%s4536_s9 + $0x10] sm:$0x77] %v2317_v29  ;;  %2347 = vst [vmem:[%s4536_s9 + $0x40] sm:$0x77] %v2323_v30 }
 0x48c   :  { %2342 = vst [vmem:[%s4536_s9 + $0x18] sm:$0x77] %v2318_v15  ;;  %2348 = vst [vmem:[%s4536_s9 + $0x48] sm:$0x77] %v2324_v4 }
 0x4c3   :  { %v1977_v16 = vpop.f32.mrb[20].mxu0 }
 0x4c4   :  { %v2033_v3 = vmul.f32 0.1, %v1977_v16  ;;  %v2018_v22 = vpop.f32.mrb[20].mxu1  ;;  %v1979_v24 = vpop.f32.mrb[21].mxu0 }
 0x4c5   :  { %v2035_v1 = vmul.f32 0.1, %v2018_v22  ;;  %v2034_v31 = vmul.f32 0.1, %v1979_v24  ;;  %v2020_v63 = vpop.f32.mrb[21].mxu1  ;;  %v1981_v0 = vpop.f32.mrb[22].mxu0 }
 0x4c6   :  { %v2275_v2 = vadd.f32 %v2182_v18, %v2033_v3  ;;  %v2287_v34 = vadd.f32 %v2230_v19, %v2033_v3  ;;  %v2036_v41 = vmul.f32 0.1, %v2020_v63  ;;  %v2022_v39 = vpop.f32.mrb[22].mxu1  ;;  %v1982_v40 = vpop.f32.mrb[23].mxu0 }
 0x4c7   :  { %v2277_v42 = vadd.f32 %v2190_v23, %v2035_v1  ;;  %v2289_v36 = vadd.f32 %v2238_v26, %v2035_v1  ;;  %v2276_v43 = vadd.f32 %v2186_v21, %v2034_v31  ;;  %v2288_v44 = vadd.f32 %v2234_v33, %v2034_v31  ;;  %v2023_v46 = vpop.f32.mrb[23].mxu1 }
 0x4c8   :  { %v2278_v17 = vadd.f32 %v2194_v7, %v2036_v41  ;;  %v2290_v37 = vadd.f32 %v2242_v35, %v2036_v41 }
 0x4c9   :  { %v2319_v47 = vcombine.low %v2275_v2, %v2276_v43  ;;  %v2325_v45 = vcombine.low %v2287_v34, %v2288_v44 }
 0x4ca   :  { %v2320_v48 = vcombine.low %v2277_v42, %v2278_v17  ;;  %v2326_v49 = vcombine.low %v2289_v36, %v2290_v37 }
 0x4cb   :  { %2343 = vst [vmem:[%s4536_s9 + $0x20] sm:$0x77] %v2319_v47  ;;  %2349 = vst [vmem:[%s4536_s9 + $0x50] sm:$0x77] %v2325_v45 }
 0x4cc   :  { %2344 = vst [vmem:[%s4536_s9 + $0x28] sm:$0x77] %v2320_v48  ;;  %2350 = vst [vmem:[%s4536_s9 + $0x58] sm:$0x77] %v2326_v49 }

</bundles_post_ra>
